<compile_context>
chip_gen: v5e
topology: v5e:2x2
jax: 0.10.0
libtpu: 0.0.40
codegen_flags: <defaults>
</compile_context>

<pallas_src>
import jax
import jax.numpy as jnp
from jax.experimental import pallas as pl
from jax.experimental.pallas import tpu as pltpu

LANES = 128


def _round_up(x, m):
    return (x + m - 1) // m * m


def _pick_img_blk(batch):
    # 8 images/step amortizes the ~0.35us per-grid-step overhead; keep grid >= 2 so
    # dimension_semantics=("parallel",) can shard the grid over v7x's 2 TensorCores.
    return max(1, min(8, batch // 2)) if batch > 1 else 1


# ---------------------------------------------------------------------------
# Fused Conv2d(k=5, s=1, p=2) + bias + ReLU + MaxPool2d(2) kernel
# ---------------------------------------------------------------------------
def _conv_pool_kernel(x_ref, w_ref, b_ref, o_ref):
    """Conv as 4 pool-phase GEMMs (taps folded into K) + max + bias + ReLU.

    x_ref: (IMG_BLK, 4, m, Kp) bf16 -- phase-im2col; row q = ho*wq + wo,
                                        col = (dh*5+dw)*cin + ci
    w_ref: (Kp, 128)           bf16 -- tap-major conv weight, out-channels zero-padded
    b_ref: (1, 128)            f32
    o_ref: (IMG_BLK, m, 128)   bf16 -- pooled activation, lane-dense
    """
    img_blk, _, m, kp = x_ref.shape
    w = w_ref[...]                                    # resident across the 4 dots
    pooled = None
    for phase in range(4):                            # 2x2 max-pool window phases
        lhs = x_ref[:, phase].reshape(img_blk * m, kp)
        acc = jnp.dot(lhs, w, preferred_element_type=jnp.float32)
        pooled = acc if pooled is None else jnp.maximum(pooled, acc)
    pooled = pooled.reshape(img_blk, m, LANES)
    # bias + ReLU commute with the max over the pool window.
    o_ref[...] = jnp.maximum(pooled + b_ref[...], 0.0).astype(o_ref.dtype)


def _phase_im2col(x_nhwc, ks, pad):
    """(B,H,W,Cin) -> (B, 4, hq*wq, ks*ks*Cin) bf16.

    For each 2x2 pool phase (r,p), row q = ho*wq + wo holds the flattened 5x5 patch
    (tap-major, cin-minor) feeding conv position (2*ho+r, 2*wo+p).  Cheap XLA glue:
    one pad + 25 contiguous slices + one transpose."""
    B, H, W, cin = x_nhwc.shape
    hq, wq = H // 2, W // 2
    xp = jnp.pad(x_nhwc.astype(jnp.bfloat16),
                 ((0, 0), (pad, pad), (pad, pad), (0, 0)))
    taps = []
    for dh in range(ks):
        for dw in range(ks):
            # tap (dh,dw) value at every conv position (h,w); h = 2*ho + r, w = 2*wo + p
            taps.append(xp[:, dh:dh + H, dw:dw + W, :].reshape(B, hq, 2, wq, 2, cin))
    t = jnp.stack(taps, axis=-2)                       # (B, hq, r, wq, p, 25, cin)
    t = jnp.transpose(t, (0, 2, 4, 1, 3, 5, 6))        # (B, r, p, hq, wq, 25, cin)
    return t.reshape(B, 4, hq * wq, ks * ks * cin), hq, wq


def conv5x5_relu_pool(x_nhwc, w, b):
    """x: (B,H,W,Cin), w: (Cout,Cin,5,5) PyTorch layout, b: (Cout,).
    Returns the raw lane-padded pooled activation (B, m, 128) bf16 (valid data in
    rows [0, hq*wq) and lanes [0, Cout)) plus (hq, wq, Cout)."""
    B = x_nhwc.shape[0]
    cout, cin, ks, _ = w.shape

    x4, hq, wq = _phase_im2col(x_nhwc, ks, pad=2)
    k_true = ks * ks * cin
    kp = _round_up(k_true, 8)                 # layer 1: 25 -> 32, layer 2: 400
    m = _round_up(hq * wq, 8)                 # only valid output pixels (+pad to 8)

    img_blk = _pick_img_blk(B)
    n_blocks = pl.cdiv(B, img_blk)
    bpad = n_blocks * img_blk
    x4 = jnp.pad(x4, ((0, bpad - B), (0, 0), (0, m - hq * wq), (0, kp - k_true)))

    # weights: (Cout,Cin,5,5) -> tap-major rows ((dh*5+dw)*cin + ci), zero-padded lanes
    wt = jnp.transpose(w, (2, 3, 1, 0)).reshape(k_true, cout)
    wt = jnp.pad(wt, ((0, kp - k_true), (0, LANES - cout))).astype(jnp.bfloat16)
    bt = jnp.pad(b, (0, LANES - cout)).reshape(1, LANES).astype(jnp.float32)

    out = pl.pallas_call(
        _conv_pool_kernel,
        out_shape=jax.ShapeDtypeStruct((bpad, m, LANES), jnp.bfloat16),
        grid=(n_blocks,),
        in_specs=[
            pl.BlockSpec((img_blk, 4, m, kp), lambda i: (i, 0, 0, 0)),
            pl.BlockSpec((kp, LANES), lambda i: (0, 0)),     # grid-invariant, resident
            pl.BlockSpec((1, LANES), lambda i: (0, 0)),
        ],
        out_specs=pl.BlockSpec((img_blk, m, LANES), lambda i: (i, 0, 0)),
        compiler_params=pltpu.CompilerParams(
            dimension_semantics=("parallel",)),
        cost_estimate=pl.CostEstimate(
            flops=2 * bpad * 4 * hq * wq * k_true * cout,    # true work, not lane-padded
            transcendentals=0,
            bytes_accessed=x4.size * 2 + wt.size * 2 + bpad * m * LANES * 2),
    )(x4, wt, bt)
    return out[:B], (hq, wq, cout)


# ---------------------------------------------------------------------------
# Linear (GEMM + bias), M-tiled, lane-padded output
# ---------------------------------------------------------------------------
def _linear_kernel(x_ref, w_ref, b_ref, o_ref):
    acc = jnp.dot(x_ref[...], w_ref[...], preferred_element_type=jnp.float32)
    o_ref[...] = acc + b_ref[...]


def linear(x, w, b):
    """x:(B,K) @ w:(K,N) + b -> (B,N) f32 (N lane-padded to 128 internally)."""
    B, K = x.shape
    N = w.shape[1]
    npad = _round_up(N, LANES)
    bp = _round_up(B, 8)
    tb = min(bp, 256)                          # big M tiles amortize per-step overhead
    xp = jnp.pad(x.astype(jnp.bfloat16), ((0, bp - B), (0, 0)))
    wp = jnp.pad(w, ((0, 0), (0, npad - N))).astype(jnp.bfloat16)
    bt = jnp.pad(b, (0, npad - N)).reshape(1, npad).astype(jnp.float32)
    out = pl.pallas_call(
        _linear_kernel,
        out_shape=jax.ShapeDtypeStruct((bp, npad), jnp.float32),
        grid=(pl.cdiv(bp, tb),),
        in_specs=[
            pl.BlockSpec((tb, K), lambda i: (i, 0)),
            pl.BlockSpec((K, npad), lambda i: (0, 0)),       # grid-invariant, resident
            pl.BlockSpec((1, npad), lambda i: (0, 0)),
        ],
        out_specs=pl.BlockSpec((tb, npad), lambda i: (i, 0)),
        compiler_params=pltpu.CompilerParams(dimension_semantics=("parallel",)),
        cost_estimate=pl.CostEstimate(
            flops=2 * bp * K * N, transcendentals=0,
            bytes_accessed=(bp * K + K * npad) * 2 + bp * npad * 4),
    )(xp, wp, bt)
    return out[:B, :N]


# ---------------------------------------------------------------------------
# Parameters and forward pass (matches the PyTorch CNN module)
# ---------------------------------------------------------------------------
def init_params(key):
    ks = jax.random.split(key, 6)

    def u(k, shape, fan_in):
        bound = 1.0 / (fan_in ** 0.5)
        return jax.random.uniform(k, shape, jnp.float32, -bound, bound)

    w1 = u(ks[0], (16, 1, 5, 5), 1 * 5 * 5)        # PyTorch conv weight (O, I, kh, kw)
    b1 = u(ks[1], (16,), 1 * 5 * 5)
    w2 = u(ks[2], (32, 16, 5, 5), 16 * 5 * 5)
    b2 = u(ks[3], (32,), 16 * 5 * 5)
    wf = u(ks[4], (10, 32 * 7 * 7), 32 * 7 * 7)    # PyTorch linear weight (out, in)
    bf = u(ks[5], (10,), 32 * 7 * 7)
    return (w1, b1, w2, b2, wf, bf)


def cnn_forward(x_nchw, params):
    w1, b1, w2, b2, wf, bf = params
    B, _, H, W = x_nchw.shape
    x = x_nchw.reshape(B, H, W, 1)                           # Cin == 1: NCHW -> NHWC free

    y1_raw, (h1, w1q, c1) = conv5x5_relu_pool(x, w1, b1)     # (B, m1, 128), valid 14x14x16
    y1 = y1_raw[:, :h1 * w1q, :c1].reshape(B, h1, w1q, c1)   # (B, 14, 14, 16)
    y2_raw, (h2, w2q, c2) = conv5x5_relu_pool(y1, w2, b2)    # (B, m2, 128), valid 7x7x32

    # fc: PyTorch flattens (c, h, w).  Instead of slicing / transposing the activation,
    # keep its lane-padded (q = h*w, c = lane) layout and scatter the fc weight into a
    # zero (m2*128, 10) matrix once at trace time; padded rows/lanes hit zero weights.
    m2 = y2_raw.shape[1]
    n_out = wf.shape[0]
    wf_qcn = jnp.transpose(wf.reshape(n_out, c2, h2 * w2q), (2, 1, 0))   # (q, c, n)
    wf_big = jnp.zeros((m2, LANES, n_out), jnp.float32)
    wf_big = wf_big.at[:h2 * w2q, :c2, :].set(wf_qcn).reshape(m2 * LANES, n_out)

    flat = y2_raw.reshape(B, m2 * LANES)                     # free reshape, no slice
    return linear(flat, wf_big, bf)                          # (B, 10) f32


# ---------------------------------------------------------------------------
# Pure-XLA reference (f32) for a sanity check
# ---------------------------------------------------------------------------
def cnn_reference(x_nchw, params):
    w1, b1, w2, b2, wf, bf = params
    x = jnp.transpose(x_nchw, (0, 2, 3, 1))

    def block(x, w, b):
        y = jax.lax.conv_general_dilated(
            x, jnp.transpose(w, (2, 3, 1, 0)), (1, 1), ((2, 2), (2, 2)),
            dimension_numbers=("NHWC", "HWIO", "NHWC"))
        y = jnp.maximum(y + b, 0.0)
        return jax.lax.reduce_window(y, -jnp.inf, jax.lax.max,
                                     (1, 2, 2, 1), (1, 2, 2, 1), "VALID")

    y = block(block(x, w1, b1), w2, b2)
    flat = jnp.transpose(y, (0, 3, 1, 2)).reshape(x.shape[0], -1)
    return flat @ wf.T + bf


# ---------------------------------------------------------------------------
if __name__ == "__main__":
    key = jax.random.PRNGKey(0)
    k_x, k_p = jax.random.split(key)
    x = jax.random.normal(k_x, (2, 1, 28, 28), dtype=jnp.float32)   # MNIST-like NCHW
    params = init_params(k_p)

    out = jax.jit(cnn_forward)(x, params)
    out = jax.block_until_ready(out)
    assert out.shape == (2, 10) and out.dtype == jnp.float32

    ref = cnn_reference(x, params)
    err = float(jnp.max(jnp.abs(out - ref)))
    assert err < 0.1, f"max abs err vs reference: {err}"
    print("KERNEL_OK")
</pallas_src>

<mosaic_0001>
module attributes {stable_mosaic.version = 11 : i64} {
  func.func @_conv_pool_kernel(%arg0: i32, %arg1: memref<1x4x200x32xbf16, #tpu.memory_space<vmem>>, %arg2: memref<32x128xbf16, #tpu.memory_space<vmem>>, %arg3: memref<1x128xf32, #tpu.memory_space<vmem>>, %arg4: memref<1x200x128xbf16, #tpu.memory_space<vmem>>) attributes {dimension_semantics = [#tpu.dimension_semantics<parallel>], iteration_bounds = array<i64: 2>, scalar_prefetch = 0 : i64, scratch_operands = 0 : i64, tpu.core_type = #tpu.core_type<tc>, window_params = [{transform_indices = @transform_0, window_bounds = array<i64: 1, 4, 200, 32>}, {pipeline_mode = #tpu.pipeline_mode<synchronous>, transform_indices = @transform_1, window_bounds = array<i64: 32, 128>}, {pipeline_mode = #tpu.pipeline_mode<synchronous>, transform_indices = @transform_2, window_bounds = array<i64: 1, 128>}, {transform_indices = @transform_3, window_bounds = array<i64: 1, 200, 128>}]} {
    %c0 = arith.constant 0 : index
    %c0_0 = arith.constant 0 : index
    %0 = vector.load %arg2[%c0, %c0_0] : memref<32x128xbf16, #tpu.memory_space<vmem>>, vector<32x128xbf16>
    %c0_1 = arith.constant 0 : index
    %c0_2 = arith.constant 0 : index
    %c0_3 = arith.constant 0 : index
    %c0_4 = arith.constant 0 : index
    %1 = vector.load %arg1[%c0_1, %c0_2, %c0_3, %c0_4] : memref<1x4x200x32xbf16, #tpu.memory_space<vmem>>, vector<1x1x200x32xbf16>
    %2 = vector.shape_cast %1 : vector<1x1x200x32xbf16> to vector<1x200x32xbf16>
    %3 = vector.shape_cast %2 : vector<1x200x32xbf16> to vector<200x32xbf16>
    %cst = arith.constant dense<0.000000e+00> : vector<200x128xf32>
    %4 = tpu.matmul %3, %0, %cst {dimension_numbers = #tpu.dot_dimension_numbers<[1], [0], [0], [1], [0, 0, 1, 1], [], []>} : vector<200x32xbf16>, vector<32x128xbf16>, vector<200x128xf32> -> vector<200x128xf32>
    %c0_5 = arith.constant 0 : index
    %c1 = arith.constant 1 : index
    %c0_6 = arith.constant 0 : index
    %c0_7 = arith.constant 0 : index
    %5 = vector.load %arg1[%c0_5, %c1, %c0_6, %c0_7] : memref<1x4x200x32xbf16, #tpu.memory_space<vmem>>, vector<1x1x200x32xbf16>
    %6 = vector.shape_cast %5 : vector<1x1x200x32xbf16> to vector<1x200x32xbf16>
    %7 = vector.shape_cast %6 : vector<1x200x32xbf16> to vector<200x32xbf16>
    %cst_8 = arith.constant dense<0.000000e+00> : vector<200x128xf32>
    %8 = tpu.matmul %7, %0, %cst_8 {dimension_numbers = #tpu.dot_dimension_numbers<[1], [0], [0], [1], [0, 0, 1, 1], [], []>} : vector<200x32xbf16>, vector<32x128xbf16>, vector<200x128xf32> -> vector<200x128xf32>
    %9 = arith.maximumf %4, %8 : vector<200x128xf32>
    %c0_9 = arith.constant 0 : index
    %c2 = arith.constant 2 : index
    %c0_10 = arith.constant 0 : index
    %c0_11 = arith.constant 0 : index
    %10 = vector.load %arg1[%c0_9, %c2, %c0_10, %c0_11] : memref<1x4x200x32xbf16, #tpu.memory_space<vmem>>, vector<1x1x200x32xbf16>
    %11 = vector.shape_cast %10 : vector<1x1x200x32xbf16> to vector<1x200x32xbf16>
    %12 = vector.shape_cast %11 : vector<1x200x32xbf16> to vector<200x32xbf16>
    %cst_12 = arith.constant dense<0.000000e+00> : vector<200x128xf32>
    %13 = tpu.matmul %12, %0, %cst_12 {dimension_numbers = #tpu.dot_dimension_numbers<[1], [0], [0], [1], [0, 0, 1, 1], [], []>} : vector<200x32xbf16>, vector<32x128xbf16>, vector<200x128xf32> -> vector<200x128xf32>
    %14 = arith.maximumf %9, %13 : vector<200x128xf32>
    %c0_13 = arith.constant 0 : index
    %c3 = arith.constant 3 : index
    %c0_14 = arith.constant 0 : index
    %c0_15 = arith.constant 0 : index
    %15 = vector.load %arg1[%c0_13, %c3, %c0_14, %c0_15] : memref<1x4x200x32xbf16, #tpu.memory_space<vmem>>, vector<1x1x200x32xbf16>
    %16 = vector.shape_cast %15 : vector<1x1x200x32xbf16> to vector<1x200x32xbf16>
    %17 = vector.shape_cast %16 : vector<1x200x32xbf16> to vector<200x32xbf16>
    %cst_16 = arith.constant dense<0.000000e+00> : vector<200x128xf32>
    %18 = tpu.matmul %17, %0, %cst_16 {dimension_numbers = #tpu.dot_dimension_numbers<[1], [0], [0], [1], [0, 0, 1, 1], [], []>} : vector<200x32xbf16>, vector<32x128xbf16>, vector<200x128xf32> -> vector<200x128xf32>
    %19 = arith.maximumf %14, %18 : vector<200x128xf32>
    %20 = vector.shape_cast %19 : vector<200x128xf32> to vector<1x200x128xf32>
    %c0_17 = arith.constant 0 : index
    %c0_18 = arith.constant 0 : index
    %21 = vector.load %arg3[%c0_17, %c0_18] : memref<1x128xf32, #tpu.memory_space<vmem>>, vector<1x128xf32>
    %22 = vector.shape_cast %21 : vector<1x128xf32> to vector<1x1x128xf32>
    %23 = vector.broadcast %22 : vector<1x1x128xf32> to vector<1x200x128xf32>
    %24 = arith.addf %20, %23 : vector<1x200x128xf32>
    %cst_19 = arith.constant 0.000000e+00 : f32
    %25 = vector.broadcast %cst_19 : f32 to vector<1x200x128xf32>
    %26 = arith.maximumf %24, %25 : vector<1x200x128xf32>
    %27 = arith.truncf %26 : vector<1x200x128xf32> to vector<1x200x128xbf16>
    %c0_20 = arith.constant 0 : index
    %c0_21 = arith.constant 0 : index
    %c0_22 = arith.constant 0 : index
    %28 = vector.load %arg4[%c0_20, %c0_21, %c0_22] : memref<1x200x128xbf16, #tpu.memory_space<vmem>>, vector<1x200x128xbf16>
    tpu.vector_store %arg4[%c0_20, %c0_21, %c0_22], %27 {strides = array<i32>} : memref<1x200x128xbf16, #tpu.memory_space<vmem>>, vector<1x200x128xbf16>,
    return
  }
  func.func @transform_0(%arg0: i32) -> (i32, i32, i32, i32) {
    %c0_i32 = arith.constant 0 : i32
    %c0_i32_0 = arith.constant 0 : i32
    %c0_i32_1 = arith.constant 0 : i32
    %c0_i32_2 = arith.constant 0 : i32
    return %arg0, %c0_i32, %c0_i32_0, %c0_i32_1 : i32, i32, i32, i32
  }
  func.func @transform_1(%arg0: i32) -> (i32, i32) {
    %c0_i32 = arith.constant 0 : i32
    %c0_i32_0 = arith.constant 0 : i32
    %c0_i32_1 = arith.constant 0 : i32
    return %c0_i32, %c0_i32_0 : i32, i32
  }
  func.func @transform_2(%arg0: i32) -> (i32, i32) {
    %c0_i32 = arith.constant 0 : i32
    %c0_i32_0 = arith.constant 0 : i32
    %c0_i32_1 = arith.constant 0 : i32
    return %c0_i32, %c0_i32_0 : i32, i32
  }
  func.func @transform_3(%arg0: i32) -> (i32, i32, i32) {
    %c0_i32 = arith.constant 0 : i32
    %c0_i32_0 = arith.constant 0 : i32
    %c0_i32_1 = arith.constant 0 : i32
    return %arg0, %c0_i32, %c0_i32_0 : i32, i32, i32
  }
}

module attributes {stable_mosaic.version = 11 : i64} {
  func.func @_conv_pool_kernel(%arg0: i32, %arg1: memref<1x4x56x400xbf16, #tpu.memory_space<vmem>>, %arg2: memref<400x128xbf16, #tpu.memory_space<vmem>>, %arg3: memref<1x128xf32, #tpu.memory_space<vmem>>, %arg4: memref<1x56x128xbf16, #tpu.memory_space<vmem>>) attributes {dimension_semantics = [#tpu.dimension_semantics<parallel>], iteration_bounds = array<i64: 2>, scalar_prefetch = 0 : i64, scratch_operands = 0 : i64, tpu.core_type = #tpu.core_type<tc>, window_params = [{transform_indices = @transform_0, window_bounds = array<i64: 1, 4, 56, 400>}, {pipeline_mode = #tpu.pipeline_mode<synchronous>, transform_indices = @transform_1, window_bounds = array<i64: 400, 128>}, {pipeline_mode = #tpu.pipeline_mode<synchronous>, transform_indices = @transform_2, window_bounds = array<i64: 1, 128>}, {transform_indices = @transform_3, window_bounds = array<i64: 1, 56, 128>}]} {
    %c0 = arith.constant 0 : index
    %c0_0 = arith.constant 0 : index
    %0 = vector.load %arg2[%c0, %c0_0] : memref<400x128xbf16, #tpu.memory_space<vmem>>, vector<400x128xbf16>
    %c0_1 = arith.constant 0 : index
    %c0_2 = arith.constant 0 : index
    %c0_3 = arith.constant 0 : index
    %c0_4 = arith.constant 0 : index
    %1 = vector.load %arg1[%c0_1, %c0_2, %c0_3, %c0_4] : memref<1x4x56x400xbf16, #tpu.memory_space<vmem>>, vector<1x1x56x400xbf16>
    %2 = vector.shape_cast %1 : vector<1x1x56x400xbf16> to vector<1x56x400xbf16>
    %3 = vector.shape_cast %2 : vector<1x56x400xbf16> to vector<56x400xbf16>
    %cst = arith.constant dense<0.000000e+00> : vector<56x128xf32>
    %4 = tpu.matmul %3, %0, %cst {dimension_numbers = #tpu.dot_dimension_numbers<[1], [0], [0], [1], [0, 0, 1, 1], [], []>} : vector<56x400xbf16>, vector<400x128xbf16>, vector<56x128xf32> -> vector<56x128xf32>
    %c0_5 = arith.constant 0 : index
    %c1 = arith.constant 1 : index
    %c0_6 = arith.constant 0 : index
    %c0_7 = arith.constant 0 : index
    %5 = vector.load %arg1[%c0_5, %c1, %c0_6, %c0_7] : memref<1x4x56x400xbf16, #tpu.memory_space<vmem>>, vector<1x1x56x400xbf16>
    %6 = vector.shape_cast %5 : vector<1x1x56x400xbf16> to vector<1x56x400xbf16>
    %7 = vector.shape_cast %6 : vector<1x56x400xbf16> to vector<56x400xbf16>
    %cst_8 = arith.constant dense<0.000000e+00> : vector<56x128xf32>
    %8 = tpu.matmul %7, %0, %cst_8 {dimension_numbers = #tpu.dot_dimension_numbers<[1], [0], [0], [1], [0, 0, 1, 1], [], []>} : vector<56x400xbf16>, vector<400x128xbf16>, vector<56x128xf32> -> vector<56x128xf32>
    %9 = arith.maximumf %4, %8 : vector<56x128xf32>
    %c0_9 = arith.constant 0 : index
    %c2 = arith.constant 2 : index
    %c0_10 = arith.constant 0 : index
    %c0_11 = arith.constant 0 : index
    %10 = vector.load %arg1[%c0_9, %c2, %c0_10, %c0_11] : memref<1x4x56x400xbf16, #tpu.memory_space<vmem>>, vector<1x1x56x400xbf16>
    %11 = vector.shape_cast %10 : vector<1x1x56x400xbf16> to vector<1x56x400xbf16>
    %12 = vector.shape_cast %11 : vector<1x56x400xbf16> to vector<56x400xbf16>
    %cst_12 = arith.constant dense<0.000000e+00> : vector<56x128xf32>
    %13 = tpu.matmul %12, %0, %cst_12 {dimension_numbers = #tpu.dot_dimension_numbers<[1], [0], [0], [1], [0, 0, 1, 1], [], []>} : vector<56x400xbf16>, vector<400x128xbf16>, vector<56x128xf32> -> vector<56x128xf32>
    %14 = arith.maximumf %9, %13 : vector<56x128xf32>
    %c0_13 = arith.constant 0 : index
    %c3 = arith.constant 3 : index
    %c0_14 = arith.constant 0 : index
    %c0_15 = arith.constant 0 : index
    %15 = vector.load %arg1[%c0_13, %c3, %c0_14, %c0_15] : memref<1x4x56x400xbf16, #tpu.memory_space<vmem>>, vector<1x1x56x400xbf16>
    %16 = vector.shape_cast %15 : vector<1x1x56x400xbf16> to vector<1x56x400xbf16>
    %17 = vector.shape_cast %16 : vector<1x56x400xbf16> to vector<56x400xbf16>
    %cst_16 = arith.constant dense<0.000000e+00> : vector<56x128xf32>
    %18 = tpu.matmul %17, %0, %cst_16 {dimension_numbers = #tpu.dot_dimension_numbers<[1], [0], [0], [1], [0, 0, 1, 1], [], []>} : vector<56x400xbf16>, vector<400x128xbf16>, vector<56x128xf32> -> vector<56x128xf32>
    %19 = arith.maximumf %14, %18 : vector<56x128xf32>
    %20 = vector.shape_cast %19 : vector<56x128xf32> to vector<1x56x128xf32>
    %c0_17 = arith.constant 0 : index
    %c0_18 = arith.constant 0 : index
    %21 = vector.load %arg3[%c0_17, %c0_18] : memref<1x128xf32, #tpu.memory_space<vmem>>, vector<1x128xf32>
    %22 = vector.shape_cast %21 : vector<1x128xf32> to vector<1x1x128xf32>
    %23 = vector.broadcast %22 : vector<1x1x128xf32> to vector<1x56x128xf32>
    %24 = arith.addf %20, %23 : vector<1x56x128xf32>
    %cst_19 = arith.constant 0.000000e+00 : f32
    %25 = vector.broadcast %cst_19 : f32 to vector<1x56x128xf32>
    %26 = arith.maximumf %24, %25 : vector<1x56x128xf32>
    %27 = arith.truncf %26 : vector<1x56x128xf32> to vector<1x56x128xbf16>
    %c0_20 = arith.constant 0 : index
    %c0_21 = arith.constant 0 : index
    %c0_22 = arith.constant 0 : index
    %28 = vector.load %arg4[%c0_20, %c0_21, %c0_22] : memref<1x56x128xbf16, #tpu.memory_space<vmem>>, vector<1x56x128xbf16>
    tpu.vector_store %arg4[%c0_20, %c0_21, %c0_22], %27 {strides = array<i32>} : memref<1x56x128xbf16, #tpu.memory_space<vmem>>, vector<1x56x128xbf16>,
    return
  }
  func.func @transform_0(%arg0: i32) -> (i32, i32, i32, i32) {
    %c0_i32 = arith.constant 0 : i32
    %c0_i32_0 = arith.constant 0 : i32
    %c0_i32_1 = arith.constant 0 : i32
    %c0_i32_2 = arith.constant 0 : i32
    return %arg0, %c0_i32, %c0_i32_0, %c0_i32_1 : i32, i32, i32, i32
  }
  func.func @transform_1(%arg0: i32) -> (i32, i32) {
    %c0_i32 = arith.constant 0 : i32
    %c0_i32_0 = arith.constant 0 : i32
    %c0_i32_1 = arith.constant 0 : i32
    return %c0_i32, %c0_i32_0 : i32, i32
  }
  func.func @transform_2(%arg0: i32) -> (i32, i32) {
    %c0_i32 = arith.constant 0 : i32
    %c0_i32_0 = arith.constant 0 : i32
    %c0_i32_1 = arith.constant 0 : i32
    return %c0_i32, %c0_i32_0 : i32, i32
  }
  func.func @transform_3(%arg0: i32) -> (i32, i32, i32) {
    %c0_i32 = arith.constant 0 : i32
    %c0_i32_0 = arith.constant 0 : i32
    %c0_i32_1 = arith.constant 0 : i32
    return %arg0, %c0_i32, %c0_i32_0 : i32, i32, i32
  }
}

module attributes {stable_mosaic.version = 11 : i64} {
  func.func @_linear_kernel(%arg0: i32, %arg1: memref<8x7168xbf16, #tpu.memory_space<vmem>>, %arg2: memref<7168x128xbf16, #tpu.memory_space<vmem>>, %arg3: memref<1x128xf32, #tpu.memory_space<vmem>>, %arg4: memref<8x128xf32, #tpu.memory_space<vmem>>) attributes {dimension_semantics = [#tpu.dimension_semantics<parallel>], iteration_bounds = array<i64: 1>, scalar_prefetch = 0 : i64, scratch_operands = 0 : i64, tpu.core_type = #tpu.core_type<tc>, window_params = [{transform_indices = @transform_0, window_bounds = array<i64: 8, 7168>}, {pipeline_mode = #tpu.pipeline_mode<synchronous>, transform_indices = @transform_1, window_bounds = array<i64: 7168, 128>}, {pipeline_mode = #tpu.pipeline_mode<synchronous>, transform_indices = @transform_2, window_bounds = array<i64: 1, 128>}, {transform_indices = @transform_3, window_bounds = array<i64: 8, 128>}]} {
    %c0 = arith.constant 0 : index
    %c0_0 = arith.constant 0 : index
    %0 = vector.load %arg1[%c0, %c0_0] : memref<8x7168xbf16, #tpu.memory_space<vmem>>, vector<8x7168xbf16>
    %c0_1 = arith.constant 0 : index
    %c0_2 = arith.constant 0 : index
    %1 = vector.load %arg2[%c0_1, %c0_2] : memref<7168x128xbf16, #tpu.memory_space<vmem>>, vector<7168x128xbf16>
    %cst = arith.constant dense<0.000000e+00> : vector<8x128xf32>
    %2 = tpu.matmul %0, %1, %cst {dimension_numbers = #tpu.dot_dimension_numbers<[1], [0], [0], [1], [0, 0, 1, 1], [], []>} : vector<8x7168xbf16>, vector<7168x128xbf16>, vector<8x128xf32> -> vector<8x128xf32>
    %c0_3 = arith.constant 0 : index
    %c0_4 = arith.constant 0 : index
    %3 = vector.load %arg3[%c0_3, %c0_4] : memref<1x128xf32, #tpu.memory_space<vmem>>, vector<1x128xf32>
    %4 = vector.broadcast %3 : vector<1x128xf32> to vector<8x128xf32>
    %5 = arith.addf %2, %4 : vector<8x128xf32>
    %c0_5 = arith.constant 0 : index
    %c0_6 = arith.constant 0 : index
    %6 = vector.load %arg4[%c0_5, %c0_6] : memref<8x128xf32, #tpu.memory_space<vmem>>, vector<8x128xf32>
    tpu.vector_store %arg4[%c0_5, %c0_6], %5 {strides = array<i32>} : memref<8x128xf32, #tpu.memory_space<vmem>>, vector<8x128xf32>,
    return
  }
  func.func @transform_0(%arg0: i32) -> (i32, i32) {
    %c0_i32 = arith.constant 0 : i32
    %c0_i32_0 = arith.constant 0 : i32
    return %arg0, %c0_i32 : i32, i32
  }
  func.func @transform_1(%arg0: i32) -> (i32, i32) {
    %c0_i32 = arith.constant 0 : i32
    %c0_i32_0 = arith.constant 0 : i32
    %c0_i32_1 = arith.constant 0 : i32
    return %c0_i32, %c0_i32_0 : i32, i32
  }
  func.func @transform_2(%arg0: i32) -> (i32, i32) {
    %c0_i32 = arith.constant 0 : i32
    %c0_i32_0 = arith.constant 0 : i32
    %c0_i32_1 = arith.constant 0 : i32
    return %c0_i32, %c0_i32_0 : i32, i32
  }
  func.func @transform_3(%arg0: i32) -> (i32, i32) {
    %c0_i32 = arith.constant 0 : i32
    %c0_i32_0 = arith.constant 0 : i32
    return %arg0, %c0_i32 : i32, i32
  }
}

</mosaic_0001>

<bundles_post_ra>
// kernel: cnn_forward.3
= control target key start
LH: loop header
LB: loop body
LE: loop exit
PB: predicated region body
PF: predicated region fallthrough
CT: control target
= control target key end

     0   :  { %s1722_s12 = smov 0   ;;  %s1900_s0 = inlined_call_operand.vmem [shape: bf16[2,4,200,32], index: 0, kind: input, shape index: {}]   ;;  %s1901_s1 = inlined_call_operand.vmem [shape: bf16[32,128], index: 1, kind: input, shape index: {}]   ;;  %s1902_s2 = inlined_call_operand.vmem [shape: f32[1,128], index: 2, kind: input, shape index: {}]   ;;  %s1903_s3 = inlined_call_operand.vmem [shape: bf16[2,200,128], index: 3, kind: output, shape index: {}]  }
   0x1 LB: > { %s1226_s13 = sadd.s32 4294967295, %s1700_s12   ;;  %p1230_p0 = scmp.ge.s32.totalorder %s1700_s12, 1  ;;  %s1700_s12 = sphi %s1722_s12, %s13_s12  }
   0x2   : > { %p137_p1 = scmp.lt.s32.totalorder %s1700_s12, 3 }
   0x4   : > { %p138_p2 = pnand %p1230_p0, %p137_p1 }
   0x5   : > { %p161_p3 = scmp.lt.s32.totalorder (!%p138_p2), %s1226_s13, 1 }
   0x6   : > { %141 = sbr.rel (%p138_p2) target bundleno = 355 (0x163), region = 32 }
   0xb   : > { %v1563_v0 = vld [vmem:[%s1901_s1 + $0x8] sm:$0xff]  ;;  %v1562_v1 = vld [vmem:[%s1901_s1] sm:$0xff]  ;;  %s1905_s13 = smov (!%p161_p3, %s1226_s13), 1  ;;  %vm276_vm0 = vcmask 261120  }
   0xc   : > { %322 = vmatpush.bf16.msra.mxu0 %v1563_v0  ;;  %523 = vmatpush.bf16.msra.mxu1 %v1563_v0  ;;  %s1683_s18 = smul.u32 400, %s1905_s13  ;;  %v1819_v47 = vld [vmem:[%s1902_s2] ss:$0 sm:$0xff] }
   0xd   : > { %749 = vmatpush.bf16.msra.mxu2 %v1563_v0  ;;  %975 = vmatpush.bf16.msra.mxu3 %v1563_v0  ;;  %s1684_s24 = smul.u32 100, %s1905_s13 }
   0xe   : > { %s1742_s21 = scalar_lea.vmem %s1900_s0, %s1683_s18 }
   0xf   : > { %v1564_v2 = vld [vmem:[%s1742_s21] sm:$0xff]  ;;  %v1588_v4 = vld [vmem:[%s1742_s21 + $0xc8] sm:$0xff]  ;;  %v1589_v8 = vld [vmem:[%s1742_s21 + $0xd0] sm:$0xff]  ;;  %s1835_s27 = scalar_lea.vmem %s1903_s3, %s1684_s24 }
  0x10   : > { %323 = vmatpush.bf16.msra.mxu0 %v1562_v1  ;;  %524 = vmatpush.bf16.msra.mxu1 %v1562_v1  ;;  %v1576_v3 = vld [vmem:[%s1742_s21 + $0x64] sm:$0xff]  ;;  %v1600_v5 = vld [vmem:[%s1742_s21 + $0x12c] sm:$0xff]  ;;  %v1601_v9 = vld [vmem:[%s1742_s21 + $0x134] sm:$0xff] }
  0x11   : > { %750 = vmatpush.bf16.msra.mxu2 %v1562_v1  ;;  %976 = vmatpush.bf16.msra.mxu3 %v1562_v1  ;;  %v1565_v6 = vld [vmem:[%s1742_s21 + $0x8] sm:$0xff]  ;;  %v1566_v10 = vld [vmem:[%s1742_s21 + $0x10] sm:$0xff]  ;;  %v1590_v12 = vld [vmem:[%s1742_s21 + $0xd8] sm:$0xff] }
  0x12   : > { %v1577_v7 = vld [vmem:[%s1742_s21 + $0x6c] sm:$0xff]  ;;  %v1578_v11 = vld [vmem:[%s1742_s21 + $0x74] sm:$0xff]  ;;  %v1602_v13 = vld [vmem:[%s1742_s21 + $0x13c] sm:$0xff] }
  0x13   : > { %1289 = vmatmul.msk.bf16.vlgmr.msra.gmra.mxu0 %vm276_vm0, %v1564_v2  ;;  %1375 = vmatmul.msk.bf16.vlgmr.msra.gmra.mxu1 %vm276_vm0, %v1576_v3  ;;  %v1567_v14 = vld [vmem:[%s1742_s21 + $0x18] sm:$0xff]  ;;  %v1591_v16 = vld [vmem:[%s1742_s21 + $0xe0] sm:$0xff]  ;;  %v1592_v20 = vld [vmem:[%s1742_s21 + $0xe8] sm:$0xff] }
  0x14   : > { %1461 = vmatmul.msk.bf16.vlgmr.msra.gmra.mxu2 %vm276_vm0, %v1588_v4  ;;  %1547 = vmatmul.msk.bf16.vlgmr.msra.gmra.mxu3 %vm276_vm0, %v1600_v5  ;;  %v1579_v15 = vld [vmem:[%s1742_s21 + $0x7c] sm:$0xff]  ;;  %v1603_v17 = vld [vmem:[%s1742_s21 + $0x144] sm:$0xff]  ;;  %v1604_v21 = vld [vmem:[%s1742_s21 + $0x14c] sm:$0xff] }
  0x15   : > { %v1568_v18 = vld [vmem:[%s1742_s21 + $0x20] sm:$0xff]  ;;  %v1569_v22 = vld [vmem:[%s1742_s21 + $0x28] sm:$0xff]  ;;  %v1593_v24 = vld [vmem:[%s1742_s21 + $0xf0] sm:$0xff] }
  0x16   : > { %v1580_v19 = vld [vmem:[%s1742_s21 + $0x84] sm:$0xff]  ;;  %v1581_v23 = vld [vmem:[%s1742_s21 + $0x8c] sm:$0xff]  ;;  %v1605_v25 = vld [vmem:[%s1742_s21 + $0x154] sm:$0xff] }
  0x17   : > { %v1570_v26 = vld [vmem:[%s1742_s21 + $0x30] sm:$0xff]  ;;  %v1594_v28 = vld [vmem:[%s1742_s21 + $0xf8] sm:$0xff]  ;;  %v1595_v32 = vld [vmem:[%s1742_s21 + $0x100] sm:$0xff] }
  0x18   : > { %v1582_v27 = vld [vmem:[%s1742_s21 + $0x94] sm:$0xff]  ;;  %v1606_v29 = vld [vmem:[%s1742_s21 + $0x15c] sm:$0xff]  ;;  %v1607_v33 = vld [vmem:[%s1742_s21 + $0x164] sm:$0xff] }
  0x19   : > { %v1571_v30 = vld [vmem:[%s1742_s21 + $0x38] sm:$0xff]  ;;  %v1572_v34 = vld [vmem:[%s1742_s21 + $0x40] sm:$0xff]  ;;  %v1596_v38 = vld [vmem:[%s1742_s21 + $0x108] sm:$0xff] }
  0x1a   : > { %v1583_v31 = vld [vmem:[%s1742_s21 + $0x9c] sm:$0xff]  ;;  %v1584_v35 = vld [vmem:[%s1742_s21 + $0xa4] sm:$0xff]  ;;  %v1608_v39 = vld [vmem:[%s1742_s21 + $0x16c] sm:$0xff] }
  0x1b   : > { %v1573_v51 = vld [vmem:[%s1742_s21 + $0x48] sm:$0xff]  ;;  %v1597_v56 = vld [vmem:[%s1742_s21 + $0x110] sm:$0xff] }
  0x1c   : > { %v1585_v52 = vld [vmem:[%s1742_s21 + $0xac] sm:$0xff]  ;;  %v1609_v57 = vld [vmem:[%s1742_s21 + $0x174] sm:$0xff] }
  0x23   : > { %1290 = vmatmul.msk.bf16.gmra.mxu0 %vm276_vm0, %v1565_v6  ;;  %1376 = vmatmul.msk.bf16.gmra.mxu1 %vm276_vm0, %v1577_v7 }
  0x24   : > { %1462 = vmatmul.msk.bf16.gmra.mxu2 %vm276_vm0, %v1589_v8  ;;  %1548 = vmatmul.msk.bf16.gmra.mxu3 %vm276_vm0, %v1601_v9 }
  0x33   : > { %1291 = vmatmul.msk.bf16.gmra.mxu0 %vm276_vm0, %v1566_v10  ;;  %1377 = vmatmul.msk.bf16.gmra.mxu1 %vm276_vm0, %v1578_v11  ;;  %v1574_v10 = vld [vmem:[%s1742_s21 + $0x50] sm:$0xff] }
  0x34   : > { %1463 = vmatmul.msk.bf16.gmra.mxu2 %vm276_vm0, %v1590_v12  ;;  %1549 = vmatmul.msk.bf16.gmra.mxu3 %vm276_vm0, %v1602_v13  ;;  %v1586_v11 = vld [vmem:[%s1742_s21 + $0xb4] sm:$0xff] }
  0x43   : > { %1292 = vmatmul.msk.bf16.gmra.mxu0 %vm276_vm0, %v1567_v14  ;;  %1378 = vmatmul.msk.bf16.gmra.mxu1 %vm276_vm0, %v1579_v15  ;;  %v1598_v15 = vld [vmem:[%s1742_s21 + $0x118] sm:$0xff] }
  0x44   : > { %1464 = vmatmul.msk.bf16.gmra.mxu2 %vm276_vm0, %v1591_v16  ;;  %1550 = vmatmul.msk.bf16.gmra.mxu3 %vm276_vm0, %v1603_v17  ;;  %v1610_v16 = vld [vmem:[%s1742_s21 + $0x17c] sm:$0xff] }
  0x53   : > { %1293 = vmatmul.msk.bf16.gmra.mxu0 %vm276_vm0, %v1568_v18  ;;  %1379 = vmatmul.msk.bf16.gmra.mxu1 %vm276_vm0, %v1580_v19 }
  0x54   : > { %1465 = vmatmul.msk.bf16.gmra.mxu2 %vm276_vm0, %v1592_v20  ;;  %1551 = vmatmul.msk.bf16.gmra.mxu3 %vm276_vm0, %v1604_v21 }
  0x63   : > { %1294 = vmatmul.msk.bf16.gmra.mxu0 %vm276_vm0, %v1569_v22  ;;  %1380 = vmatmul.msk.bf16.gmra.mxu1 %vm276_vm0, %v1581_v23 }
  0x64   : > { %1466 = vmatmul.msk.bf16.gmra.mxu2 %vm276_vm0, %v1593_v24  ;;  %1552 = vmatmul.msk.bf16.gmra.mxu3 %vm276_vm0, %v1605_v25 }
  0x73   : > { %1295 = vmatmul.msk.bf16.gmra.mxu0 %vm276_vm0, %v1570_v26  ;;  %1381 = vmatmul.msk.bf16.gmra.mxu1 %vm276_vm0, %v1582_v27 }
  0x74   : > { %1467 = vmatmul.msk.bf16.gmra.mxu2 %vm276_vm0, %v1594_v28  ;;  %1553 = vmatmul.msk.bf16.gmra.mxu3 %vm276_vm0, %v1606_v29 }
  0x83   : > { %1296 = vmatmul.msk.bf16.gmra.mxu0 %vm276_vm0, %v1571_v30  ;;  %1382 = vmatmul.msk.bf16.gmra.mxu1 %vm276_vm0, %v1583_v31 }
  0x84   : > { %1468 = vmatmul.msk.bf16.gmra.mxu2 %vm276_vm0, %v1595_v32  ;;  %1554 = vmatmul.msk.bf16.gmra.mxu3 %vm276_vm0, %v1607_v33  ;;  %v1575_v33 = vld [vmem:[%s1742_s21 + $0x58] sm:$0xff] }
  0x90   : > { %v325_v36 = vpop.f32.mrf.mxu0  ;;  %v526_v37 = vpop.f32.mrf.mxu1 }
  0x91   : > { %v590_v40 = vmax.f32 %v325_v36, %v526_v37 }
  0x93   : > { %1297 = vmatmul.msk.bf16.gmra.mxu0 %vm276_vm0, %v1572_v34  ;;  %1383 = vmatmul.msk.bf16.gmra.mxu1 %vm276_vm0, %v1584_v35  ;;  %v1587_v34 = vld [vmem:[%s1742_s21 + $0xbc] sm:$0xff] }
  0x94   : > { %1469 = vmatmul.msk.bf16.gmra.mxu2 %vm276_vm0, %v1596_v38  ;;  %1555 = vmatmul.msk.bf16.gmra.mxu3 %vm276_vm0, %v1608_v39  ;;  %v1599_v38 = vld [vmem:[%s1742_s21 + $0x120] sm:$0xff] }
  0x95   : > { %v1611_v39 = vld [vmem:[%s1742_s21 + $0x184] sm:$0xff] }
  0x97   : > { %v752_v41 = vpop.f32.mrf.mxu2  ;;  %v978_v42 = vpop.f32.mrf.mxu3 }
  0x98   : > { %v327_v43 = vpop.f32.mrf.mxu0  ;;  %v528_v44 = vpop.f32.mrf.mxu1  ;;  %v816_v45 = vmax.f32 %v590_v40, %v752_v41 }
  0x99   : > { %v591_v48 = vmax.f32 %v327_v43, %v528_v44 }
  0x9a   : > { %v1042_v46 = vmax.f32 %v816_v45, %v978_v42 }
  0x9c   : > { %v1071_v58 = vadd.f32 %v1819_v47, %v1042_v46 }
  0x9e   : > { %v1096_v61 = vmax.f32 %v1071_v58, 0.0 }
  0x9f   : > { %v754_v49 = vpop.f32.mrf.mxu2  ;;  %v980_v50 = vpop.f32.mrf.mxu3 }
  0xa0   : > { %v817_v53 = vmax.f32 %v591_v48, %v754_v49  ;;  %v330_v54 = vpop.f32.mrf.mxu0  ;;  %v531_v55 = vpop.f32.mrf.mxu1 }
  0xa1   : > { %v592_v63 = vmax.f32 %v330_v54, %v531_v55  ;;  %v1412_v54 = vld [vmem:[%s1742_s21 + $0x128] sm:$0xf]  ;;  %v1498_v55 = vld [vmem:[%s1742_s21 + $0x18c] sm:$0xf] }
  0xa2   : > { %v1043_v59 = vmax.f32 %v817_v53, %v980_v50  ;;  %v1326_v53 = vld [vmem:[%s1742_s21 + $0xc4] sm:$0xf] }
  0xa3   : > { %1298 = vmatmul.msk.bf16.gmra.mxu0 %vm276_vm0, %v1573_v51  ;;  %1384 = vmatmul.msk.bf16.gmra.mxu1 %vm276_vm0, %v1585_v52  ;;  %v200_v52 = vld [vmem:[%s1742_s21 + $0x60] sm:$0xf]  ;;  %v464_v58 = vunpack.c.l.b16 %v1326_v53 }
  0xa4   : > { %v1072_v60 = vadd.f32 %v1819_v47, %v1043_v59  ;;  %1470 = vmatmul.msk.bf16.gmra.mxu2 %vm276_vm0, %v1597_v56  ;;  %1556 = vmatmul.msk.bf16.gmra.mxu3 %vm276_vm0, %v1609_v57  ;;  %v250_v57 = vunpack.c.l.b16 %v200_v52  ;;  %v690_v59 = vunpack.c.l.b16 %v1412_v54 }
  0xa6   : > { %v1097_v62 = vmax.f32 %v1072_v60, 0.0  ;;  %v916_v60 = vunpack.c.l.b16 %v1498_v55 }
  0xa7   : > { %v757_v0 = vpop.f32.mrf.mxu2  ;;  %v983_v1 = vpop.f32.mrf.mxu3 }
  0xa8   : > { %v1615_v2 = vpack.c.bf16 %v1097_v62, %v1096_v61  ;;  %v332_v3 = vpop.f32.mrf.mxu0  ;;  %v533_v4 = vpop.f32.mrf.mxu1  ;;  %v818_v5 = vmax.f32 %v592_v63, %v757_v0 }
  0xa9   : > { %v593_v7 = vmax.f32 %v332_v3, %v533_v4 }
  0xaa   : > { %1616 = vst [vmem:[%s1835_s27] sm:$0xff] %v1615_v2   ;;  %v1044_v6 = vmax.f32 %v818_v5, %v983_v1  ;;  %v263_v1 = vpack.c.b16 %v250_v57, %v250_v57  ;;  %v477_v2 = vpack.c.b16 %v464_v58, %v464_v58 }
  0xac   : > { %v1073_v17 = vadd.f32 %v1819_v47, %v1044_v6  ;;  %v703_v6 = vpack.c.b16 %v690_v59, %v690_v59 }
  0xae   : > { %v1098_v20 = vmax.f32 %v1073_v17, 0.0 }
  0xaf   : > { %v759_v8 = vpop.f32.mrf.mxu2  ;;  %v985_v9 = vpop.f32.mrf.mxu3 }
  0xb0   : > { %v819_v12 = vmax.f32 %v593_v7, %v759_v8  ;;  %v335_v13 = vpop.f32.mrf.mxu0  ;;  %v536_v14 = vpop.f32.mrf.mxu1  ;;  %v929_v7 = vpack.c.b16 %v916_v60, %v916_v60 }
  0xb1   : > { %v594_v22 = vmax.f32 %v335_v13, %v536_v14 }
  0xb2   : > { %v1045_v18 = vmax.f32 %v819_v12, %v985_v9 }
  0xb3   : > { %1299 = vmatmul.msk.bf16.gmra.mxu0 %vm276_vm0, %v1574_v10  ;;  %1385 = vmatmul.msk.bf16.gmra.mxu1 %vm276_vm0, %v1586_v11 }
  0xb4   : > { %v1074_v19 = vadd.f32 %v1819_v47, %v1045_v18  ;;  %1471 = vmatmul.msk.bf16.gmra.mxu2 %vm276_vm0, %v1598_v15  ;;  %1557 = vmatmul.msk.bf16.gmra.mxu3 %vm276_vm0, %v1610_v16 }
  0xb6   : > { %v1099_v21 = vmax.f32 %v1074_v19, 0.0 }
  0xb7   : > { %v762_v23 = vpop.f32.mrf.mxu2  ;;  %v988_v24 = vpop.f32.mrf.mxu3 }
  0xb8   : > { %v1620_v25 = vpack.c.bf16 %v1099_v21, %v1098_v20  ;;  %v337_v26 = vpop.f32.mrf.mxu0  ;;  %v538_v27 = vpop.f32.mrf.mxu1  ;;  %v820_v28 = vmax.f32 %v594_v22, %v762_v23 }
  0xb9   : > { %v595_v30 = vmax.f32 %v337_v26, %v538_v27 }
  0xba   : > { %1672 = vst [vmem:[%s1835_s27 + $0x8] sm:$0xff] %v1620_v25   ;;  %v1046_v29 = vmax.f32 %v820_v28, %v988_v24 }
  0xbc   : > { %v1075_v40 = vadd.f32 %v1819_v47, %v1046_v29 }
  0xbe   : > { %v1100_v43 = vmax.f32 %v1075_v40, 0.0 }
  0xbf   : > { %v764_v31 = vpop.f32.mrf.mxu2  ;;  %v990_v32 = vpop.f32.mrf.mxu3 }
  0xc0   : > { %v821_v35 = vmax.f32 %v595_v30, %v764_v31  ;;  %v340_v36 = vpop.f32.mrf.mxu0  ;;  %v541_v37 = vpop.f32.mrf.mxu1 }
  0xc1   : > { %v596_v45 = vmax.f32 %v340_v36, %v541_v37 }
  0xc2   : > { %v1047_v41 = vmax.f32 %v821_v35, %v990_v32 }
  0xc3   : > { %1300 = vmatmul.msk.bf16.gmra.mxu0 %vm276_vm0, %v1575_v33  ;;  %1386 = vmatmul.msk.bf16.gmra.mxu1 %vm276_vm0, %v1587_v34 }
  0xc4   : > { %v1076_v42 = vadd.f32 %v1819_v47, %v1047_v41  ;;  %1472 = vmatmul.msk.bf16.gmra.mxu2 %vm276_vm0, %v1599_v38  ;;  %1558 = vmatmul.msk.bf16.gmra.mxu3 %vm276_vm0, %v1611_v39 }
  0xc6   : > { %v1101_v44 = vmax.f32 %v1076_v42, 0.0 }
  0xc7   : > { %v767_v46 = vpop.f32.mrf.mxu2  ;;  %v993_v48 = vpop.f32.mrf.mxu3 }
  0xc8   : > { %v1625_v49 = vpack.c.bf16 %v1101_v44, %v1100_v43  ;;  %v342_v50 = vpop.f32.mrf.mxu0  ;;  %v543_v51 = vpop.f32.mrf.mxu1  ;;  %v822_v56 = vmax.f32 %v596_v45, %v767_v46 }
  0xc9   : > { %v597_v62 = vmax.f32 %v342_v50, %v543_v51 }
  0xca   : > { %1673 = vst [vmem:[%s1835_s27 + $0x10] sm:$0xff] %v1625_v49   ;;  %v1048_v61 = vmax.f32 %v822_v56, %v993_v48 }
  0xcc   : > { %v1077_v8 = vadd.f32 %v1819_v47, %v1048_v61 }
  0xce   : > { %v1102_v11 = vmax.f32 %v1077_v8, 0.0 }
  0xcf   : > { %v769_v63 = vpop.f32.mrf.mxu2  ;;  %v995_v0 = vpop.f32.mrf.mxu3 }
  0xd0   : > { %v823_v3 = vmax.f32 %v597_v62, %v769_v63  ;;  %v345_v4 = vpop.f32.mrf.mxu0  ;;  %v546_v5 = vpop.f32.mrf.mxu1 }
  0xd1   : > { %v598_v13 = vmax.f32 %v345_v4, %v546_v5 }
  0xd2   : > { %v1049_v9 = vmax.f32 %v823_v3, %v995_v0 }
  0xd3   : > { %1301 = vmatmul.msk.bf16.gmra.mxu0 %vm276_vm0, %v263_v1  ;;  %1387 = vmatmul.msk.bf16.gmra.mxu1 %vm276_vm0, %v477_v2 }
  0xd4   : > { %v1078_v10 = vadd.f32 %v1819_v47, %v1049_v9  ;;  %1473 = vmatmul.msk.bf16.gmra.mxu2 %vm276_vm0, %v703_v6  ;;  %1559 = vmatmul.msk.bf16.gmra.mxu3 %vm276_vm0, %v929_v7 }
  0xd6   : > { %v1103_v12 = vmax.f32 %v1078_v10, 0.0 }
  0xd7   : > { %v772_v14 = vpop.f32.mrf.mxu2  ;;  %v998_v15 = vpop.f32.mrf.mxu3 }
  0xd8   : > { %v1630_v16 = vpack.c.bf16 %v1103_v12, %v1102_v11  ;;  %v347_v17 = vpop.f32.mrf.mxu0  ;;  %v548_v18 = vpop.f32.mrf.mxu1  ;;  %v824_v19 = vmax.f32 %v598_v13, %v772_v14 }
  0xd9   : > { %v599_v21 = vmax.f32 %v347_v17, %v548_v18 }
  0xda   : > { %1674 = vst [vmem:[%s1835_s27 + $0x18] sm:$0xff] %v1630_v16   ;;  %v1050_v20 = vmax.f32 %v824_v19, %v998_v15 }
  0xdc   : > { %v1079_v27 = vadd.f32 %v1819_v47, %v1050_v20 }
  0xde   : > { %v1104_v30 = vmax.f32 %v1079_v27, 0.0 }
  0xdf   : > { %v774_v22 = vpop.f32.mrf.mxu2  ;;  %v1000_v23 = vpop.f32.mrf.mxu3 }
  0xe0   : > { %v825_v24 = vmax.f32 %v599_v21, %v774_v22  ;;  %v350_v25 = vpop.f32.mrf.mxu0  ;;  %v551_v26 = vpop.f32.mrf.mxu1 }
  0xe1   : > { %v600_v32 = vmax.f32 %v350_v25, %v551_v26 }
  0xe2   : > { %v1051_v28 = vmax.f32 %v825_v24, %v1000_v23 }
  0xe4   : > { %v1080_v29 = vadd.f32 %v1819_v47, %v1051_v28 }
  0xe6   : > { %v1105_v31 = vmax.f32 %v1080_v29, 0.0 }
  0xe7   : > { %v777_v33 = vpop.f32.mrf.mxu2  ;;  %v1003_v34 = vpop.f32.mrf.mxu3 }
  0xe8   : > { %v1635_v35 = vpack.c.bf16 %v1105_v31, %v1104_v30  ;;  %v352_v36 = vpop.f32.mrf.mxu0  ;;  %v553_v37 = vpop.f32.mrf.mxu1  ;;  %v826_v38 = vmax.f32 %v600_v32, %v777_v33 }
  0xe9   : > { %v601_v40 = vmax.f32 %v352_v36, %v553_v37 }
  0xea   : > { %1675 = vst [vmem:[%s1835_s27 + $0x20] sm:$0xff] %v1635_v35   ;;  %v1052_v39 = vmax.f32 %v826_v38, %v1003_v34 }
  0xec   : > { %v1081_v46 = vadd.f32 %v1819_v47, %v1052_v39 }
  0xee   : > { %v1106_v50 = vmax.f32 %v1081_v46, 0.0 }
  0xef   : > { %v779_v41 = vpop.f32.mrf.mxu2  ;;  %v1005_v42 = vpop.f32.mrf.mxu3 }
  0xf0   : > { %v827_v43 = vmax.f32 %v601_v40, %v779_v41  ;;  %v355_v44 = vpop.f32.mrf.mxu0  ;;  %v556_v45 = vpop.f32.mrf.mxu1 }
  0xf1   : > { %v602_v52 = vmax.f32 %v355_v44, %v556_v45 }
  0xf2   : > { %v1053_v48 = vmax.f32 %v827_v43, %v1005_v42 }
  0xf4   : > { %v1082_v49 = vadd.f32 %v1819_v47, %v1053_v48 }
  0xf6   : > { %v1107_v51 = vmax.f32 %v1082_v49, 0.0 }
  0xf7   : > { %v782_v53 = vpop.f32.mrf.mxu2  ;;  %v1008_v54 = vpop.f32.mrf.mxu3 }
  0xf8   : > { %v1640_v55 = vpack.c.bf16 %v1107_v51, %v1106_v50  ;;  %v357_v56 = vpop.f32.mrf.mxu0  ;;  %v558_v57 = vpop.f32.mrf.mxu1  ;;  %v828_v58 = vmax.f32 %v602_v52, %v782_v53 }
  0xf9   : > { %v603_v60 = vmax.f32 %v357_v56, %v558_v57 }
  0xfa   : > { %1676 = vst [vmem:[%s1835_s27 + $0x28] sm:$0xff] %v1640_v55   ;;  %v1054_v59 = vmax.f32 %v828_v58, %v1008_v54 }
  0xfc   : > { %v1083_v2 = vadd.f32 %v1819_v47, %v1054_v59 }
  0xfe   : > { %v1108_v5 = vmax.f32 %v1083_v2, 0.0 }
  0xff   : > { %v784_v61 = vpop.f32.mrf.mxu2  ;;  %v1010_v62 = vpop.f32.mrf.mxu3 }
 0x100   : > { %v829_v63 = vmax.f32 %v603_v60, %v784_v61  ;;  %v360_v0 = vpop.f32.mrf.mxu0  ;;  %v561_v1 = vpop.f32.mrf.mxu1 }
 0x101   : > { %v604_v7 = vmax.f32 %v360_v0, %v561_v1 }
 0x102   : > { %v1055_v3 = vmax.f32 %v829_v63, %v1010_v62 }
 0x104   : > { %v1084_v4 = vadd.f32 %v1819_v47, %v1055_v3 }
 0x106   : > { %v1109_v6 = vmax.f32 %v1084_v4, 0.0 }
 0x107   : > { %v787_v8 = vpop.f32.mrf.mxu2  ;;  %v1013_v9 = vpop.f32.mrf.mxu3 }
 0x108   : > { %v1645_v10 = vpack.c.bf16 %v1109_v6, %v1108_v5  ;;  %v362_v11 = vpop.f32.mrf.mxu0  ;;  %v563_v12 = vpop.f32.mrf.mxu1  ;;  %v830_v13 = vmax.f32 %v604_v7, %v787_v8 }
 0x109   : > { %v605_v15 = vmax.f32 %v362_v11, %v563_v12 }
 0x10a   : > { %1677 = vst [vmem:[%s1835_s27 + $0x30] sm:$0xff] %v1645_v10   ;;  %v1056_v14 = vmax.f32 %v830_v13, %v1013_v9 }
 0x10c   : > { %v1085_v21 = vadd.f32 %v1819_v47, %v1056_v14 }
 0x10e   : > { %v1110_v24 = vmax.f32 %v1085_v21, 0.0 }
 0x10f   : > { %v789_v16 = vpop.f32.mrf.mxu2  ;;  %v1015_v17 = vpop.f32.mrf.mxu3 }
 0x110   : > { %v831_v18 = vmax.f32 %v605_v15, %v789_v16  ;;  %v365_v19 = vpop.f32.mrf.mxu0  ;;  %v566_v20 = vpop.f32.mrf.mxu1 }
 0x111   : > { %v606_v26 = vmax.f32 %v365_v19, %v566_v20 }
 0x112   : > { %v1057_v22 = vmax.f32 %v831_v18, %v1015_v17 }
 0x114   : > { %v1086_v23 = vadd.f32 %v1819_v47, %v1057_v22 }
 0x116   : > { %v1111_v25 = vmax.f32 %v1086_v23, 0.0 }
 0x117   : > { %v792_v27 = vpop.f32.mrf.mxu2  ;;  %v1018_v28 = vpop.f32.mrf.mxu3 }
 0x118   : > { %v1650_v29 = vpack.c.bf16 %v1111_v25, %v1110_v24  ;;  %v367_v30 = vpop.f32.mrf.mxu0  ;;  %v568_v31 = vpop.f32.mrf.mxu1  ;;  %v832_v32 = vmax.f32 %v606_v26, %v792_v27 }
 0x119   : > { %v607_v34 = vmax.f32 %v367_v30, %v568_v31 }
 0x11a   : > { %1678 = vst [vmem:[%s1835_s27 + $0x38] sm:$0xff] %v1650_v29   ;;  %v1058_v33 = vmax.f32 %v832_v32, %v1018_v28 }
 0x11c   : > { %v1087_v40 = vadd.f32 %v1819_v47, %v1058_v33 }
 0x11e   : > { %v1112_v43 = vmax.f32 %v1087_v40, 0.0 }
 0x11f   : > { %v794_v35 = vpop.f32.mrf.mxu2  ;;  %v1020_v36 = vpop.f32.mrf.mxu3 }
 0x120   : > { %v833_v37 = vmax.f32 %v607_v34, %v794_v35  ;;  %v370_v38 = vpop.f32.mrf.mxu0  ;;  %v571_v39 = vpop.f32.mrf.mxu1 }
 0x121   : > { %v608_v45 = vmax.f32 %v370_v38, %v571_v39 }
 0x122   : > { %v1059_v41 = vmax.f32 %v833_v37, %v1020_v36 }
 0x124   : > { %v1088_v42 = vadd.f32 %v1819_v47, %v1059_v41 }
 0x126   : > { %v1113_v44 = vmax.f32 %v1088_v42, 0.0 }
 0x127   : > { %v797_v46 = vpop.f32.mrf.mxu2  ;;  %v1023_v48 = vpop.f32.mrf.mxu3 }
 0x128   : > { %v1655_v49 = vpack.c.bf16 %v1113_v44, %v1112_v43  ;;  %v372_v50 = vpop.f32.mrf.mxu0  ;;  %v573_v51 = vpop.f32.mrf.mxu1  ;;  %v834_v52 = vmax.f32 %v608_v45, %v797_v46 }
 0x129   : > { %v609_v54 = vmax.f32 %v372_v50, %v573_v51 }
 0x12a   : > { %1679 = vst [vmem:[%s1835_s27 + $0x40] sm:$0xff] %v1655_v49   ;;  %v1060_v53 = vmax.f32 %v834_v52, %v1023_v48 }
 0x12c   : > { %v1089_v60 = vadd.f32 %v1819_v47, %v1060_v53 }
 0x12e   : > { %v1114_v63 = vmax.f32 %v1089_v60, 0.0 }
 0x12f   : > { %v799_v55 = vpop.f32.mrf.mxu2  ;;  %v1025_v56 = vpop.f32.mrf.mxu3 }
 0x130   : > { %v835_v57 = vmax.f32 %v609_v54, %v799_v55  ;;  %v375_v58 = vpop.f32.mrf.mxu0  ;;  %v576_v59 = vpop.f32.mrf.mxu1 }
 0x131   : > { %v610_v1 = vmax.f32 %v375_v58, %v576_v59 }
 0x132   : > { %v1061_v61 = vmax.f32 %v835_v57, %v1025_v56 }
 0x134   : > { %v1090_v62 = vadd.f32 %v1819_v47, %v1061_v61 }
 0x136   : > { %v1115_v0 = vmax.f32 %v1090_v62, 0.0 }
 0x137   : > { %v802_v2 = vpop.f32.mrf.mxu2  ;;  %v1028_v3 = vpop.f32.mrf.mxu3 }
 0x138   : > { %v1660_v4 = vpack.c.bf16 %v1115_v0, %v1114_v63  ;;  %v377_v5 = vpop.f32.mrf.mxu0  ;;  %v578_v6 = vpop.f32.mrf.mxu1  ;;  %v836_v7 = vmax.f32 %v610_v1, %v802_v2 }
 0x139   : > { %v611_v9 = vmax.f32 %v377_v5, %v578_v6 }
 0x13a   : > { %1680 = vst [vmem:[%s1835_s27 + $0x48] sm:$0xff] %v1660_v4   ;;  %v1062_v8 = vmax.f32 %v836_v7, %v1028_v3 }
 0x13c   : > { %v1091_v15 = vadd.f32 %v1819_v47, %v1062_v8 }
 0x13e   : > { %v1116_v18 = vmax.f32 %v1091_v15, 0.0 }
 0x13f   : > { %v804_v10 = vpop.f32.mrf.mxu2  ;;  %v1030_v11 = vpop.f32.mrf.mxu3 }
 0x140   : > { %v837_v12 = vmax.f32 %v611_v9, %v804_v10  ;;  %v380_v13 = vpop.f32.mrf.mxu0  ;;  %v581_v14 = vpop.f32.mrf.mxu1 }
 0x141   : > { %v612_v20 = vmax.f32 %v380_v13, %v581_v14 }
 0x142   : > { %v1063_v16 = vmax.f32 %v837_v12, %v1030_v11 }
 0x144   : > { %v1092_v17 = vadd.f32 %v1819_v47, %v1063_v16 }
 0x146   : > { %v1117_v19 = vmax.f32 %v1092_v17, 0.0 }
 0x147   : > { %v807_v21 = vpop.f32.mrf.mxu2  ;;  %v1033_v22 = vpop.f32.mrf.mxu3 }
 0x148   : > { %v1665_v23 = vpack.c.bf16 %v1117_v19, %v1116_v18  ;;  %v382_v24 = vpop.f32.mrf.mxu0  ;;  %v583_v25 = vpop.f32.mrf.mxu1  ;;  %v838_v26 = vmax.f32 %v612_v20, %v807_v21 }
 0x149   : > { %v613_v28 = vmax.f32 %v382_v24, %v583_v25 }
 0x14a   : > { %1681 = vst [vmem:[%s1835_s27 + $0x50] sm:$0xff] %v1665_v23   ;;  %v1064_v27 = vmax.f32 %v838_v26, %v1033_v22 }
 0x14c   : > { %v1093_v34 = vadd.f32 %v1819_v47, %v1064_v27 }
 0x14e   : > { %v1118_v38 = vmax.f32 %v1093_v34, 0.0 }
 0x14f   : > { %v809_v29 = vpop.f32.mrf.mxu2  ;;  %v1035_v30 = vpop.f32.mrf.mxu3 }
 0x150   : > { %v839_v31 = vmax.f32 %v613_v28, %v809_v29  ;;  %v385_v32 = vpop.f32.mrf.mxu0  ;;  %v586_v33 = vpop.f32.mrf.mxu1 }
 0x151   : > { %v614_v37 = vmax.f32 %v385_v32, %v586_v33 }
 0x152   : > { %v1065_v35 = vmax.f32 %v839_v31, %v1035_v30 }
 0x154   : > { %v1094_v36 = vadd.f32 %v1819_v47, %v1065_v35 }
 0x156   : > { %v1119_v39 = vmax.f32 %v1094_v36, 0.0 }
 0x157   : > { %v812_v40 = vpop.f32.mrf.mxu2  ;;  %v1038_v41 = vpop.f32.mrf.mxu3 }
 0x158   : > { %v1670_v42 = vpack.c.bf16 %v1119_v39, %v1118_v38  ;;  %v840_v43 = vmax.f32 %v614_v37, %v812_v40  ;;  %v387_v44 = vpop.f32.mrf.mxu0  ;;  %v588_v45 = vpop.f32.mrf.mxu1 }
 0x15a   : > { %1682 = vst [vmem:[%s1835_s27 + $0x58] sm:$0xff] %v1670_v42   ;;  %v1066_v46 = vmax.f32 %v840_v43, %v1038_v41 }
 0x15c   : > { %v1095_v48 = vadd.f32 %v1819_v47, %v1066_v46 }
 0x15e   : > { %v1120_v49 = vmax.f32 %v1095_v48, 0.0 }
 0x15f   : > { %v814_v50 = vpop.f32.mrf.mxu2  ;;  %v1040_v51 = vpop.f32.mrf.mxu3 }
 0x160   : > { %v1145_v52 = vpack.c.bf16 %v1120_v49, %v1120_v49 }
 0x162   : > { %1170 = vst [vmem:[%s1835_s27 + $0x60] sm:$0xf] %v1145_v52 }
 0x163 PF: > { %s13_s12 = sadd.s32 1, %s1700_s12  }
 0x164   : > { %p10_p4 = scmp.ge.s32.totalorder %s13_s12, 4  }
 0x166   :  { %12 = sbr.rel (!%p10_p4) target bundleno = 1 (0x1), region = 65 }

// kernel: cnn_forward.4
= control target key start
LH: loop header
LB: loop body
LE: loop exit
PB: predicated region body
PF: predicated region fallthrough
CT: control target
= control target key end

     0   :  { %s1804_s12 = smov 0   ;;  %s2271_s0 = inlined_call_operand.vmem [shape: bf16[2,4,56,400], index: 0, kind: input, shape index: {}]   ;;  %s2272_s1 = inlined_call_operand.vmem [shape: bf16[400,128], index: 1, kind: input, shape index: {}]   ;;  %s2273_s2 = inlined_call_operand.vmem [shape: f32[1,128], index: 2, kind: input, shape index: {}]   ;;  %s2274_s3 = inlined_call_operand.vmem [shape: bf16[2,56,128], index: 3, kind: output, shape index: {}]  }
   0x1 LB: > { %s1316_s13 = sadd.s32 4294967295, %s1782_s12   ;;  %p1320_p0 = scmp.ge.s32.totalorder %s1782_s12, 1  ;;  %s1782_s12 = sphi %s1804_s12, %s13_s12  }
   0x2   : > { %p137_p1 = scmp.lt.s32.totalorder %s1782_s12, 3 }
   0x4   : > { %p138_p2 = pnand %p1320_p0, %p137_p1 }
   0x5   : > { %p161_p3 = scmp.lt.s32.totalorder (!%p138_p2), %s1316_s13, 1 }
   0x6   : > { %141 = sbr.rel (%p138_p2) target bundleno = 428 (0x1ac), region = 32 }
   0xb   : > { %v1815_v0 = vld [vmem:[%s2272_s1 + $0x38] sm:$0xff]  ;;  %v1832_v3 = vld [vmem:[%s2272_s1 + $0x30] sm:$0xff]  ;;  %s2276_s13 = smov (!%p161_p3, %s1316_s13), 1  ;;  %v1851_v6 = vld [vmem:[%s2272_s1 + $0xc0] sm:$0xff]  ;;  %vm456_vm0 = vcmask 130048  }
   0xc   : > { %v1820_v1 = vld [vmem:[%s2272_s1 + $0x78] sm:$0xff]  ;;  %469 = vmatpush.bf16.msra.mxu0 %v1815_v0  ;;  %v1837_v4 = vld [vmem:[%s2272_s1 + $0x70] sm:$0xff]  ;;  %s1765_s26 = smul.u32 448, %s2276_s13  ;;  %v1858_v7 = vld [vmem:[%s2272_s1 + $0x28] sm:$0xff]  ;;  %560 = vmatpush.bf16.msra.mxu3 %v1851_v6 }
   0xd   : > { %v1825_v2 = vld [vmem:[%s2272_s1 + $0xb8] sm:$0xff]  ;;  %497 = vmatpush.bf16.msra.mxu1 %v1820_v1  ;;  %v1845_v5 = vld [vmem:[%s2272_s1 + $0xb0] sm:$0xff]  ;;  %v1863_v8 = vld [vmem:[%s2272_s1 + $0x68] sm:$0xff]  ;;  %s1766_s20 = smul.u32 28, %s2276_s13 }
   0xe   : > { %525 = vmatpush.bf16.msra.mxu2 %v1825_v2  ;;  %s1868_s8 = scalar_lea.vmem %s2271_s0, %s1765_s26  ;;  %v1874_v9 = vld [vmem:[%s2272_s1 + $0xa8] sm:$0xff]  ;;  %v1885_v13 = vld [vmem:[%s2272_s1 + $0x20] sm:$0xff]  ;;  %v1905_v16 = vld [vmem:[%s2272_s1 + $0x18] sm:$0xff] }
   0xf   : > { %v1701_v10 = vld [vmem:[%s1868_s8 + $0xc] sm:$0xf]  ;;  %v1335_v11 = vld [vmem:[%s1868_s8 + $0x18] sm:$0xf0]  ;;  %v1890_v14 = vld [vmem:[%s2272_s1 + $0x60] sm:$0xff]  ;;  %s2252_s23 = scalar_lea.vmem %s2274_s3, %s1766_s20 }
  0x10   : > { %470 = vmatpush.bf16.msra.mxu0 %v1832_v3  ;;  %v1338_v12 = vor.u32 %v1701_v10, %v1335_v11  ;;  %678 = vmatpush.bf16.msrb.mxu3 %v1815_v0  ;;  %v1896_v15 = vld [vmem:[%s2272_s1 + $0xa0] sm:$0xff]  ;;  %v1910_v17 = vld [vmem:[%s2272_s1 + $0x58] sm:$0xff]  ;;  %v1924_v19 = vld [vmem:[%s2272_s1 + $0x10] sm:$0xff] }
  0x11   : > { %498 = vmatpush.bf16.msra.mxu1 %v1837_v4  ;;  %v1916_v18 = vld [vmem:[%s2272_s1 + $0x98] sm:$0xff]  ;;  %v1929_v20 = vld [vmem:[%s2272_s1 + $0x50] sm:$0xff]  ;;  %v1705_v22 = vld [vmem:[%s1868_s8 + $0x2c] sm:$0xf] }
  0x12   : > { %526 = vmatpush.bf16.msra.mxu2 %v1845_v5  ;;  %1471 = vmatmul.msk.bf16.vlgmr.msra.gmra.mxu3 %vm456_vm0, %v1338_v12  ;;  %v1935_v21 = vld [vmem:[%s2272_s1 + $0x90] sm:$0xff]  ;;  %v1351_v23 = vld [vmem:[%s1868_s8 + $0x38] sm:$0xf0]  ;;  %v1945_v24 = vld [vmem:[%s2272_s1 + $0x8] sm:$0xff] }
  0x13   : > { %v1950_v25 = vld [vmem:[%s2272_s1 + $0x48] sm:$0xff]  ;;  %v1354_v27 = vor.u32 %v1705_v22, %v1351_v23  ;;  %v1962_v28 = vld [vmem:[%s2272_s1] sm:$0xff]  ;;  %v1702_v31 = vld [vmem:[%s1868_s8 + $0xc] sm:$0xf0] }
  0x14   : > { %471 = vmatpush.bf16.msra.mxu0 %v1858_v7  ;;  %679 = vmatpush.bf16.msrb.mxu3 %v1832_v3  ;;  %v1956_v26 = vld [vmem:[%s2272_s1 + $0x88] sm:$0xff]  ;;  %v1967_v29 = vld [vmem:[%s2272_s1 + $0x40] sm:$0xff]  ;;  %v1327_v33 = vld [vmem:[%s1868_s8 + $0x10] sm:$0xf0] }
  0x15   : > { %499 = vmatpush.bf16.msra.mxu1 %v1863_v8  ;;  %v1325_v30 = vld [vmem:[%s1868_s8] sm:$0xf]  ;;  %v1700_v32 = vld [vmem:[%s1868_s8 + $0x4] sm:$0xf]  ;;  %v1333_v35 = vld [vmem:[%s1868_s8 + $0x8] sm:$0xf] }
  0x16   : > { %527 = vmatpush.bf16.msra.mxu2 %v1874_v9  ;;  %v1979_v34 = vld [vmem:[%s2272_s1 + $0x80] sm:$0xff]  ;;  %v1703_v36 = vld [vmem:[%s1868_s8 + $0x14] sm:$0xf0]  ;;  %v1326_v37 = vor.u32 %v1702_v31, %v1325_v30  ;;  %v1330_v38 = vor.u32 %v1700_v32, %v1327_v33  ;;  %v1709_v40 = vld [vmem:[%s1868_s8 + $0x4c] sm:$0xf] }
  0x17   : > { %v1334_v39 = vor.u32 %v1703_v36, %v1333_v35  ;;  %v1367_v41 = vld [vmem:[%s1868_s8 + $0x58] sm:$0xf0]  ;;  %v1341_v43 = vld [vmem:[%s1868_s8 + $0x20] sm:$0xf]  ;;  %v1706_v44 = vld [vmem:[%s1868_s8 + $0x2c] sm:$0xf0] }
  0x18   : > { %472 = vmatpush.bf16.msra.mxu0 %v1885_v13  ;;  %680 = vmatpush.bf16.msrb.mxu3 %v1858_v7  ;;  %v1370_v42 = vor.u32 %v1709_v40, %v1367_v41  ;;  %v1704_v45 = vld [vmem:[%s1868_s8 + $0x24] sm:$0xf]  ;;  %v1343_v46 = vld [vmem:[%s1868_s8 + $0x30] sm:$0xf0]  ;;  %v1349_v47 = vld [vmem:[%s1868_s8 + $0x28] sm:$0xf]  ;;  %v1342_v49 = vor.u32 %v1706_v44, %v1341_v43 }
  0x19   : > { %500 = vmatpush.bf16.msra.mxu1 %v1890_v14  ;;  %v1707_v48 = vld [vmem:[%s1868_s8 + $0x34] sm:$0xf0]  ;;  %v1346_v50 = vor.u32 %v1704_v45, %v1343_v46  ;;  %v235_v52 = vld [vmem:[%s1868_s8 + $0x68] sm:$0xff]  ;;  %v1357_v55 = vld [vmem:[%s1868_s8 + $0x40] sm:$0xf] }
  0x1a   : > { %528 = vmatpush.bf16.msra.mxu2 %v1896_v15  ;;  %v1350_v51 = vor.u32 %v1707_v48, %v1349_v47  ;;  %v277_v53 = vunpack.c.h.b16 %v235_v52  ;;  %v1710_v56 = vld [vmem:[%s1868_s8 + $0x4c] sm:$0xf0]  ;;  %v1708_v57 = vld [vmem:[%s1868_s8 + $0x44] sm:$0xf]  ;;  %v1359_v58 = vld [vmem:[%s1868_s8 + $0x50] sm:$0xf0]  ;;  %v276_v30 = vunpack.c.l.b16 %v235_v52 }
  0x1b   : > { %v1365_v59 = vld [vmem:[%s1868_s8 + $0x48] sm:$0xf]  ;;  %v1711_v60 = vld [vmem:[%s1868_s8 + $0x54] sm:$0xf0]  ;;  %v1358_v61 = vor.u32 %v1710_v56, %v1357_v55  ;;  %v1362_v62 = vor.u32 %v1708_v57, %v1359_v58  ;;  %v1491_v10 = vld [vmem:[%s1868_s8 + $0x70] sm:$0xf] }
  0x1c   : > { %473 = vmatpush.bf16.msra.mxu0 %v1905_v16  ;;  %681 = vmatpush.bf16.msrb.mxu3 %v1885_v13  ;;  %v293_v54 = vpack.c.b16 %v277_v53, %v277_v53  ;;  %v1366_v63 = vor.u32 %v1711_v60, %v1365_v59  ;;  %v1714_v11 = vld [vmem:[%s1868_s8 + $0x7c] sm:$0xf0]  ;;  %v292_v33 = vpack.c.b16 %v276_v30, %v276_v30  ;;  %v1713_v40 = vld [vmem:[%s1868_s8 + $0x7c] sm:$0xf]  ;;  %v1501_v41 = vld [vmem:[%s1868_s8 + $0x88] sm:$0xf0] }
  0x1d   : > { %501 = vmatpush.bf16.msra.mxu1 %v1910_v17  ;;  %v234_v12 = vld [vmem:[%s1868_s8 + $0x60] sm:$0xff]  ;;  %v1492_v22 = vor.u32 %v1714_v11, %v1491_v10  ;;  %v1504_v43 = vor.u32 %v1713_v40, %v1501_v41  ;;  %v1716_v44 = vld [vmem:[%s1868_s8 + $0x94] sm:$0xf]  ;;  %v1719_v46 = vld [vmem:[%s1868_s8 + $0xa4] sm:$0xf0] }
  0x1e   : > { %529 = vmatpush.bf16.msra.mxu2 %v1916_v18  ;;  %v274_v23 = vunpack.c.l.b16 %v234_v12  ;;  %v1718_v35 = vld [vmem:[%s1868_s8 + $0x9c] sm:$0xf0]  ;;  %v1509_v45 = vld [vmem:[%s1868_s8 + $0xa0] sm:$0xf0]  ;;  %v1723_v48 = vld [vmem:[%s1868_s8 + $0xc4] sm:$0xf0] }
  0x1f   : > { %v1525_v47 = vld [vmem:[%s1868_s8 + $0xc0] sm:$0xf0]  ;;  %v1573_v57 = vld [vmem:[%s1868_s8 + $0x100] sm:$0xf]  ;;  %v1730_v58 = vld [vmem:[%s1868_s8 + $0x10c] sm:$0xf0] }
  0x20   : > { %474 = vmatpush.bf16.msra.mxu0 %v1924_v19  ;;  %682 = vmatpush.bf16.msrb.mxu3 %v1905_v16  ;;  %v290_v31 = vpack.c.b16 %v274_v23, %v274_v23  ;;  %v1574_v60 = vor.u32 %v1730_v58, %v1573_v57  ;;  %v1727_v10 = vld [vmem:[%s1868_s8 + $0xf4] sm:$0xf0]  ;;  %v1725_v11 = vld [vmem:[%s1868_s8 + $0xec] sm:$0xf] }
  0x21   : > { %502 = vmatpush.bf16.msra.mxu1 %v1929_v20 }
  0x22   : > { %530 = vmatpush.bf16.msra.mxu2 %v1935_v21  ;;  %1472 = vmatmul.msk.bf16.gmra.mxu3 %vm456_vm0, %v1354_v27  ;;  %v275_v27 = vunpack.c.h.b16 %v234_v12  ;;  %v1567_v12 = vld [vmem:[%s1868_s8 + $0xf8] sm:$0xf0] }
  0x24   : > { %475 = vmatpush.bf16.msra.mxu0 %v1945_v24  ;;  %683 = vmatpush.bf16.msrb.mxu3 %v1924_v19  ;;  %v291_v32 = vpack.c.b16 %v275_v27, %v275_v27 }
  0x25   : > { %503 = vmatpush.bf16.msra.mxu1 %v1950_v25 }
  0x26   : > { %531 = vmatpush.bf16.msra.mxu2 %v1956_v26 }
  0x28   : > { %476 = vmatpush.bf16.msra.mxu0 %v1962_v28  ;;  %684 = vmatpush.bf16.msrb.mxu3 %v1945_v24 }
  0x29   : > { %504 = vmatpush.bf16.msra.mxu1 %v1967_v29 }
  0x2a   : > { %532 = vmatpush.bf16.msra.mxu2 %v1979_v34 }
  0x2b   : > { %477 = vmatmul.bf16.vlgmr.msra.gmra.mxu0 %v1326_v37  ;;  %v1493_v37 = vld [vmem:[%s1868_s8 + $0x80] sm:$0xf0] }
  0x2c   : > { %706 = vmatpush.bf16.msrb.mxu0 %v1820_v1  ;;  %505 = vmatmul.bf16.vlgmr.msra.gmra.mxu1 %v1330_v38  ;;  %v1499_v38 = vld [vmem:[%s1868_s8 + $0x78] sm:$0xf] }
  0x2d   : > { %734 = vmatpush.bf16.msrb.mxu1 %v1825_v2  ;;  %533 = vmatmul.bf16.vlgmr.msra.gmra.mxu2 %v1334_v39  ;;  %v1715_v39 = vld [vmem:[%s1868_s8 + $0x84] sm:$0xf0] }
  0x2e   : > { %769 = vmatpush.bf16.msrb.mxu2 %v1851_v6  ;;  %685 = vmatpush.bf16.msrb.mxu3 %v1962_v28 }
  0x30   : > { %707 = vmatpush.bf16.msrb.mxu0 %v1837_v4 }
  0x31   : > { %735 = vmatpush.bf16.msrb.mxu1 %v1845_v5 }
  0x32   : > { %985 = vmatpush.bf16.msra.mxu2 %v1851_v6  ;;  %894 = vmatpush.bf16.msra.mxu3 %v1815_v0 }
  0x33   : > { %1473 = vmatmul.msk.bf16.gmra.mxu3 %vm456_vm0, %v1370_v42  ;;  %v1500_v42 = vor.u32 %v1715_v39, %v1499_v38 }
  0x34   : > { %708 = vmatpush.bf16.msrb.mxu0 %v1863_v8 }
  0x35   : > { %736 = vmatpush.bf16.msrb.mxu1 %v1874_v9 }
  0x36   : > { %895 = vmatpush.bf16.msra.mxu3 %v1832_v3 }
  0x38   : > { %709 = vmatpush.bf16.msrb.mxu0 %v1890_v14 }
  0x39   : > { %737 = vmatpush.bf16.msrb.mxu1 %v1896_v15 }
  0x3a   : > { %896 = vmatpush.bf16.msra.mxu3 %v1858_v7 }
  0x3b   : > { %482 = vmatmul.bf16.gmra.mxu0 %v1342_v49  ;;  %v1721_v49 = vld [vmem:[%s1868_s8 + $0xbc] sm:$0xf] }
  0x3c   : > { %710 = vmatpush.bf16.msrb.mxu0 %v1910_v17  ;;  %510 = vmatmul.bf16.gmra.mxu1 %v1346_v50  ;;  %v1533_v50 = vld [vmem:[%s1868_s8 + $0xc8] sm:$0xf0] }
  0x3d   : > { %738 = vmatpush.bf16.msrb.mxu1 %v1916_v18  ;;  %538 = vmatmul.bf16.gmra.mxu2 %v1350_v51  ;;  %v1488_v51 = vld [vmem:[%s1868_s8 + $0xd8] sm:$0xff] }
  0x3e   : > { %897 = vmatpush.bf16.msra.mxu3 %v1885_v13 }
  0x40   : > { %711 = vmatpush.bf16.msrb.mxu0 %v1929_v20 }
  0x41   : > { %739 = vmatpush.bf16.msrb.mxu1 %v1935_v21 }
  0x42   : > { %898 = vmatpush.bf16.msra.mxu3 %v1905_v16 }
  0x43   : > { %1474 = vmatmul.msk.bf16.gmra.mxu3 %vm456_vm0, %v293_v54  ;;  %v637_v54 = vunpack.c.h.b16 %v1488_v51 }
  0x44   : > { %712 = vmatpush.bf16.msrb.mxu0 %v1950_v25 }
  0x45   : > { %740 = vmatpush.bf16.msrb.mxu1 %v1956_v26  ;;  %v653_v55 = vpack.c.b16 %v637_v54, %v637_v54 }
  0x46   : > { %899 = vmatpush.bf16.msra.mxu3 %v1924_v19 }
  0x48   : > { %713 = vmatpush.bf16.msrb.mxu0 %v1967_v29 }
  0x49   : > { %741 = vmatpush.bf16.msrb.mxu1 %v1979_v34 }
  0x4a   : > { %900 = vmatpush.bf16.msra.mxu3 %v1945_v24 }
  0x4b   : > { %487 = vmatmul.bf16.gmra.mxu0 %v1358_v61  ;;  %v1724_v61 = vld [vmem:[%s1868_s8 + $0xe4] sm:$0xf] }
  0x4c   : > { %922 = vmatpush.bf16.msra.mxu0 %v1820_v1  ;;  %515 = vmatmul.bf16.gmra.mxu1 %v1362_v62  ;;  %v1559_v62 = vld [vmem:[%s1868_s8 + $0xf0] sm:$0xf0] }
  0x4d   : > { %950 = vmatpush.bf16.msra.mxu1 %v1825_v2  ;;  %543 = vmatmul.bf16.gmra.mxu2 %v1366_v63  ;;  %v1565_v63 = vld [vmem:[%s1868_s8 + $0xe8] sm:$0xf] }
  0x4e   : > { %901 = vmatpush.bf16.msra.mxu3 %v1962_v28  ;;  %v1566_v23 = vor.u32 %v1727_v10, %v1565_v63  ;;  %v1738_v63 = vld [vmem:[%s1868_s8 + $0x15c] sm:$0xf0] }
  0x50   : > { %923 = vmatpush.bf16.msra.mxu0 %v1837_v4 }
  0x51   : > { %951 = vmatpush.bf16.msra.mxu1 %v1845_v5 }
  0x53   : > { %686 = vmatmul.bf16.vlgmr.msrb.gmra.mxu3 %v1492_v22  ;;  %v1562_v22 = vor.u32 %v1724_v61, %v1559_v62  ;;  %v1623_v62 = vld [vmem:[%s1868_s8 + $0x150] sm:$0xf] }
  0x54   : > { %924 = vmatpush.bf16.msra.mxu0 %v1863_v8  ;;  %1110 = vmatpush.bf16.msrb.mxu3 %v1815_v0  ;;  %v1507_v0 = vld [vmem:[%s1868_s8 + $0x90] sm:$0xf] }
  0x55   : > { %952 = vmatpush.bf16.msra.mxu1 %v1874_v9  ;;  %v1508_v36 = vor.u32 %v1718_v35, %v1507_v0  ;;  %v1589_v0 = vld [vmem:[%s1868_s8 + $0x120] sm:$0xf]  ;;  %v1734_v35 = vld [vmem:[%s1868_s8 + $0x12c] sm:$0xf0] }
  0x56   : > { %v1590_v41 = vor.u32 %v1734_v35, %v1589_v0 }
  0x58   : > { %925 = vmatpush.bf16.msra.mxu0 %v1890_v14  ;;  %1111 = vmatpush.bf16.msrb.mxu3 %v1832_v3  ;;  %v1712_v3 = vld [vmem:[%s1868_s8 + $0x74] sm:$0xf] }
  0x59   : > { %953 = vmatpush.bf16.msra.mxu1 %v1896_v15 }
  0x5b   : > { %492 = vmatmul.bf16.gmra.mxu0 %v290_v31  ;;  %v1570_v31 = vor.u32 %v1725_v11, %v1567_v12 }
  0x5c   : > { %926 = vmatpush.bf16.msra.mxu0 %v1910_v17  ;;  %520 = vmatmul.bf16.gmra.mxu1 %v291_v32 }
  0x5d   : > { %954 = vmatpush.bf16.msra.mxu1 %v1916_v18  ;;  %548 = vmatmul.bf16.gmra.mxu2 %v292_v33 }
  0x5e   : > { %1112 = vmatpush.bf16.msrb.mxu3 %v1858_v7  ;;  %v1496_v7 = vor.u32 %v1712_v3, %v1493_v37 }
  0x60   : > { %927 = vmatpush.bf16.msra.mxu0 %v1929_v20 }
  0x61   : > { %955 = vmatpush.bf16.msra.mxu1 %v1935_v21 }
  0x62   : > { %1113 = vmatpush.bf16.msrb.mxu3 %v1885_v13  ;;  %v1523_v13 = vld [vmem:[%s1868_s8 + $0xb0] sm:$0xf] }
  0x63   : > { %691 = vmatmul.bf16.gmra.mxu3 %v1508_v36 }
  0x64   : > { %928 = vmatpush.bf16.msra.mxu0 %v1950_v25 }
  0x65   : > { %956 = vmatpush.bf16.msra.mxu1 %v1956_v26 }
  0x66   : > { %1114 = vmatpush.bf16.msrb.mxu3 %v1905_v16  ;;  %v1722_v16 = vld [vmem:[%s1868_s8 + $0xbc] sm:$0xf0] }
  0x68   : > { %929 = vmatpush.bf16.msra.mxu0 %v1967_v29 }
  0x69   : > { %957 = vmatpush.bf16.msra.mxu1 %v1979_v34 }
  0x6a   : > { %1115 = vmatpush.bf16.msrb.mxu3 %v1924_v19  ;;  %v1524_v19 = vor.u32 %v1722_v16, %v1523_v13  ;;  %v1581_v13 = vld [vmem:[%s1868_s8 + $0x108] sm:$0xf]  ;;  %v1731_v16 = vld [vmem:[%s1868_s8 + $0x114] sm:$0xf0] }
  0x6b   : > { %714 = vmatmul.bf16.vlgmr.msrb.gmra.mxu0 %v1496_v7 }
  0x6c   : > { %742 = vmatmul.bf16.vlgmr.msrb.gmra.mxu1 %v1500_v42  ;;  %1138 = vmatpush.bf16.msrb.mxu0 %v1820_v1  ;;  %v1515_v1 = vld [vmem:[%s1868_s8 + $0x98] sm:$0xf]  ;;  %v1728_v42 = vld [vmem:[%s1868_s8 + $0x104] sm:$0xf] }
  0x6d   : > { %1537 = vmatmul.msk.bf16.vlgmr.msrb.gmra.mxu2 %vm456_vm0, %v1504_v43  ;;  %1166 = vmatpush.bf16.msrb.mxu1 %v1825_v2  ;;  %v1517_v2 = vld [vmem:[%s1868_s8 + $0xa8] sm:$0xf0]  ;;  %v1575_v43 = vld [vmem:[%s1868_s8 + $0x110] sm:$0xf0] }
  0x6e   : > { %1201 = vmatpush.bf16.msrb.mxu2 %v1851_v6  ;;  %1116 = vmatpush.bf16.msrb.mxu3 %v1945_v24  ;;  %v1717_v6 = vld [vmem:[%s1868_s8 + $0x9c] sm:$0xf]  ;;  %v1512_v24 = vor.u32 %v1716_v44, %v1509_v45 }
  0x6f   : > { %v1583_v44 = vld [vmem:[%s1868_s8 + $0x118] sm:$0xf0] }
  0x70   : > { %1139 = vmatpush.bf16.msrb.mxu0 %v1837_v4  ;;  %v1516_v4 = vor.u32 %v1719_v46, %v1515_v1  ;;  %v1578_v1 = vor.u32 %v1728_v42, %v1575_v43  ;;  %v1582_v46 = vor.u32 %v1731_v16, %v1581_v13  ;;  %v1639_v16 = vld [vmem:[%s1868_s8 + $0x170] sm:$0xf] }
  0x71   : > { %1167 = vmatpush.bf16.msrb.mxu1 %v1845_v5  ;;  %v1520_v5 = vor.u32 %v1717_v6, %v1517_v2 }
  0x72   : > { %1117 = vmatpush.bf16.msrb.mxu3 %v1962_v28  ;;  %v1487_v28 = vld [vmem:[%s1868_s8 + $0xd0] sm:$0xff] }
  0x73   : > { %696 = vmatmul.bf16.gmra.mxu3 %v1524_v19  ;;  %v635_v53 = vunpack.c.h.b16 %v1487_v28  ;;  %v1729_v19 = vld [vmem:[%s1868_s8 + $0x10c] sm:$0xf] }
  0x74   : > { %1140 = vmatpush.bf16.msrb.mxu0 %v1863_v8  ;;  %v634_v8 = vunpack.c.l.b16 %v1487_v28 }
  0x75   : > { %1168 = vmatpush.bf16.msrb.mxu1 %v1874_v9 }
  0x76   : > { %v650_v9 = vpack.c.b16 %v634_v8, %v634_v8 }
  0x78   : > { %1141 = vmatpush.bf16.msrb.mxu0 %v1890_v14  ;;  %v1720_v14 = vld [vmem:[%s1868_s8 + $0xb4] sm:$0xf] }
  0x79   : > { %1169 = vmatpush.bf16.msrb.mxu1 %v1896_v15  ;;  %v1531_v15 = vld [vmem:[%s1868_s8 + $0xb8] sm:$0xf] }
  0x7b   : > { %719 = vmatmul.bf16.gmra.mxu0 %v1512_v24 }
  0x7c   : > { %747 = vmatmul.bf16.gmra.mxu1 %v1516_v4  ;;  %1142 = vmatpush.bf16.msrb.mxu0 %v1910_v17  ;;  %v1528_v17 = vor.u32 %v1720_v14, %v1525_v47  ;;  %v1586_v4 = vor.u32 %v1729_v19, %v1583_v44  ;;  %v1742_v19 = vld [vmem:[%s1868_s8 + $0x17c] sm:$0xf0] }
  0x7d   : > { %1538 = vmatmul.msk.bf16.gmra.mxu2 %vm456_vm0, %v1520_v5  ;;  %1170 = vmatpush.bf16.msrb.mxu1 %v1916_v18  ;;  %v1532_v18 = vor.u32 %v1723_v48, %v1531_v15 }
  0x80   : > { %1143 = vmatpush.bf16.msrb.mxu0 %v1929_v20  ;;  %v1536_v20 = vor.u32 %v1721_v49, %v1533_v50 }
  0x81   : > { %1171 = vmatpush.bf16.msrb.mxu1 %v1935_v21  ;;  %v1557_v21 = vld [vmem:[%s1868_s8 + $0xe0] sm:$0xf] }
  0x83   : > { %701 = vmatmul.bf16.gmra.mxu3 %v650_v9  ;;  %v1553_v9 = vld [vmem:[%s1868_s8 + $0x140] sm:$0xff] }
  0x84   : > { %1144 = vmatpush.bf16.msrb.mxu0 %v1950_v25  ;;  %v1726_v25 = vld [vmem:[%s1868_s8 + $0xec] sm:$0xf0]  ;;  %v850_v14 = vunpack.c.l.b16 %v1553_v9 }
  0x85   : > { %1172 = vmatpush.bf16.msrb.mxu1 %v1956_v26  ;;  %v1558_v52 = vor.u32 %v1726_v25, %v1557_v21  ;;  %v636_v26 = vunpack.c.l.b16 %v1488_v51  ;;  %v1732_v21 = vld [vmem:[%s1868_s8 + $0x124] sm:$0xf]  ;;  %v1591_v25 = vld [vmem:[%s1868_s8 + $0x130] sm:$0xf0]  ;;  %v1597_v51 = vld [vmem:[%s1868_s8 + $0x128] sm:$0xf] }
  0x88   : > { %1145 = vmatpush.bf16.msrb.mxu0 %v1967_v29  ;;  %v651_v29 = vpack.c.b16 %v635_v53, %v635_v53  ;;  %v1733_v53 = vld [vmem:[%s1868_s8 + $0x12c] sm:$0xf] }
  0x89   : > { %1173 = vmatpush.bf16.msrb.mxu1 %v1979_v34  ;;  %v652_v34 = vpack.c.b16 %v636_v26, %v636_v26  ;;  %v1599_v26 = vld [vmem:[%s1868_s8 + $0x138] sm:$0xf0] }
  0x8a   : > { %v1602_v58 = vor.u32 %v1733_v53, %v1599_v26  ;;  %v1746_v53 = vld [vmem:[%s1868_s8 + $0x19c] sm:$0xf0] }
  0x8b   : > { %724 = vmatmul.bf16.gmra.mxu0 %v1528_v17 }
  0x8c   : > { %752 = vmatmul.bf16.gmra.mxu1 %v1532_v18  ;;  %v866_v18 = vpack.c.b16 %v850_v14, %v850_v14  ;;  %v1737_v14 = vld [vmem:[%s1868_s8 + $0x15c] sm:$0xf] }
  0x8d   : > { %1539 = vmatmul.msk.bf16.gmra.mxu2 %vm456_vm0, %v1536_v20 }
  0x93   : > { %902 = vmatmul.bf16.vlgmr.msra.gmra.mxu3 %v1558_v52  ;;  %v1735_v52 = vld [vmem:[%s1868_s8 + $0x134] sm:$0xf0] }
  0x95   : > { %v562_v56 = vpop.f32.mrf.mxu3 }
  0x9b   : > { %729 = vmatmul.bf16.gmra.mxu0 %v651_v29  ;;  %v1594_v29 = vor.u32 %v1732_v21, %v1591_v25 }
  0x9c   : > { %757 = vmatmul.bf16.gmra.mxu1 %v652_v34  ;;  %v1598_v34 = vor.u32 %v1735_v52, %v1597_v51  ;;  %v1655_v52 = vld [vmem:[%s1868_s8 + $0x190] sm:$0xf] }
  0x9d   : > { %1540 = vmatmul.msk.bf16.gmra.mxu2 %vm456_vm0, %v653_v55  ;;  %v564_v59 = vpop.f32.mrf.mxu3 }
  0xa3   : > { %907 = vmatmul.bf16.gmra.mxu3 %v1574_v60 }
  0xa5   : > { %v567_v33 = vpop.f32.mrf.mxu3 }
  0xa8   : > { %v478_v27 = vpop.f32.mrf.mxu0 }
  0xa9   : > { %v506_v30 = vpop.f32.mrf.mxu1 }
  0xaa   : > { %v507_v32 = vadd.f32 %v506_v30, %v478_v27 }
  0xab   : > { %930 = vmatmul.bf16.vlgmr.msra.gmra.mxu0 %v1562_v22 }
  0xac   : > { %958 = vmatmul.bf16.vlgmr.msra.gmra.mxu1 %v1566_v23  ;;  %v1554_v23 = vld [vmem:[%s1868_s8 + $0x148] sm:$0xff] }
  0xad   : > { %1603 = vmatmul.msk.bf16.vlgmr.msra.gmra.mxu2 %vm456_vm0, %v1570_v31  ;;  %v569_v40 = vpop.f32.mrf.mxu3  ;;  %v1624_v31 = vor.u32 %v1738_v63, %v1623_v62  ;;  %v852_v0 = vunpack.c.l.b16 %v1554_v23  ;;  %v853_v35 = vunpack.c.h.b16 %v1554_v23  ;;  %v1641_v62 = vld [vmem:[%s1868_s8 + $0x180] sm:$0xf0]  ;;  %v1647_v63 = vld [vmem:[%s1868_s8 + $0x178] sm:$0xf] }
  0xb0   : > { %v534_v36 = vpop.f32.mrf.mxu2  ;;  %v480_v37 = vpop.f32.mrf.mxu0 }
  0xb1   : > { %v535_v3 = vadd.f32 %v534_v36, %v507_v32  ;;  %v508_v38 = vpop.f32.mrf.mxu1 }
  0xb2   : > { %v509_v39 = vadd.f32 %v508_v38, %v480_v37  ;;  %v868_v37 = vpack.c.b16 %v852_v0, %v852_v0 }
  0xb3   : > { %v2118_v7 = vadd.f32 %v562_v56, %v535_v3  ;;  %912 = vmatmul.bf16.gmra.mxu3 %v1590_v41  ;;  %v869_v41 = vpack.c.b16 %v853_v35, %v853_v35 }
  0xb6   : > { %v572_v28 = vpop.f32.mrf.mxu3 }
  0xb8   : > { %v536_v45 = vpop.f32.mrf.mxu2  ;;  %v483_v2 = vpop.f32.mrf.mxu0 }
  0xb9   : > { %v537_v6 = vadd.f32 %v536_v45, %v509_v39  ;;  %v511_v24 = vpop.f32.mrf.mxu1 }
  0xba   : > { %v512_v5 = vadd.f32 %v511_v24, %v483_v2  ;;  %v1640_v2 = vor.u32 %v1742_v19, %v1639_v16 }
  0xbb   : > { %v2126_v8 = vadd.f32 %v564_v59, %v537_v6  ;;  %935 = vmatmul.bf16.gmra.mxu0 %v1578_v1 }
  0xbc   : > { %963 = vmatmul.bf16.gmra.mxu1 %v1582_v46 }
  0xbd   : > { %1604 = vmatmul.msk.bf16.gmra.mxu2 %vm456_vm0, %v1586_v4  ;;  %v1736_v4 = vld [vmem:[%s1868_s8 + $0x154] sm:$0xf] }
  0xbe   : > { %v574_v17 = vpop.f32.mrf.mxu3 }
  0xc0   : > { %v539_v47 = vpop.f32.mrf.mxu2  ;;  %v485_v48 = vpop.f32.mrf.mxu0 }
  0xc1   : > { %v540_v15 = vadd.f32 %v539_v47, %v512_v5  ;;  %v513_v49 = vpop.f32.mrf.mxu1  ;;  %v1625_v5 = vld [vmem:[%s1868_s8 + $0x160] sm:$0xf0]  ;;  %v1633_v47 = vld [vmem:[%s1868_s8 + $0x168] sm:$0xf0] }
  0xc2   : > { %v514_v50 = vadd.f32 %v513_v49, %v485_v48  ;;  %v1628_v48 = vor.u32 %v1736_v4, %v1625_v5  ;;  %v1747_v4 = vld [vmem:[%s1868_s8 + $0x1a4] sm:$0xf0]  ;;  %v1745_v5 = vld [vmem:[%s1868_s8 + $0x19c] sm:$0xf] }
  0xc3   : > { %v2130_v20 = vadd.f32 %v567_v33, %v540_v15  ;;  %917 = vmatmul.bf16.gmra.mxu3 %v866_v18  ;;  %v851_v33 = vunpack.c.h.b16 %v1553_v9  ;;  %v1739_v9 = vld [vmem:[%s1868_s8 + $0x164] sm:$0xf0]  ;;  %v1636_v18 = vor.u32 %v1737_v14, %v1633_v47 }
  0xc5   : > { %v867_v3 = vpack.c.b16 %v851_v33, %v851_v33 }
  0xc6   : > { %v577_v60 = vpop.f32.mrf.mxu3 }
  0xc8   : > { %v541_v54 = vpop.f32.mrf.mxu2  ;;  %v488_v56 = vpop.f32.mrf.mxu0 }
  0xc9   : > { %v542_v55 = vadd.f32 %v541_v54, %v514_v50  ;;  %v516_v57 = vpop.f32.mrf.mxu1 }
  0xca   : > { %v517_v59 = vadd.f32 %v516_v57, %v488_v56  ;;  %v1656_v57 = vor.u32 %v1746_v53, %v1655_v52 }
  0xcb   : > { %v2138_v61 = vadd.f32 %v569_v40, %v542_v55  ;;  %940 = vmatmul.bf16.gmra.mxu0 %v1594_v29 }
  0xcc   : > { %968 = vmatmul.bf16.gmra.mxu1 %v1598_v34 }
  0xcd   : > { %1605 = vmatmul.msk.bf16.gmra.mxu2 %vm456_vm0, %v1602_v58 }
  0xce   : > { %v579_v30 = vpop.f32.mrf.mxu3 }
  0xd0   : > { %v544_v10 = vpop.f32.mrf.mxu2  ;;  %v490_v12 = vpop.f32.mrf.mxu0 }
  0xd1   : > { %v545_v11 = vadd.f32 %v544_v10, %v517_v59  ;;  %v518_v22 = vpop.f32.mrf.mxu1  ;;  %v1743_v10 = vld [vmem:[%s1868_s8 + $0x184] sm:$0xf0] }
  0xd2   : > { %v519_v27 = vadd.f32 %v518_v22, %v490_v12  ;;  %v1649_v12 = vld [vmem:[%s1868_s8 + $0x188] sm:$0xf0] }
  0xd3   : > { %v2144_v32 = vadd.f32 %v572_v28, %v545_v11  ;;  %1118 = vmatmul.bf16.vlgmr.msrb.gmra.mxu3 %v1624_v31  ;;  %v1631_v28 = vld [vmem:[%s1868_s8 + $0x158] sm:$0xf]  ;;  %v1741_v11 = vld [vmem:[%s1868_s8 + $0x17c] sm:$0xf] }
  0xd4   : > { %v1632_v49 = vor.u32 %v1739_v9, %v1631_v28  ;;  %v1652_v0 = vor.u32 %v1741_v11, %v1649_v12  ;;  %v1665_v28 = vld [vmem:[%s1868_s8 + $0x1a8] sm:$0xf0] }
  0xd6   : > { %v687_v43 = vpop.f32.mrf.mxu3 }
  0xd8   : > { %v546_v36 = vpop.f32.mrf.mxu2  ;;  %v493_v39 = vpop.f32.mrf.mxu0 }
  0xd9   : > { %v547_v38 = vadd.f32 %v546_v36, %v519_v27  ;;  %v521_v40 = vpop.f32.mrf.mxu1  ;;  %v1648_v27 = vor.u32 %v1743_v10, %v1647_v63 }
  0xda   : > { %v522_v42 = vadd.f32 %v521_v40, %v493_v39 }
  0xdb   : > { %v2146_v13 = vadd.f32 %v574_v17, %v547_v38  ;;  %945 = vmatmul.bf16.gmra.mxu0 %v867_v3 }
  0xdc   : > { %973 = vmatmul.bf16.gmra.mxu1 %v868_v37  ;;  %v1619_v37 = vld [vmem:[%s1868_s8 + $0x1b0] sm:$0xff] }
  0xdd   : > { %1606 = vmatmul.msk.bf16.gmra.mxu2 %vm456_vm0, %v869_v41  ;;  %v1066_v39 = vunpack.c.l.b16 %v1619_v37 }
  0xde   : > { %v689_v6 = vpop.f32.mrf.mxu3 }
  0xe0   : > { %v549_v44 = vpop.f32.mrf.mxu2  ;;  %v495_v1 = vpop.f32.mrf.mxu0 }
  0xe1   : > { %v550_v45 = vadd.f32 %v549_v44, %v522_v42  ;;  %v523_v46 = vpop.f32.mrf.mxu1  ;;  %v1082_v44 = vpack.c.b16 %v1066_v39, %v1066_v39 }
  0xe2   : > { %v1744_v46 = vld [vmem:[%s1868_s8 + $0x194] sm:$0xf] }
  0xe3   : > { %v2151_v24 = vadd.f32 %v577_v60, %v550_v45  ;;  %1123 = vmatmul.bf16.gmra.mxu3 %v1640_v2  ;;  %v1740_v60 = vld [vmem:[%s1868_s8 + $0x174] sm:$0xf]  ;;  %v1663_v2 = vld [vmem:[%s1868_s8 + $0x198] sm:$0xf] }
  0xe4   : > { %v1644_v23 = vor.u32 %v1740_v60, %v1641_v62  ;;  %v1664_v47 = vor.u32 %v1747_v4, %v1663_v2 }
  0xe6   : > { %v692_v25 = vpop.f32.mrf.mxu3 }
  0xe8   : > { %v551_v15 = vpop.f32.mrf.mxu2  ;;  %v715_v50 = vpop.f32.mrf.mxu0 }
  0xe9   : > { %v743_v17 = vpop.f32.mrf.mxu1  ;;  %v716_v21 = vadd.f32 %v715_v50, %v687_v43  ;;  %v1668_v50 = vor.u32 %v1745_v5, %v1665_v28 }
  0xeb   : > { %v744_v51 = vadd.f32 %v743_v17, %v716_v21  ;;  %1146 = vmatmul.bf16.vlgmr.msrb.gmra.mxu0 %v1628_v48 }
  0xec   : > { %1174 = vmatmul.bf16.vlgmr.msrb.gmra.mxu1 %v1632_v49 }
  0xed   : > { %1669 = vmatmul.msk.bf16.vlgmr.msrb.gmra.mxu2 %vm456_vm0, %v1636_v18 }
  0xee   : > { %v694_v56 = vpop.f32.mrf.mxu3 }
  0xf0   : > { %v771_v26 = vpop.f32.mrf.mxu2  ;;  %v717_v29 = vpop.f32.mrf.mxu0 }
  0xf1   : > { %v2162_v54 = vadd.f32 %v771_v26, %v744_v51  ;;  %v745_v34 = vpop.f32.mrf.mxu1  ;;  %v718_v55 = vadd.f32 %v717_v29, %v689_v6  ;;  %v1657_v6 = vld [vmem:[%s1868_s8 + $0x1a0] sm:$0xf0]  ;;  %v1620_v29 = vld [vmem:[%s1868_s8 + $0x1b8] sm:$0xff] }
  0xf2   : > { %v1660_v14 = vor.u32 %v1744_v46, %v1657_v6  ;;  %v1068_v60 = vunpack.c.l.b16 %v1620_v29  ;;  %v1069_v62 = vunpack.c.h.b16 %v1620_v29 }
  0xf3   : > { %v790_v58 = vmax.f32 %v2118_v7, %v2162_v54  ;;  %v746_v59 = vadd.f32 %v745_v34, %v718_v55  ;;  %1128 = vmatmul.bf16.gmra.mxu3 %v1656_v57 }
  0xf4   : > { %v1084_v11 = vpack.c.b16 %v1068_v60, %v1068_v60 }
  0xf6   : > { %v697_v36 = vpop.f32.mrf.mxu3 }
  0xf8   : > { %v773_v22 = vpop.f32.mrf.mxu2  ;;  %v720_v31 = vpop.f32.mrf.mxu0 }
  0xf9   : > { %v2172_v30 = vadd.f32 %v773_v22, %v746_v59  ;;  %v748_v33 = vpop.f32.mrf.mxu1  ;;  %v721_v35 = vadd.f32 %v720_v31, %v692_v25  ;;  %v1067_v59 = vunpack.c.h.b16 %v1619_v37 }
  0xfb   : > { %v791_v3 = vmax.f32 %v2126_v8, %v2172_v30  ;;  %v749_v38 = vadd.f32 %v748_v33, %v721_v35  ;;  %1151 = vmatmul.bf16.gmra.mxu0 %v1644_v23  ;;  %v1083_v10 = vpack.c.b16 %v1067_v59, %v1067_v59 }
  0xfc   : > { %1179 = vmatmul.bf16.gmra.mxu1 %v1648_v27  ;;  %v1085_v27 = vpack.c.b16 %v1069_v62, %v1069_v62 }
  0xfd   : > { %1670 = vmatmul.msk.bf16.gmra.mxu2 %vm456_vm0, %v1652_v0 }
  0xfe   : > { %v699_v19 = vpop.f32.mrf.mxu3 }
 0x100   : > { %v776_v40 = vpop.f32.mrf.mxu2  ;;  %v722_v42 = vpop.f32.mrf.mxu0 }
 0x101   : > { %v2178_v41 = vadd.f32 %v776_v40, %v749_v38  ;;  %v750_v43 = vpop.f32.mrf.mxu1  ;;  %v723_v16 = vadd.f32 %v722_v42, %v694_v56 }
 0x103   : > { %v792_v45 = vmax.f32 %v2130_v20, %v2178_v41  ;;  %v751_v1 = vadd.f32 %v750_v43, %v723_v16  ;;  %1133 = vmatmul.bf16.gmra.mxu3 %v1082_v44 }
 0x106   : > { %v702_v18 = vpop.f32.mrf.mxu3 }
 0x108   : > { %v778_v9 = vpop.f32.mrf.mxu2  ;;  %v725_v48 = vpop.f32.mrf.mxu0 }
 0x109   : > { %v2188_v15 = vadd.f32 %v778_v9, %v751_v1  ;;  %v753_v49 = vpop.f32.mrf.mxu1  ;;  %v726_v17 = vadd.f32 %v725_v48, %v697_v36 }
 0x10b   : > { %v793_v21 = vmax.f32 %v2138_v61, %v2188_v15  ;;  %v754_v25 = vadd.f32 %v753_v49, %v726_v17  ;;  %1156 = vmatmul.bf16.gmra.mxu0 %v1660_v14 }
 0x10c   : > { %1184 = vmatmul.bf16.gmra.mxu1 %v1664_v47 }
 0x10d   : > { %1671 = vmatmul.msk.bf16.gmra.mxu2 %vm456_vm0, %v1668_v50 }
 0x10e   : > { %v704_v55 = vpop.f32.mrf.mxu3 }
 0x110   : > { %v781_v51 = vpop.f32.mrf.mxu2  ;;  %v727_v53 = vpop.f32.mrf.mxu0 }
 0x111   : > { %v2193_v52 = vadd.f32 %v781_v51, %v754_v25  ;;  %v755_v26 = vpop.f32.mrf.mxu1  ;;  %v728_v34 = vadd.f32 %v727_v53, %v699_v19 }
 0x113   : > { %v794_v56 = vmax.f32 %v2144_v32, %v2193_v52  ;;  %v756_v57 = vadd.f32 %v755_v26, %v728_v34 }
 0x116   : > { %v903_v33 = vpop.f32.mrf.mxu3 }
 0x118   : > { %v783_v63 = vpop.f32.mrf.mxu2  ;;  %v730_v22 = vpop.f32.mrf.mxu0 }
 0x119   : > { %v2198_v12 = vadd.f32 %v783_v63, %v756_v57  ;;  %v758_v23 = vpop.f32.mrf.mxu1  ;;  %v731_v31 = vadd.f32 %v730_v22, %v702_v18 }
 0x11b   : > { %v795_v0 = vmax.f32 %v2146_v13, %v2198_v12  ;;  %v759_v35 = vadd.f32 %v758_v23, %v731_v31  ;;  %1161 = vmatmul.bf16.gmra.mxu0 %v1083_v10 }
 0x11c   : > { %1189 = vmatmul.bf16.gmra.mxu1 %v1084_v11 }
 0x11d   : > { %1672 = vmatmul.msk.bf16.gmra.mxu2 %vm456_vm0, %v1085_v27 }
 0x11e   : > { %v905_v40 = vpop.f32.mrf.mxu3 }
 0x120   : > { %v786_v36 = vpop.f32.mrf.mxu2  ;;  %v732_v38 = vpop.f32.mrf.mxu0 }
 0x121   : > { %v2203_v37 = vadd.f32 %v786_v36, %v759_v35  ;;  %v760_v39 = vpop.f32.mrf.mxu1 }
 0x123   : > { %v796_v42 = vmax.f32 %v2151_v24, %v2203_v37 }
 0x126   : > { %v908_v1 = vpop.f32.mrf.mxu3 }
 0x128   : > { %v788_v43 = vpop.f32.mrf.mxu2  ;;  %v931_v16 = vpop.f32.mrf.mxu0 }
 0x129   : > { %v959_v19 = vpop.f32.mrf.mxu1  ;;  %v932_v44 = vadd.f32 %v931_v16, %v903_v33 }
 0x12b   : > { %v960_v46 = vadd.f32 %v959_v19, %v932_v44 }
 0x12e   : > { %v910_v9 = vpop.f32.mrf.mxu3 }
 0x130   : > { %v987_v6 = vpop.f32.mrf.mxu2  ;;  %v933_v4 = vpop.f32.mrf.mxu0 }
 0x131   : > { %v988_v2 = vadd.f32 %v987_v6, %v960_v46  ;;  %v961_v5 = vpop.f32.mrf.mxu1  ;;  %v934_v28 = vadd.f32 %v933_v4, %v905_v40 }
 0x133   : > { %v2210_v14 = vmax.f32 %v790_v58, %v988_v2  ;;  %v962_v47 = vadd.f32 %v961_v5, %v934_v28 }
 0x136   : > { %v913_v18 = vpop.f32.mrf.mxu3 }
 0x138   : > { %v989_v48 = vpop.f32.mrf.mxu2  ;;  %v936_v49 = vpop.f32.mrf.mxu0 }
 0x139   : > { %v990_v24 = vadd.f32 %v989_v48, %v962_v47  ;;  %v964_v50 = vpop.f32.mrf.mxu1  ;;  %v937_v17 = vadd.f32 %v936_v49, %v908_v1 }
 0x13b   : > { %v2215_v25 = vmax.f32 %v791_v3, %v990_v24  ;;  %v965_v51 = vadd.f32 %v964_v50, %v937_v17 }
 0x13e   : > { %v915_v54 = vpop.f32.mrf.mxu3 }
 0x140   : > { %v992_v53 = vpop.f32.mrf.mxu2  ;;  %v938_v29 = vpop.f32.mrf.mxu0 }
 0x141   : > { %v993_v26 = vadd.f32 %v992_v53, %v965_v51  ;;  %v966_v34 = vpop.f32.mrf.mxu1  ;;  %v939_v7 = vadd.f32 %v938_v29, %v910_v9 }
 0x143   : > { %v2220_v58 = vmax.f32 %v792_v45, %v993_v26  ;;  %v967_v55 = vadd.f32 %v966_v34, %v939_v7 }
 0x146   : > { %v918_v30 = vpop.f32.mrf.mxu3 }
 0x148   : > { %v994_v57 = vpop.f32.mrf.mxu2  ;;  %v941_v60 = vpop.f32.mrf.mxu0 }
 0x149   : > { %v995_v59 = vadd.f32 %v994_v57, %v967_v55  ;;  %v969_v62 = vpop.f32.mrf.mxu1  ;;  %v942_v8 = vadd.f32 %v941_v60, %v913_v18 }
 0x14b   : > { %v2225_v3 = vmax.f32 %v793_v21, %v995_v59  ;;  %v970_v63 = vadd.f32 %v969_v62, %v942_v8 }
 0x14e   : > { %v920_v41 = vpop.f32.mrf.mxu3 }
 0x150   : > { %v997_v10 = vpop.f32.mrf.mxu2  ;;  %v943_v22 = vpop.f32.mrf.mxu0 }
 0x151   : > { %v998_v11 = vadd.f32 %v997_v10, %v970_v63  ;;  %v971_v23 = vpop.f32.mrf.mxu1  ;;  %v944_v20 = vadd.f32 %v943_v22, %v915_v54 }
 0x153   : > { %v2230_v45 = vmax.f32 %v794_v56, %v998_v11  ;;  %v972_v27 = vadd.f32 %v971_v23, %v944_v20 }
 0x156   : > { %v1119_v15 = vpop.f32.mrf.mxu3 }
 0x158   : > { %v999_v31 = vpop.f32.mrf.mxu2  ;;  %v946_v35 = vpop.f32.mrf.mxu0 }
 0x159   : > { %v1000_v33 = vadd.f32 %v999_v31, %v972_v27  ;;  %v974_v36 = vpop.f32.mrf.mxu1  ;;  %v947_v61 = vadd.f32 %v946_v35, %v918_v30 }
 0x15b   : > { %v2235_v21 = vmax.f32 %v795_v0, %v1000_v33  ;;  %v975_v37 = vadd.f32 %v974_v36, %v947_v61 }
 0x15e   : > { %v1121_v32 = vpop.f32.mrf.mxu3 }
 0x160   : > { %v1002_v38 = vpop.f32.mrf.mxu2  ;;  %v948_v40 = vpop.f32.mrf.mxu0 }
 0x161   : > { %v1003_v39 = vadd.f32 %v1002_v38, %v975_v37  ;;  %v976_v43 = vpop.f32.mrf.mxu1 }
 0x163   : > { %v2237_v52 = vmax.f32 %v796_v42, %v1003_v39  ;;  %v2243_v42 = vld [vmem:[%s2273_s2] ss:$0 sm:$0xff] }
 0x166   : > { %v1124_v44 = vpop.f32.mrf.mxu3 }
 0x168   : > { %v1004_v56 = vpop.f32.mrf.mxu2  ;;  %v1147_v16 = vpop.f32.mrf.mxu0 }
 0x169   : > { %v1175_v19 = vpop.f32.mrf.mxu1  ;;  %v1148_v1 = vadd.f32 %v1147_v16, %v1119_v15 }
 0x16b   : > { %v1176_v46 = vadd.f32 %v1175_v19, %v1148_v1 }
 0x16e   : > { %v1126_v12 = vpop.f32.mrf.mxu3 }
 0x170   : > { %v1203_v6 = vpop.f32.mrf.mxu2  ;;  %v1149_v2 = vpop.f32.mrf.mxu0 }
 0x171   : > { %v1177_v13 = vpop.f32.mrf.mxu1  ;;  %v1204_v0 = vadd.f32 %v1203_v6, %v1176_v46  ;;  %v1150_v4 = vadd.f32 %v1149_v2, %v1121_v32 }
 0x173   : > { %v1222_v5 = vmax.f32 %v2210_v14, %v1204_v0  ;;  %v1178_v28 = vadd.f32 %v1177_v13, %v1150_v4 }
 0x175   : > { %v1233_v50 = vadd.f32 %v2243_v42, %v1222_v5 }
 0x176   : > { %v1129_v49 = vpop.f32.mrf.mxu3 }
 0x177   : > { %v1240_v14 = vmax.f32 %v1233_v50, 0.0 }
 0x178   : > { %v1205_v9 = vpop.f32.mrf.mxu2  ;;  %v1152_v48 = vpop.f32.mrf.mxu0 }
 0x179   : > { %v1206_v47 = vadd.f32 %v1205_v9, %v1178_v28  ;;  %v1180_v24 = vpop.f32.mrf.mxu1  ;;  %v1153_v18 = vadd.f32 %v1152_v48, %v1124_v44 }
 0x17b   : > { %v1223_v17 = vmax.f32 %v2215_v25, %v1206_v47  ;;  %v1181_v26 = vadd.f32 %v1180_v24, %v1153_v18 }
 0x17d   : > { %v1234_v51 = vadd.f32 %v2243_v42, %v1223_v17 }
 0x17e   : > { %v1131_v55 = vpop.f32.mrf.mxu3 }
 0x17f   : > { %v1241_v53 = vmax.f32 %v1234_v51, 0.0 }
 0x180   : > { %v1208_v29 = vpop.f32.mrf.mxu2  ;;  %v1154_v7 = vpop.f32.mrf.mxu0 }
 0x181   : > { %v1751_v34 = vpack.c.bf16 %v1241_v53, %v1240_v14  ;;  %v1182_v54 = vpop.f32.mrf.mxu1  ;;  %v1209_v25 = vadd.f32 %v1208_v29, %v1181_v26  ;;  %v1155_v57 = vadd.f32 %v1154_v7, %v1126_v12 }
 0x183   : > { %1752 = vst [vmem:[%s2252_s23] sm:$0xff] %v1751_v34   ;;  %v1224_v59 = vmax.f32 %v2220_v58, %v1209_v25  ;;  %v1183_v60 = vadd.f32 %v1182_v54, %v1155_v57 }
 0x185   : > { %v1235_v11 = vadd.f32 %v2243_v42, %v1224_v59 }
 0x186   : > { %v1134_v10 = vpop.f32.mrf.mxu3 }
 0x187   : > { %v1242_v41 = vmax.f32 %v1235_v11, 0.0 }
 0x188   : > { %v1210_v62 = vpop.f32.mrf.mxu2  ;;  %v1157_v30 = vpop.f32.mrf.mxu0 }
 0x189   : > { %v1211_v8 = vadd.f32 %v1210_v62, %v1183_v60  ;;  %v1185_v63 = vpop.f32.mrf.mxu1  ;;  %v1158_v23 = vadd.f32 %v1157_v30, %v1129_v49 }
 0x18b   : > { %v1225_v22 = vmax.f32 %v2225_v3, %v1211_v8  ;;  %v1186_v31 = vadd.f32 %v1185_v63, %v1158_v23 }
 0x18d   : > { %v1236_v20 = vadd.f32 %v2243_v42, %v1225_v22 }
 0x18e   : > { %v1136_v61 = vpop.f32.mrf.mxu3 }
 0x18f   : > { %v1243_v27 = vmax.f32 %v1236_v20, 0.0 }
 0x190   : > { %v1213_v33 = vpop.f32.mrf.mxu2  ;;  %v1159_v58 = vpop.f32.mrf.mxu0 }
 0x191   : > { %v1756_v35 = vpack.c.bf16 %v1243_v27, %v1242_v41  ;;  %v1187_v36 = vpop.f32.mrf.mxu1  ;;  %v1214_v15 = vadd.f32 %v1213_v33, %v1186_v31  ;;  %v1160_v37 = vadd.f32 %v1159_v58, %v1131_v55 }
 0x193   : > { %1763 = vst [vmem:[%s2252_s23 + $0x8] sm:$0xff] %v1756_v35   ;;  %v1226_v38 = vmax.f32 %v2230_v45, %v1214_v15  ;;  %v1188_v39 = vadd.f32 %v1187_v36, %v1160_v37 }
 0x195   : > { %v1237_v16 = vadd.f32 %v2243_v42, %v1226_v38 }
 0x197   : > { %v1244_v46 = vmax.f32 %v1237_v16, 0.0 }
 0x198   : > { %v1215_v40 = vpop.f32.mrf.mxu2  ;;  %v1162_v43 = vpop.f32.mrf.mxu0 }
 0x199   : > { %v1216_v3 = vadd.f32 %v1215_v40, %v1188_v39  ;;  %v1190_v32 = vpop.f32.mrf.mxu1  ;;  %v1163_v56 = vadd.f32 %v1162_v43, %v1134_v10 }
 0x19b   : > { %v1227_v19 = vmax.f32 %v2235_v21, %v1216_v3  ;;  %v1191_v1 = vadd.f32 %v1190_v32, %v1163_v56 }
 0x19d   : > { %v1238_v44 = vadd.f32 %v2243_v42, %v1227_v19 }
 0x19f   : > { %v1245_v6 = vmax.f32 %v1238_v44, 0.0 }
 0x1a0   : > { %v1218_v2 = vpop.f32.mrf.mxu2  ;;  %v1164_v12 = vpop.f32.mrf.mxu0 }
 0x1a1   : > { %v1761_v13 = vpack.c.bf16 %v1245_v6, %v1244_v46  ;;  %v1219_v45 = vadd.f32 %v1218_v2, %v1191_v1  ;;  %v1192_v0 = vpop.f32.mrf.mxu1 }
 0x1a3   : > { %1764 = vst [vmem:[%s2252_s23 + $0x10] sm:$0xff] %v1761_v13   ;;  %v1228_v4 = vmax.f32 %v2237_v52, %v1219_v45 }
 0x1a5   : > { %v1239_v5 = vadd.f32 %v2243_v42, %v1228_v4 }
 0x1a7   : > { %v1246_v28 = vmax.f32 %v1239_v5, 0.0 }
 0x1a8   : > { %v1220_v9 = vpop.f32.mrf.mxu2 }
 0x1a9   : > { %v1253_v47 = vpack.c.bf16 %v1246_v28, %v1246_v28 }
 0x1ab   : > { %1260 = vst [vmem:[%s2252_s23 + $0x18] sm:$0xf] %v1253_v47 }
 0x1ac PF: > { %s13_s12 = sadd.s32 1, %s1782_s12  }
 0x1ad   : > { %p10_p4 = scmp.ge.s32.totalorder %s13_s12, 4  }
 0x1af   :  { %12 = sbr.rel (!%p10_p4) target bundleno = 1 (0x1), region = 65 }

// kernel: cnn_forward.5
= control target key start
LH: loop header
LB: loop body
LE: loop exit
PB: predicated region body
PF: predicated region fallthrough
CT: control target
= control target key end

     0   :  { %s8278_s1 = inlined_call_operand.vmem [shape: bf16[7168,128], index: 1, kind: input, shape index: {}]   ;;  %s8279_s0 = inlined_call_operand.vmem [shape: bf16[8,7168], index: 0, kind: input, shape index: {}]   ;;  %s8280_s2 = inlined_call_operand.vmem [shape: f32[1,128], index: 2, kind: input, shape index: {}]   ;;  %s8281_s3 = inlined_call_operand.vmem [shape: f32[8,128], index: 3, kind: output, shape index: {}]  }
   0x1   :  { %v6358_v0 = vld [vmem:[%s8278_s1 + $0x38] sm:$0xff]  ;;  %v6357_v4 = vld [vmem:[%s8278_s1 + $0x30] sm:$0xff]  ;;  %v6356_v8 = vld [vmem:[%s8278_s1 + $0x28] sm:$0xff] }
   0x2   :  { %v6366_v1 = vld [vmem:[%s8278_s1 + $0x78] sm:$0xff]  ;;  %3826 = vmatpush.bf16.msra.mxu0 %v6358_v0  ;;  %v6365_v5 = vld [vmem:[%s8278_s1 + $0x70] sm:$0xff]  ;;  %v6364_v9 = vld [vmem:[%s8278_s1 + $0x68] sm:$0xff] }
   0x3   :  { %v6374_v2 = vld [vmem:[%s8278_s1 + $0xb8] sm:$0xff]  ;;  %3839 = vmatpush.bf16.msra.mxu1 %v6366_v1  ;;  %v6373_v6 = vld [vmem:[%s8278_s1 + $0xb0] sm:$0xff]  ;;  %v6372_v10 = vld [vmem:[%s8278_s1 + $0xa8] sm:$0xff] }
   0x4   :  { %v6382_v3 = vld [vmem:[%s8278_s1 + $0xf8] sm:$0xff]  ;;  %3852 = vmatpush.bf16.msra.mxu2 %v6374_v2  ;;  %v6381_v7 = vld [vmem:[%s8278_s1 + $0xf0] sm:$0xff]  ;;  %v6380_v11 = vld [vmem:[%s8278_s1 + $0xe8] sm:$0xff] }
   0x5   :  { %3865 = vmatpush.bf16.msra.mxu3 %v6382_v3  ;;  %v6355_v12 = vld [vmem:[%s8278_s1 + $0x20] sm:$0xff]  ;;  %v6354_v16 = vld [vmem:[%s8278_s1 + $0x18] sm:$0xff]  ;;  %v6353_v20 = vld [vmem:[%s8278_s1 + $0x10] sm:$0xff] }
   0x6   :  { %3827 = vmatpush.bf16.msra.mxu0 %v6357_v4  ;;  %v6363_v13 = vld [vmem:[%s8278_s1 + $0x60] sm:$0xff]  ;;  %v6362_v17 = vld [vmem:[%s8278_s1 + $0x58] sm:$0xff]  ;;  %v6361_v21 = vld [vmem:[%s8278_s1 + $0x50] sm:$0xff] }
   0x7   :  { %3840 = vmatpush.bf16.msra.mxu1 %v6365_v5  ;;  %v6371_v14 = vld [vmem:[%s8278_s1 + $0xa0] sm:$0xff]  ;;  %v6370_v18 = vld [vmem:[%s8278_s1 + $0x98] sm:$0xff]  ;;  %v6369_v22 = vld [vmem:[%s8278_s1 + $0x90] sm:$0xff] }
   0x8   :  { %3853 = vmatpush.bf16.msra.mxu2 %v6373_v6  ;;  %v6379_v15 = vld [vmem:[%s8278_s1 + $0xe0] sm:$0xff]  ;;  %v6378_v19 = vld [vmem:[%s8278_s1 + $0xd8] sm:$0xff]  ;;  %v6377_v23 = vld [vmem:[%s8278_s1 + $0xd0] sm:$0xff] }
   0x9   :  { %3866 = vmatpush.bf16.msra.mxu3 %v6381_v7  ;;  %v6352_v24 = vld [vmem:[%s8278_s1 + $0x8] sm:$0xff]  ;;  %v14_v29 = vld [vmem:[%s8279_s0] sm:$0xff]  ;;  %v6390_v38 = vld [vmem:[%s8278_s1 + $0x138] sm:$0xff] }
   0xa   :  { %3828 = vmatpush.bf16.msra.mxu0 %v6356_v8  ;;  %v6360_v25 = vld [vmem:[%s8278_s1 + $0x48] sm:$0xff]  ;;  %v6351_v30 = vld [vmem:[%s8278_s1] sm:$0xff]  ;;  %v970_v33 = vunpack.c.l.b16 %v14_v29  ;;  %v971_v37 = vunpack.c.h.b16 %v14_v29  ;;  %v6398_v39 = vld [vmem:[%s8278_s1 + $0x178] sm:$0xff] }
   0xb   :  { %3841 = vmatpush.bf16.msra.mxu1 %v6364_v9  ;;  %v6368_v26 = vld [vmem:[%s8278_s1 + $0x88] sm:$0xff]  ;;  %v6359_v31 = vld [vmem:[%s8278_s1 + $0x40] sm:$0xff]  ;;  %v6406_v40 = vld [vmem:[%s8278_s1 + $0x1b8] sm:$0xff] }
   0xc   :  { %3854 = vmatpush.bf16.msra.mxu2 %v6372_v10  ;;  %v6376_v27 = vld [vmem:[%s8278_s1 + $0xc8] sm:$0xff]  ;;  %v6367_v34 = vld [vmem:[%s8278_s1 + $0x80] sm:$0xff]  ;;  %v6414_v41 = vld [vmem:[%s8278_s1 + $0x1f8] sm:$0xff]  ;;  %v1026_v43 = vpack.c.b16 %v970_v33, %v970_v33  ;;  %v1027_v45 = vpack.c.b16 %v971_v37, %v971_v37 }
   0xd   :  { %3867 = vmatpush.bf16.msra.mxu3 %v6380_v11  ;;  %v15_v28 = vld [vmem:[%s8279_s0 + $0x8] sm:$0xff]  ;;  %v6375_v35 = vld [vmem:[%s8278_s1 + $0xc0] sm:$0xff]  ;;  %v6389_v46 = vld [vmem:[%s8278_s1 + $0x130] sm:$0xff] }
   0xe   :  { %3829 = vmatpush.bf16.msra.mxu0 %v6355_v12  ;;  %v972_v32 = vunpack.c.l.b16 %v15_v28  ;;  %v973_v36 = vunpack.c.h.b16 %v15_v28  ;;  %v6397_v47 = vld [vmem:[%s8278_s1 + $0x170] sm:$0xff]  ;;  %v6388_v50 = vld [vmem:[%s8278_s1 + $0x128] sm:$0xff]  ;;  %v6387_v54 = vld [vmem:[%s8278_s1 + $0x120] sm:$0xff] }
   0xf   :  { %3842 = vmatpush.bf16.msra.mxu1 %v6363_v13  ;;  %v6405_v48 = vld [vmem:[%s8278_s1 + $0x1b0] sm:$0xff]  ;;  %v6396_v51 = vld [vmem:[%s8278_s1 + $0x168] sm:$0xff]  ;;  %v6395_v55 = vld [vmem:[%s8278_s1 + $0x160] sm:$0xff] }
  0x10   :  { %3855 = vmatpush.bf16.msra.mxu2 %v6371_v14  ;;  %v1028_v42 = vpack.c.b16 %v972_v32, %v972_v32  ;;  %v1029_v44 = vpack.c.b16 %v973_v36, %v973_v36  ;;  %v6413_v49 = vld [vmem:[%s8278_s1 + $0x1f0] sm:$0xff]  ;;  %v6404_v52 = vld [vmem:[%s8278_s1 + $0x1a8] sm:$0xff]  ;;  %v6403_v56 = vld [vmem:[%s8278_s1 + $0x1a0] sm:$0xff] }
  0x11   :  { %3868 = vmatpush.bf16.msra.mxu3 %v6379_v15  ;;  %v6412_v53 = vld [vmem:[%s8278_s1 + $0x1e8] sm:$0xff]  ;;  %v6411_v57 = vld [vmem:[%s8278_s1 + $0x1e0] sm:$0xff]  ;;  %v6386_v58 = vld [vmem:[%s8278_s1 + $0x118] sm:$0xff] }
  0x12   :  { %3830 = vmatpush.bf16.msra.mxu0 %v6354_v16  ;;  %v6394_v59 = vld [vmem:[%s8278_s1 + $0x158] sm:$0xff]  ;;  %v6385_v62 = vld [vmem:[%s8278_s1 + $0x110] sm:$0xff]  ;;  %v6384_v2 = vld [vmem:[%s8278_s1 + $0x108] sm:$0xff] }
  0x13   :  { %3843 = vmatpush.bf16.msra.mxu1 %v6362_v17  ;;  %v6402_v60 = vld [vmem:[%s8278_s1 + $0x198] sm:$0xff]  ;;  %v6393_v63 = vld [vmem:[%s8278_s1 + $0x150] sm:$0xff]  ;;  %v6392_v3 = vld [vmem:[%s8278_s1 + $0x148] sm:$0xff] }
  0x14   :  { %3856 = vmatpush.bf16.msra.mxu2 %v6370_v18  ;;  %v6410_v61 = vld [vmem:[%s8278_s1 + $0x1d8] sm:$0xff]  ;;  %v6401_v0 = vld [vmem:[%s8278_s1 + $0x190] sm:$0xff]  ;;  %v6400_v4 = vld [vmem:[%s8278_s1 + $0x188] sm:$0xff] }
  0x15   :  { %3869 = vmatpush.bf16.msra.mxu3 %v6378_v19  ;;  %v6409_v1 = vld [vmem:[%s8278_s1 + $0x1d0] sm:$0xff]  ;;  %v6408_v5 = vld [vmem:[%s8278_s1 + $0x1c8] sm:$0xff]  ;;  %v17_v6 = vld [vmem:[%s8279_s0 + $0x18] sm:$0xff] }
  0x16   :  { %3831 = vmatpush.bf16.msra.mxu0 %v6353_v20  ;;  %v16_v7 = vld [vmem:[%s8279_s0 + $0x10] sm:$0xff]  ;;  %v6383_v8 = vld [vmem:[%s8278_s1 + $0x100] sm:$0xff]  ;;  %v976_v10 = vunpack.c.l.b16 %v17_v6  ;;  %v977_v14 = vunpack.c.h.b16 %v17_v6  ;;  %v6422_v16 = vld [vmem:[%s8278_s1 + $0x238] sm:$0xff] }
  0x17   :  { %3844 = vmatpush.bf16.msra.mxu1 %v6361_v21  ;;  %v6391_v9 = vld [vmem:[%s8278_s1 + $0x140] sm:$0xff]  ;;  %v974_v11 = vunpack.c.l.b16 %v16_v7  ;;  %v975_v15 = vunpack.c.h.b16 %v16_v7  ;;  %v6430_v17 = vld [vmem:[%s8278_s1 + $0x278] sm:$0xff]  ;;  %v6420_v28 = vld [vmem:[%s8278_s1 + $0x228] sm:$0xff] }
  0x18   :  { %3857 = vmatpush.bf16.msra.mxu2 %v6369_v22  ;;  %v6399_v12 = vld [vmem:[%s8278_s1 + $0x180] sm:$0xff]  ;;  %v6438_v18 = vld [vmem:[%s8278_s1 + $0x2b8] sm:$0xff]  ;;  %v1032_v20 = vpack.c.b16 %v976_v10, %v976_v10  ;;  %v1033_v22 = vpack.c.b16 %v977_v14, %v977_v14  ;;  %v6428_v29 = vld [vmem:[%s8278_s1 + $0x268] sm:$0xff] }
  0x19   :  { %3870 = vmatpush.bf16.msra.mxu3 %v6377_v23  ;;  %v6407_v13 = vld [vmem:[%s8278_s1 + $0x1c0] sm:$0xff]  ;;  %v6446_v19 = vld [vmem:[%s8278_s1 + $0x2f8] sm:$0xff]  ;;  %v1030_v21 = vpack.c.b16 %v974_v11, %v974_v11  ;;  %v1031_v23 = vpack.c.b16 %v975_v15, %v975_v15  ;;  %v6452_v6 = vld [vmem:[%s8278_s1 + $0x328] sm:$0xff] }
  0x1a   :  { %3832 = vmatpush.bf16.msra.mxu0 %v6352_v24  ;;  %v6421_v24 = vld [vmem:[%s8278_s1 + $0x230] sm:$0xff]  ;;  %v6419_v32 = vld [vmem:[%s8278_s1 + $0x220] sm:$0xff]  ;;  %v6418_v36 = vld [vmem:[%s8278_s1 + $0x218] sm:$0xff] }
  0x1b   :  { %3845 = vmatpush.bf16.msra.mxu1 %v6360_v25  ;;  %v6429_v25 = vld [vmem:[%s8278_s1 + $0x270] sm:$0xff]  ;;  %v6427_v33 = vld [vmem:[%s8278_s1 + $0x260] sm:$0xff]  ;;  %v6426_v37 = vld [vmem:[%s8278_s1 + $0x258] sm:$0xff] }
  0x1c   :  { %3858 = vmatpush.bf16.msra.mxu2 %v6368_v26  ;;  %v6437_v26 = vld [vmem:[%s8278_s1 + $0x2b0] sm:$0xff]  ;;  %v6460_v7 = vld [vmem:[%s8278_s1 + $0x368] sm:$0xff]  ;;  %v6451_v10 = vld [vmem:[%s8278_s1 + $0x320] sm:$0xff] }
  0x1d   :  { %3871 = vmatpush.bf16.msra.mxu3 %v6376_v27  ;;  %v6445_v27 = vld [vmem:[%s8278_s1 + $0x2f0] sm:$0xff]  ;;  %v6459_v11 = vld [vmem:[%s8278_s1 + $0x360] sm:$0xff]  ;;  %v6450_v14 = vld [vmem:[%s8278_s1 + $0x318] sm:$0xff] }
  0x1e   :  { %3833 = vmatpush.bf16.msra.mxu0 %v6351_v30  ;;  %v6436_v30 = vld [vmem:[%s8278_s1 + $0x2a8] sm:$0xff]  ;;  %v6458_v15 = vld [vmem:[%s8278_s1 + $0x358] sm:$0xff] }
  0x1f   :  { %3846 = vmatpush.bf16.msra.mxu1 %v6359_v31  ;;  %v6444_v31 = vld [vmem:[%s8278_s1 + $0x2e8] sm:$0xff] }
  0x20   :  { %3859 = vmatpush.bf16.msra.mxu2 %v6367_v34  ;;  %v6435_v34 = vld [vmem:[%s8278_s1 + $0x2a0] sm:$0xff] }
  0x21   :  { %3872 = vmatpush.bf16.msra.mxu3 %v6375_v35  ;;  %3834 = vmatmul.bf16.vlgmr.msra.gmra.mxu0 %v1026_v43  ;;  %v6443_v35 = vld [vmem:[%s8278_s1 + $0x2e0] sm:$0xff]  ;;  %v6441_v43 = vld [vmem:[%s8278_s1 + $0x2d0] sm:$0xff] }
  0x22   :  { %3878 = vmatpush.bf16.msrb.mxu0 %v6390_v38  ;;  %3847 = vmatmul.bf16.vlgmr.msra.gmra.mxu1 %v1027_v45  ;;  %v6434_v38 = vld [vmem:[%s8278_s1 + $0x298] sm:$0xff]  ;;  %v6424_v45 = vld [vmem:[%s8278_s1 + $0x248] sm:$0xff] }
  0x23   :  { %3891 = vmatpush.bf16.msrb.mxu1 %v6398_v39  ;;  %3860 = vmatmul.bf16.vlgmr.msra.gmra.mxu2 %v1028_v42  ;;  %v6442_v39 = vld [vmem:[%s8278_s1 + $0x2d8] sm:$0xff]  ;;  %v6433_v42 = vld [vmem:[%s8278_s1 + $0x290] sm:$0xff] }
  0x24   :  { %3904 = vmatpush.bf16.msrb.mxu2 %v6406_v40  ;;  %3873 = vmatmul.bf16.vlgmr.msra.gmra.mxu3 %v1029_v44  ;;  %v6417_v40 = vld [vmem:[%s8278_s1 + $0x210] sm:$0xff]  ;;  %v6416_v44 = vld [vmem:[%s8278_s1 + $0x208] sm:$0xff] }
  0x25   :  { %3917 = vmatpush.bf16.msrb.mxu3 %v6414_v41  ;;  %v6425_v41 = vld [vmem:[%s8278_s1 + $0x250] sm:$0xff] }
  0x26   :  { %3879 = vmatpush.bf16.msrb.mxu0 %v6389_v46  ;;  %v6432_v46 = vld [vmem:[%s8278_s1 + $0x288] sm:$0xff] }
  0x27   :  { %3892 = vmatpush.bf16.msrb.mxu1 %v6397_v47  ;;  %v6440_v47 = vld [vmem:[%s8278_s1 + $0x2c8] sm:$0xff] }
  0x28   :  { %3905 = vmatpush.bf16.msrb.mxu2 %v6405_v48  ;;  %v18_v48 = vld [vmem:[%s8279_s0 + $0x20] sm:$0xff] }
  0x29   :  { %3918 = vmatpush.bf16.msrb.mxu3 %v6413_v49  ;;  %v19_v49 = vld [vmem:[%s8279_s0 + $0x28] sm:$0xff] }
  0x2a   :  { %3880 = vmatpush.bf16.msrb.mxu0 %v6388_v50  ;;  %v6415_v50 = vld [vmem:[%s8278_s1 + $0x200] sm:$0xff] }
  0x2b   :  { %3893 = vmatpush.bf16.msrb.mxu1 %v6396_v51  ;;  %v6423_v51 = vld [vmem:[%s8278_s1 + $0x240] sm:$0xff] }
  0x2c   :  { %3906 = vmatpush.bf16.msrb.mxu2 %v6404_v52  ;;  %v978_v52 = vunpack.c.l.b16 %v18_v48 }
  0x2d   :  { %3919 = vmatpush.bf16.msrb.mxu3 %v6412_v53  ;;  %v980_v53 = vunpack.c.l.b16 %v19_v49 }
  0x2e   :  { %3881 = vmatpush.bf16.msrb.mxu0 %v6387_v54  ;;  %v6431_v54 = vld [vmem:[%s8278_s1 + $0x280] sm:$0xff] }
  0x2f   :  { %3894 = vmatpush.bf16.msrb.mxu1 %v6395_v55  ;;  %v6439_v55 = vld [vmem:[%s8278_s1 + $0x2c0] sm:$0xff] }
  0x30   :  { %3907 = vmatpush.bf16.msrb.mxu2 %v6403_v56  ;;  %v979_v56 = vunpack.c.h.b16 %v18_v48  ;;  %v6484_v48 = vld [vmem:[%s8278_s1 + $0x428] sm:$0xff] }
  0x31   :  { %3920 = vmatpush.bf16.msrb.mxu3 %v6411_v57  ;;  %v981_v57 = vunpack.c.h.b16 %v19_v49  ;;  %v6492_v49 = vld [vmem:[%s8278_s1 + $0x468] sm:$0xff] }
  0x32   :  { %3882 = vmatpush.bf16.msrb.mxu0 %v6386_v58  ;;  %v6454_v58 = vld [vmem:[%s8278_s1 + $0x338] sm:$0xff] }
  0x33   :  { %3895 = vmatpush.bf16.msrb.mxu1 %v6394_v59  ;;  %v6462_v59 = vld [vmem:[%s8278_s1 + $0x378] sm:$0xff] }
  0x34   :  { %3908 = vmatpush.bf16.msrb.mxu2 %v6402_v60  ;;  %v6470_v60 = vld [vmem:[%s8278_s1 + $0x3b8] sm:$0xff] }
  0x35   :  { %3921 = vmatpush.bf16.msrb.mxu3 %v6410_v61  ;;  %v6478_v61 = vld [vmem:[%s8278_s1 + $0x3f8] sm:$0xff] }
  0x36   :  { %3883 = vmatpush.bf16.msrb.mxu0 %v6385_v62  ;;  %v1034_v62 = vpack.c.b16 %v978_v52, %v978_v52  ;;  %v6483_v52 = vld [vmem:[%s8278_s1 + $0x420] sm:$0xff] }
  0x37   :  { %3896 = vmatpush.bf16.msrb.mxu1 %v6393_v63  ;;  %v1036_v63 = vpack.c.b16 %v980_v53, %v980_v53  ;;  %v6491_v53 = vld [vmem:[%s8278_s1 + $0x460] sm:$0xff] }
  0x38   :  { %3909 = vmatpush.bf16.msrb.mxu2 %v6401_v0  ;;  %v1035_v0 = vpack.c.b16 %v979_v56, %v979_v56  ;;  %v6482_v56 = vld [vmem:[%s8278_s1 + $0x418] sm:$0xff] }
  0x39   :  { %3922 = vmatpush.bf16.msrb.mxu3 %v6409_v1  ;;  %v1037_v1 = vpack.c.b16 %v981_v57, %v981_v57  ;;  %v6490_v57 = vld [vmem:[%s8278_s1 + $0x458] sm:$0xff] }
  0x3a   :  { %3884 = vmatpush.bf16.msrb.mxu0 %v6384_v2  ;;  %v6453_v2 = vld [vmem:[%s8278_s1 + $0x330] sm:$0xff] }
  0x3b   :  { %3897 = vmatpush.bf16.msrb.mxu1 %v6392_v3  ;;  %v6461_v3 = vld [vmem:[%s8278_s1 + $0x370] sm:$0xff] }
  0x3c   :  { %3910 = vmatpush.bf16.msrb.mxu2 %v6400_v4  ;;  %v6469_v4 = vld [vmem:[%s8278_s1 + $0x3b0] sm:$0xff] }
  0x3d   :  { %3923 = vmatpush.bf16.msrb.mxu3 %v6408_v5  ;;  %v6477_v5 = vld [vmem:[%s8278_s1 + $0x3f0] sm:$0xff] }
  0x3e   :  { %3885 = vmatpush.bf16.msrb.mxu0 %v6383_v8  ;;  %v6468_v8 = vld [vmem:[%s8278_s1 + $0x3a8] sm:$0xff] }
  0x3f   :  { %3898 = vmatpush.bf16.msrb.mxu1 %v6391_v9  ;;  %v6476_v9 = vld [vmem:[%s8278_s1 + $0x3e8] sm:$0xff] }
  0x40   :  { %3911 = vmatpush.bf16.msrb.mxu2 %v6399_v12  ;;  %v6467_v12 = vld [vmem:[%s8278_s1 + $0x3a0] sm:$0xff] }
  0x41   :  { %3924 = vmatpush.bf16.msrb.mxu3 %v6407_v13  ;;  %3886 = vmatmul.bf16.vlgmr.msrb.gmra.mxu0 %v1030_v21  ;;  %v6475_v13 = vld [vmem:[%s8278_s1 + $0x3e0] sm:$0xff]  ;;  %v6473_v21 = vld [vmem:[%s8278_s1 + $0x3d0] sm:$0xff] }
  0x42   :  { %3930 = vmatpush.bf16.msra.mxu0 %v6422_v16  ;;  %3899 = vmatmul.bf16.vlgmr.msrb.gmra.mxu1 %v1031_v23  ;;  %v6466_v16 = vld [vmem:[%s8278_s1 + $0x398] sm:$0xff]  ;;  %v6456_v23 = vld [vmem:[%s8278_s1 + $0x348] sm:$0xff] }
  0x43   :  { %3943 = vmatpush.bf16.msra.mxu1 %v6430_v17  ;;  %3912 = vmatmul.bf16.vlgmr.msrb.gmra.mxu2 %v1032_v20  ;;  %v6474_v17 = vld [vmem:[%s8278_s1 + $0x3d8] sm:$0xff]  ;;  %v6465_v20 = vld [vmem:[%s8278_s1 + $0x390] sm:$0xff] }
  0x44   :  { %3956 = vmatpush.bf16.msra.mxu2 %v6438_v18  ;;  %3925 = vmatmul.bf16.vlgmr.msrb.gmra.mxu3 %v1033_v22  ;;  %v6449_v18 = vld [vmem:[%s8278_s1 + $0x310] sm:$0xff]  ;;  %v6448_v22 = vld [vmem:[%s8278_s1 + $0x308] sm:$0xff] }
  0x45   :  { %3969 = vmatpush.bf16.msra.mxu3 %v6446_v19  ;;  %v6457_v19 = vld [vmem:[%s8278_s1 + $0x350] sm:$0xff] }
  0x46   :  { %3931 = vmatpush.bf16.msra.mxu0 %v6421_v24  ;;  %v6464_v24 = vld [vmem:[%s8278_s1 + $0x388] sm:$0xff] }
  0x47   :  { %3944 = vmatpush.bf16.msra.mxu1 %v6429_v25  ;;  %v6472_v25 = vld [vmem:[%s8278_s1 + $0x3c8] sm:$0xff] }
  0x48   :  { %3957 = vmatpush.bf16.msra.mxu2 %v6437_v26  ;;  %v20_v26 = vld [vmem:[%s8279_s0 + $0x30] sm:$0xff] }
  0x49   :  { %3970 = vmatpush.bf16.msra.mxu3 %v6445_v27  ;;  %v21_v27 = vld [vmem:[%s8279_s0 + $0x38] sm:$0xff] }
  0x4a   :  { %3932 = vmatpush.bf16.msra.mxu0 %v6420_v28  ;;  %v6447_v28 = vld [vmem:[%s8278_s1 + $0x300] sm:$0xff] }
  0x4b   :  { %3945 = vmatpush.bf16.msra.mxu1 %v6428_v29  ;;  %v6455_v29 = vld [vmem:[%s8278_s1 + $0x340] sm:$0xff] }
  0x4c   :  { %3958 = vmatpush.bf16.msra.mxu2 %v6436_v30  ;;  %v982_v30 = vunpack.c.l.b16 %v20_v26 }
  0x4d   :  { %3971 = vmatpush.bf16.msra.mxu3 %v6444_v31  ;;  %v984_v31 = vunpack.c.l.b16 %v21_v27 }
  0x4e   :  { %3933 = vmatpush.bf16.msra.mxu0 %v6419_v32  ;;  %v6463_v32 = vld [vmem:[%s8278_s1 + $0x380] sm:$0xff] }
  0x4f   :  { %3946 = vmatpush.bf16.msra.mxu1 %v6427_v33  ;;  %v6471_v33 = vld [vmem:[%s8278_s1 + $0x3c0] sm:$0xff] }
  0x50   :  { %3959 = vmatpush.bf16.msra.mxu2 %v6435_v34  ;;  %v983_v34 = vunpack.c.h.b16 %v20_v26  ;;  %v6516_v26 = vld [vmem:[%s8278_s1 + $0x528] sm:$0xff] }
  0x51   :  { %3972 = vmatpush.bf16.msra.mxu3 %v6443_v35  ;;  %v985_v35 = vunpack.c.h.b16 %v21_v27  ;;  %v6524_v27 = vld [vmem:[%s8278_s1 + $0x568] sm:$0xff] }
  0x52   :  { %3934 = vmatpush.bf16.msra.mxu0 %v6418_v36  ;;  %v6486_v36 = vld [vmem:[%s8278_s1 + $0x438] sm:$0xff] }
  0x53   :  { %3947 = vmatpush.bf16.msra.mxu1 %v6426_v37  ;;  %v6494_v37 = vld [vmem:[%s8278_s1 + $0x478] sm:$0xff] }
  0x54   :  { %3960 = vmatpush.bf16.msra.mxu2 %v6434_v38  ;;  %v6502_v38 = vld [vmem:[%s8278_s1 + $0x4b8] sm:$0xff] }
  0x55   :  { %3973 = vmatpush.bf16.msra.mxu3 %v6442_v39  ;;  %v6510_v39 = vld [vmem:[%s8278_s1 + $0x4f8] sm:$0xff] }
  0x56   :  { %3935 = vmatpush.bf16.msra.mxu0 %v6417_v40  ;;  %v1038_v40 = vpack.c.b16 %v982_v30, %v982_v30  ;;  %v6540_v30 = vld [vmem:[%s8278_s1 + $0x5e8] sm:$0xff] }
  0x57   :  { %3948 = vmatpush.bf16.msra.mxu1 %v6425_v41  ;;  %v1040_v41 = vpack.c.b16 %v984_v31, %v984_v31 }
  0x58   :  { %3961 = vmatpush.bf16.msra.mxu2 %v6433_v42  ;;  %v1039_v42 = vpack.c.b16 %v983_v34, %v983_v34 }
  0x59   :  { %3974 = vmatpush.bf16.msra.mxu3 %v6441_v43  ;;  %v1041_v43 = vpack.c.b16 %v985_v35, %v985_v35 }
  0x5a   :  { %3936 = vmatpush.bf16.msra.mxu0 %v6416_v44  ;;  %v6485_v44 = vld [vmem:[%s8278_s1 + $0x430] sm:$0xff] }
  0x5b   :  { %3949 = vmatpush.bf16.msra.mxu1 %v6424_v45  ;;  %v6493_v45 = vld [vmem:[%s8278_s1 + $0x470] sm:$0xff] }
  0x5c   :  { %3962 = vmatpush.bf16.msra.mxu2 %v6432_v46  ;;  %v6501_v46 = vld [vmem:[%s8278_s1 + $0x4b0] sm:$0xff] }
  0x5d   :  { %3975 = vmatpush.bf16.msra.mxu3 %v6440_v47  ;;  %v6509_v47 = vld [vmem:[%s8278_s1 + $0x4f0] sm:$0xff] }
  0x5e   :  { %3937 = vmatpush.bf16.msra.mxu0 %v6415_v50  ;;  %v6500_v50 = vld [vmem:[%s8278_s1 + $0x4a8] sm:$0xff] }
  0x5f   :  { %3950 = vmatpush.bf16.msra.mxu1 %v6423_v51  ;;  %v6508_v51 = vld [vmem:[%s8278_s1 + $0x4e8] sm:$0xff] }
  0x60   :  { %3963 = vmatpush.bf16.msra.mxu2 %v6431_v54  ;;  %v6499_v54 = vld [vmem:[%s8278_s1 + $0x4a0] sm:$0xff] }
  0x61   :  { %3976 = vmatpush.bf16.msra.mxu3 %v6439_v55  ;;  %3938 = vmatmul.bf16.vlgmr.msra.gmra.mxu0 %v1034_v62  ;;  %v6507_v55 = vld [vmem:[%s8278_s1 + $0x4e0] sm:$0xff]  ;;  %v6497_v62 = vld [vmem:[%s8278_s1 + $0x490] sm:$0xff] }
  0x62   :  { %3982 = vmatpush.bf16.msrb.mxu0 %v6454_v58  ;;  %3951 = vmatmul.bf16.vlgmr.msra.gmra.mxu1 %v1035_v0  ;;  %v6498_v58 = vld [vmem:[%s8278_s1 + $0x498] sm:$0xff]  ;;  %v6480_v0 = vld [vmem:[%s8278_s1 + $0x408] sm:$0xff] }
  0x63   :  { %3995 = vmatpush.bf16.msrb.mxu1 %v6462_v59  ;;  %3964 = vmatmul.bf16.vlgmr.msra.gmra.mxu2 %v1036_v63  ;;  %v6506_v59 = vld [vmem:[%s8278_s1 + $0x4d8] sm:$0xff]  ;;  %v6505_v63 = vld [vmem:[%s8278_s1 + $0x4d0] sm:$0xff] }
  0x64   :  { %4008 = vmatpush.bf16.msrb.mxu2 %v6470_v60  ;;  %3977 = vmatmul.bf16.vlgmr.msra.gmra.mxu3 %v1037_v1  ;;  %v6481_v60 = vld [vmem:[%s8278_s1 + $0x410] sm:$0xff]  ;;  %v6488_v1 = vld [vmem:[%s8278_s1 + $0x448] sm:$0xff] }
  0x65   :  { %4021 = vmatpush.bf16.msrb.mxu3 %v6478_v61  ;;  %v6489_v61 = vld [vmem:[%s8278_s1 + $0x450] sm:$0xff] }
  0x66   :  { %3983 = vmatpush.bf16.msrb.mxu0 %v6453_v2  ;;  %v6496_v2 = vld [vmem:[%s8278_s1 + $0x488] sm:$0xff] }
  0x67   :  { %3996 = vmatpush.bf16.msrb.mxu1 %v6461_v3  ;;  %v6504_v3 = vld [vmem:[%s8278_s1 + $0x4c8] sm:$0xff] }
  0x68   :  { %4009 = vmatpush.bf16.msrb.mxu2 %v6469_v4  ;;  %v22_v4 = vld [vmem:[%s8279_s0 + $0x40] sm:$0xff] }
  0x69   :  { %4022 = vmatpush.bf16.msrb.mxu3 %v6477_v5  ;;  %v23_v5 = vld [vmem:[%s8279_s0 + $0x48] sm:$0xff] }
  0x6a   :  { %3984 = vmatpush.bf16.msrb.mxu0 %v6452_v6  ;;  %v6479_v6 = vld [vmem:[%s8278_s1 + $0x400] sm:$0xff] }
  0x6b   :  { %3997 = vmatpush.bf16.msrb.mxu1 %v6460_v7  ;;  %v6487_v7 = vld [vmem:[%s8278_s1 + $0x440] sm:$0xff] }
  0x6c   :  { %4010 = vmatpush.bf16.msrb.mxu2 %v6468_v8  ;;  %v986_v8 = vunpack.c.l.b16 %v22_v4 }
  0x6d   :  { %4023 = vmatpush.bf16.msrb.mxu3 %v6476_v9  ;;  %v988_v9 = vunpack.c.l.b16 %v23_v5 }
  0x6e   :  { %3985 = vmatpush.bf16.msrb.mxu0 %v6451_v10  ;;  %v6495_v10 = vld [vmem:[%s8278_s1 + $0x480] sm:$0xff] }
  0x6f   :  { %3998 = vmatpush.bf16.msrb.mxu1 %v6459_v11  ;;  %v6503_v11 = vld [vmem:[%s8278_s1 + $0x4c0] sm:$0xff] }
  0x70   :  { %4011 = vmatpush.bf16.msrb.mxu2 %v6467_v12  ;;  %v987_v12 = vunpack.c.h.b16 %v22_v4 }
  0x71   :  { %4024 = vmatpush.bf16.msrb.mxu3 %v6475_v13  ;;  %v989_v13 = vunpack.c.h.b16 %v23_v5  ;;  %v6550_v5 = vld [vmem:[%s8278_s1 + $0x638] sm:$0xff] }
  0x72   :  { %3986 = vmatpush.bf16.msrb.mxu0 %v6450_v14  ;;  %v6518_v14 = vld [vmem:[%s8278_s1 + $0x538] sm:$0xff] }
  0x73   :  { %3999 = vmatpush.bf16.msrb.mxu1 %v6458_v15  ;;  %v6526_v15 = vld [vmem:[%s8278_s1 + $0x578] sm:$0xff] }
  0x74   :  { %4012 = vmatpush.bf16.msrb.mxu2 %v6466_v16  ;;  %v6534_v16 = vld [vmem:[%s8278_s1 + $0x5b8] sm:$0xff] }
  0x75   :  { %4025 = vmatpush.bf16.msrb.mxu3 %v6474_v17  ;;  %v6542_v17 = vld [vmem:[%s8278_s1 + $0x5f8] sm:$0xff] }
  0x76   :  { %3987 = vmatpush.bf16.msrb.mxu0 %v6449_v18  ;;  %v1042_v18 = vpack.c.b16 %v986_v8, %v986_v8  ;;  %v6574_v8 = vld [vmem:[%s8278_s1 + $0x6f8] sm:$0xff] }
  0x77   :  { %4000 = vmatpush.bf16.msrb.mxu1 %v6457_v19  ;;  %v1044_v19 = vpack.c.b16 %v988_v9, %v988_v9 }
  0x78   :  { %4013 = vmatpush.bf16.msrb.mxu2 %v6465_v20  ;;  %v1043_v20 = vpack.c.b16 %v987_v12, %v987_v12 }
  0x79   :  { %4026 = vmatpush.bf16.msrb.mxu3 %v6473_v21  ;;  %v1045_v21 = vpack.c.b16 %v989_v13, %v989_v13  ;;  %v6549_v13 = vld [vmem:[%s8278_s1 + $0x630] sm:$0xff] }
  0x7a   :  { %3988 = vmatpush.bf16.msrb.mxu0 %v6448_v22  ;;  %v6517_v22 = vld [vmem:[%s8278_s1 + $0x530] sm:$0xff] }
  0x7b   :  { %4001 = vmatpush.bf16.msrb.mxu1 %v6456_v23  ;;  %v6525_v23 = vld [vmem:[%s8278_s1 + $0x570] sm:$0xff] }
  0x7c   :  { %4014 = vmatpush.bf16.msrb.mxu2 %v6464_v24  ;;  %v6533_v24 = vld [vmem:[%s8278_s1 + $0x5b0] sm:$0xff] }
  0x7d   :  { %4027 = vmatpush.bf16.msrb.mxu3 %v6472_v25  ;;  %v6541_v25 = vld [vmem:[%s8278_s1 + $0x5f0] sm:$0xff] }
  0x7e   :  { %3989 = vmatpush.bf16.msrb.mxu0 %v6447_v28  ;;  %v6799_v28 = vld [vmem:[%s8280_s2] ss:$0 sm:$0xff] }
  0x7f   :  { %4002 = vmatpush.bf16.msrb.mxu1 %v6455_v29  ;;  %v6532_v29 = vld [vmem:[%s8278_s1 + $0x5a8] sm:$0xff] }
  0x80   :  { %4015 = vmatpush.bf16.msrb.mxu2 %v6463_v32  ;;  %v6515_v32 = vld [vmem:[%s8278_s1 + $0x520] sm:$0xff] }
  0x81   :  { %4028 = vmatpush.bf16.msrb.mxu3 %v6471_v33  ;;  %3990 = vmatmul.bf16.vlgmr.msrb.gmra.mxu0 %v1038_v40  ;;  %v6523_v33 = vld [vmem:[%s8278_s1 + $0x560] sm:$0xff]  ;;  %v6522_v40 = vld [vmem:[%s8278_s1 + $0x558] sm:$0xff] }
  0x82   :  { %4034 = vmatpush.bf16.msra.mxu0 %v6486_v36  ;;  %4003 = vmatmul.bf16.vlgmr.msrb.gmra.mxu1 %v1039_v42  ;;  %v6531_v36 = vld [vmem:[%s8278_s1 + $0x5a0] sm:$0xff]  ;;  %v6538_v42 = vld [vmem:[%s8278_s1 + $0x5d8] sm:$0xff] }
  0x83   :  { %4047 = vmatpush.bf16.msra.mxu1 %v6494_v37  ;;  %4016 = vmatmul.bf16.vlgmr.msrb.gmra.mxu2 %v1040_v41  ;;  %v6539_v37 = vld [vmem:[%s8278_s1 + $0x5e0] sm:$0xff]  ;;  %v6530_v41 = vld [vmem:[%s8278_s1 + $0x598] sm:$0xff] }
  0x84   :  { %4060 = vmatpush.bf16.msra.mxu2 %v6502_v38  ;;  %4029 = vmatmul.bf16.vlgmr.msrb.gmra.mxu3 %v1041_v43 }
  0x85   :  { %4073 = vmatpush.bf16.msra.mxu3 %v6510_v39  ;;  %v6514_v39 = vld [vmem:[%s8278_s1 + $0x518] sm:$0xff] }
  0x86   :  { %4035 = vmatpush.bf16.msra.mxu0 %v6485_v44 }
  0x87   :  { %4048 = vmatpush.bf16.msra.mxu1 %v6493_v45 }
  0x88   :  { %4061 = vmatpush.bf16.msra.mxu2 %v6501_v46 }
  0x89   :  { %4074 = vmatpush.bf16.msra.mxu3 %v6509_v47  ;;  %v6513_v47 = vld [vmem:[%s8278_s1 + $0x510] sm:$0xff] }
  0x8a   :  { %4036 = vmatpush.bf16.msra.mxu0 %v6484_v48  ;;  %v6521_v48 = vld [vmem:[%s8278_s1 + $0x550] sm:$0xff] }
  0x8b   :  { %4049 = vmatpush.bf16.msra.mxu1 %v6492_v49 }
  0x8c   :  { %4062 = vmatpush.bf16.msra.mxu2 %v6500_v50 }
  0x8d   :  { %4075 = vmatpush.bf16.msra.mxu3 %v6508_v51  ;;  %v6529_v51 = vld [vmem:[%s8278_s1 + $0x590] sm:$0xff] }
  0x8e   :  { %4037 = vmatpush.bf16.msra.mxu0 %v6483_v52  ;;  %v6537_v52 = vld [vmem:[%s8278_s1 + $0x5d0] sm:$0xff] }
  0x8f   :  { %4050 = vmatpush.bf16.msra.mxu1 %v6491_v53  ;;  %v6512_v53 = vld [vmem:[%s8278_s1 + $0x508] sm:$0xff] }
  0x90   :  { %4063 = vmatpush.bf16.msra.mxu2 %v6499_v54  ;;  %v6520_v54 = vld [vmem:[%s8278_s1 + $0x548] sm:$0xff] }
  0x91   :  { %4076 = vmatpush.bf16.msra.mxu3 %v6507_v55  ;;  %v6528_v55 = vld [vmem:[%s8278_s1 + $0x588] sm:$0xff] }
  0x92   :  { %4038 = vmatpush.bf16.msra.mxu0 %v6482_v56  ;;  %v6536_v56 = vld [vmem:[%s8278_s1 + $0x5c8] sm:$0xff] }
  0x93   :  { %4051 = vmatpush.bf16.msra.mxu1 %v6490_v57  ;;  %v24_v57 = vld [vmem:[%s8279_s0 + $0x50] sm:$0xff] }
  0x94   :  { %4064 = vmatpush.bf16.msra.mxu2 %v6498_v58  ;;  %v25_v58 = vld [vmem:[%s8279_s0 + $0x58] sm:$0xff] }
  0x95   :  { %4077 = vmatpush.bf16.msra.mxu3 %v6506_v59  ;;  %v993_v4 = vunpack.c.h.b16 %v25_v58 }
  0x96   :  { %4039 = vmatpush.bf16.msra.mxu0 %v6481_v60 }
  0x97   :  { %4052 = vmatpush.bf16.msra.mxu1 %v6489_v61  ;;  %v6511_v61 = vld [vmem:[%s8278_s1 + $0x500] sm:$0xff]  ;;  %v1049_v12 = vpack.c.b16 %v993_v4, %v993_v4  ;;  %v6589_v4 = vld [vmem:[%s8278_s1 + $0x770] sm:$0xff] }
  0x98   :  { %4065 = vmatpush.bf16.msra.mxu2 %v6497_v62  ;;  %v6519_v62 = vld [vmem:[%s8278_s1 + $0x540] sm:$0xff] }
  0x99   :  { %4078 = vmatpush.bf16.msra.mxu3 %v6505_v63  ;;  %v990_v63 = vunpack.c.l.b16 %v24_v57 }
  0x9a   :  { %4040 = vmatpush.bf16.msra.mxu0 %v6480_v0  ;;  %v992_v0 = vunpack.c.l.b16 %v25_v58 }
  0x9b   :  { %4053 = vmatpush.bf16.msra.mxu1 %v6488_v1  ;;  %v6527_v1 = vld [vmem:[%s8278_s1 + $0x580] sm:$0xff]  ;;  %v1046_v9 = vpack.c.b16 %v990_v63, %v990_v63 }
  0x9c   :  { %4066 = vmatpush.bf16.msra.mxu2 %v6496_v2  ;;  %v6535_v2 = vld [vmem:[%s8278_s1 + $0x5c0] sm:$0xff] }
  0x9d   :  { %4079 = vmatpush.bf16.msra.mxu3 %v6504_v3  ;;  %v991_v3 = vunpack.c.h.b16 %v24_v57 }
  0x9e   :  { %4041 = vmatpush.bf16.msra.mxu0 %v6479_v6  ;;  %v3835_v31 = vpop.f32.mrf.mxu0  ;;  %v6558_v6 = vld [vmem:[%s8278_s1 + $0x678] sm:$0xff] }
  0x9f   :  { %4054 = vmatpush.bf16.msra.mxu1 %v6487_v7  ;;  %v3836_v34 = vadd.f32 %v6799_v28, %v3835_v31  ;;  %v3848_v35 = vpop.f32.mrf.mxu1  ;;  %v6566_v7 = vld [vmem:[%s8278_s1 + $0x6b8] sm:$0xff] }
  0xa0   :  { %4067 = vmatpush.bf16.msra.mxu2 %v6495_v10  ;;  %v1048_v10 = vpack.c.b16 %v992_v0, %v992_v0  ;;  %v6562_v31 = vld [vmem:[%s8278_s1 + $0x698] sm:$0xff] }
  0xa1   :  { %4080 = vmatpush.bf16.msra.mxu3 %v6503_v11  ;;  %4042 = vmatmul.bf16.vlgmr.msra.gmra.mxu0 %v1042_v18  ;;  %v3849_v38 = vadd.f32 %v3848_v35, %v3836_v34  ;;  %v1047_v11 = vpack.c.b16 %v991_v3, %v991_v3  ;;  %v6556_v18 = vld [vmem:[%s8278_s1 + $0x668] sm:$0xff]  ;;  %v6581_v3 = vld [vmem:[%s8278_s1 + $0x730] sm:$0xff] }
  0xa2   :  { %4086 = vmatpush.bf16.msrb.mxu0 %v6518_v14  ;;  %4055 = vmatmul.bf16.vlgmr.msra.gmra.mxu1 %v1043_v20  ;;  %v6557_v14 = vld [vmem:[%s8278_s1 + $0x670] sm:$0xff]  ;;  %v6572_v20 = vld [vmem:[%s8278_s1 + $0x6e8] sm:$0xff] }
  0xa3   :  { %4099 = vmatpush.bf16.msrb.mxu1 %v6526_v15  ;;  %4068 = vmatmul.bf16.vlgmr.msra.gmra.mxu2 %v1044_v19  ;;  %v6565_v15 = vld [vmem:[%s8278_s1 + $0x6b0] sm:$0xff]  ;;  %v6564_v19 = vld [vmem:[%s8278_s1 + $0x6a8] sm:$0xff] }
  0xa4   :  { %4112 = vmatpush.bf16.msrb.mxu2 %v6534_v16  ;;  %4081 = vmatmul.bf16.vlgmr.msra.gmra.mxu3 %v1045_v21  ;;  %v6573_v16 = vld [vmem:[%s8278_s1 + $0x6f0] sm:$0xff] }
  0xa5   :  { %4125 = vmatpush.bf16.msrb.mxu3 %v6542_v17  ;;  %v6548_v17 = vld [vmem:[%s8278_s1 + $0x628] sm:$0xff] }
  0xa6   :  { %4087 = vmatpush.bf16.msrb.mxu0 %v6517_v22  ;;  %v3861_v43 = vpop.f32.mrf.mxu2  ;;  %v3837_v46 = vpop.f32.mrf.mxu0  ;;  %v6547_v22 = vld [vmem:[%s8278_s1 + $0x620] sm:$0xff] }
  0xa7   :  { %4100 = vmatpush.bf16.msrb.mxu1 %v6525_v23  ;;  %v3862_v44 = vadd.f32 %v3861_v43, %v3849_v38  ;;  %v3874_v45 = vpop.f32.mrf.mxu3  ;;  %v3850_v50 = vpop.f32.mrf.mxu1  ;;  %v6555_v23 = vld [vmem:[%s8278_s1 + $0x660] sm:$0xff]  ;;  %v6553_v38 = vld [vmem:[%s8278_s1 + $0x650] sm:$0xff]  ;;  %v6544_v43 = vld [vmem:[%s8278_s1 + $0x608] sm:$0xff] }
  0xa8   :  { %4113 = vmatpush.bf16.msrb.mxu2 %v6533_v24  ;;  %v6568_v46 = vld [vmem:[%s8278_s1 + $0x6c8] sm:$0xff] }
  0xa9   :  { %4126 = vmatpush.bf16.msrb.mxu3 %v6541_v25  ;;  %v7399_v49 = vadd.f32 %v3874_v45, %v3862_v44  ;;  %v6552_v44 = vld [vmem:[%s8278_s1 + $0x648] sm:$0xff] }
  0xaa   :  { %4088 = vmatpush.bf16.msrb.mxu0 %v6516_v26  ;;  %v6563_v26 = vld [vmem:[%s8278_s1 + $0x6a0] sm:$0xff]  ;;  %v6560_v45 = vld [vmem:[%s8278_s1 + $0x688] sm:$0xff] }
  0xab   :  { %4101 = vmatpush.bf16.msrb.mxu1 %v6524_v27  ;;  %v6571_v27 = vld [vmem:[%s8278_s1 + $0x6e0] sm:$0xff] }
  0xac   :  { %4114 = vmatpush.bf16.msrb.mxu2 %v6532_v29  ;;  %v6546_v29 = vld [vmem:[%s8278_s1 + $0x618] sm:$0xff] }
  0xad   :  { %4127 = vmatpush.bf16.msrb.mxu3 %v6540_v30  ;;  %v6554_v30 = vld [vmem:[%s8278_s1 + $0x658] sm:$0xff] }
  0xae   :  { %4089 = vmatpush.bf16.msrb.mxu0 %v6515_v32  ;;  %v3863_v59 = vpop.f32.mrf.mxu2  ;;  %v6570_v32 = vld [vmem:[%s8278_s1 + $0x6d8] sm:$0xff] }
  0xaf   :  { %4102 = vmatpush.bf16.msrb.mxu1 %v6523_v33  ;;  %v3876_v60 = vpop.f32.mrf.mxu3  ;;  %v6582_v59 = vld [vmem:[%s8278_s1 + $0x738] sm:$0xff] }
  0xb0   :  { %4115 = vmatpush.bf16.msrb.mxu2 %v6531_v36  ;;  %v6590_v60 = vld [vmem:[%s8278_s1 + $0x778] sm:$0xff] }
  0xb1   :  { %4128 = vmatpush.bf16.msrb.mxu3 %v6539_v37  ;;  %v6545_v37 = vld [vmem:[%s8278_s1 + $0x610] sm:$0xff] }
  0xb2   :  { %4090 = vmatpush.bf16.msrb.mxu0 %v6514_v39 }
  0xb3   :  { %4103 = vmatpush.bf16.msrb.mxu1 %v6522_v40 }
  0xb4   :  { %4116 = vmatpush.bf16.msrb.mxu2 %v6530_v41  ;;  %v6561_v41 = vld [vmem:[%s8278_s1 + $0x690] sm:$0xff] }
  0xb5   :  { %4129 = vmatpush.bf16.msrb.mxu3 %v6538_v42  ;;  %v6569_v42 = vld [vmem:[%s8278_s1 + $0x6d0] sm:$0xff] }
  0xb6   :  { %4091 = vmatpush.bf16.msrb.mxu0 %v6513_v47  ;;  %v26_v47 = vld [vmem:[%s8279_s0 + $0x60] sm:$0xff] }
  0xb7   :  { %4104 = vmatpush.bf16.msrb.mxu1 %v6521_v48  ;;  %v27_v48 = vld [vmem:[%s8279_s0 + $0x68] sm:$0xff]  ;;  %v995_v57 = vunpack.c.h.b16 %v26_v47 }
  0xb8   :  { %4117 = vmatpush.bf16.msrb.mxu2 %v6529_v51  ;;  %v6543_v51 = vld [vmem:[%s8278_s1 + $0x600] sm:$0xff]  ;;  %v997_v58 = vunpack.c.h.b16 %v27_v48 }
  0xb9   :  { %4130 = vmatpush.bf16.msrb.mxu3 %v6537_v52  ;;  %v6551_v52 = vld [vmem:[%s8278_s1 + $0x640] sm:$0xff] }
  0xba   :  { %4092 = vmatpush.bf16.msrb.mxu0 %v6512_v53  ;;  %v994_v53 = vunpack.c.l.b16 %v26_v47 }
  0xbb   :  { %4105 = vmatpush.bf16.msrb.mxu1 %v6520_v54  ;;  %v996_v54 = vunpack.c.l.b16 %v27_v48 }
  0xbc   :  { %4118 = vmatpush.bf16.msrb.mxu2 %v6528_v55  ;;  %v6559_v55 = vld [vmem:[%s8278_s1 + $0x680] sm:$0xff]  ;;  %v1050_v63 = vpack.c.b16 %v994_v53, %v994_v53 }
  0xbd   :  { %4131 = vmatpush.bf16.msrb.mxu3 %v6536_v56  ;;  %v6567_v56 = vld [vmem:[%s8278_s1 + $0x6c0] sm:$0xff]  ;;  %v1052_v0 = vpack.c.b16 %v996_v54, %v996_v54 }
  0xbe   :  { %4093 = vmatpush.bf16.msrb.mxu0 %v6511_v61  ;;  %v3887_v21 = vpop.f32.mrf.mxu0  ;;  %v6598_v61 = vld [vmem:[%s8278_s1 + $0x7b8] sm:$0xff] }
  0xbf   :  { %4106 = vmatpush.bf16.msrb.mxu1 %v6519_v62  ;;  %v3888_v24 = vadd.f32 %v3887_v21, %v7399_v49  ;;  %v3900_v25 = vpop.f32.mrf.mxu1  ;;  %v6606_v62 = vld [vmem:[%s8278_s1 + $0x7f8] sm:$0xff] }
  0xc0   :  { %4119 = vmatpush.bf16.msrb.mxu2 %v6527_v1  ;;  %v1051_v1 = vpack.c.b16 %v995_v57, %v995_v57  ;;  %v6594_v21 = vld [vmem:[%s8278_s1 + $0x798] sm:$0xff]  ;;  %v6613_v57 = vld [vmem:[%s8278_s1 + $0x830] sm:$0xff] }
  0xc1   :  { %4132 = vmatpush.bf16.msrb.mxu3 %v6535_v2  ;;  %4094 = vmatmul.bf16.vlgmr.msrb.gmra.mxu0 %v1046_v9  ;;  %v3901_v28 = vadd.f32 %v3900_v25, %v3888_v24  ;;  %v1053_v2 = vpack.c.b16 %v997_v58, %v997_v58  ;;  %v6596_v9 = vld [vmem:[%s8278_s1 + $0x7a8] sm:$0xff]  ;;  %v6621_v58 = vld [vmem:[%s8278_s1 + $0x870] sm:$0xff] }
  0xc2   :  { %4138 = vmatpush.bf16.msra.mxu0 %v6550_v5  ;;  %4107 = vmatmul.bf16.vlgmr.msrb.gmra.mxu1 %v1047_v11  ;;  %v6597_v5 = vld [vmem:[%s8278_s1 + $0x7b0] sm:$0xff] }
  0xc3   :  { %4151 = vmatpush.bf16.msra.mxu1 %v6558_v6  ;;  %4120 = vmatmul.bf16.vlgmr.msrb.gmra.mxu2 %v1048_v10  ;;  %v6605_v6 = vld [vmem:[%s8278_s1 + $0x7f0] sm:$0xff]  ;;  %v6604_v10 = vld [vmem:[%s8278_s1 + $0x7e8] sm:$0xff] }
  0xc4   :  { %4164 = vmatpush.bf16.msra.mxu2 %v6566_v7  ;;  %4133 = vmatmul.bf16.vlgmr.msrb.gmra.mxu3 %v1049_v12  ;;  %v6580_v7 = vld [vmem:[%s8278_s1 + $0x728] sm:$0xff] }
  0xc5   :  { %4177 = vmatpush.bf16.msra.mxu3 %v6574_v8  ;;  %v6588_v8 = vld [vmem:[%s8278_s1 + $0x768] sm:$0xff] }
  0xc6   :  { %4139 = vmatpush.bf16.msra.mxu0 %v6549_v13  ;;  %v3913_v33 = vpop.f32.mrf.mxu2  ;;  %v3889_v36 = vpop.f32.mrf.mxu0  ;;  %v6579_v13 = vld [vmem:[%s8278_s1 + $0x720] sm:$0xff] }
  0xc7   :  { %4152 = vmatpush.bf16.msra.mxu1 %v6557_v14  ;;  %v3914_v34 = vadd.f32 %v3913_v33, %v3901_v28  ;;  %v3926_v35 = vpop.f32.mrf.mxu3  ;;  %v3902_v40 = vpop.f32.mrf.mxu1  ;;  %v6587_v14 = vld [vmem:[%s8278_s1 + $0x760] sm:$0xff]  ;;  %v6577_v28 = vld [vmem:[%s8278_s1 + $0x710] sm:$0xff]  ;;  %v6576_v33 = vld [vmem:[%s8278_s1 + $0x708] sm:$0xff] }
  0xc8   :  { %4165 = vmatpush.bf16.msra.mxu2 %v6565_v15  ;;  %v6600_v36 = vld [vmem:[%s8278_s1 + $0x7c8] sm:$0xff] }
  0xc9   :  { %4178 = vmatpush.bf16.msra.mxu3 %v6573_v16  ;;  %v7504_v39 = vadd.f32 %v3926_v35, %v3914_v34  ;;  %v6595_v16 = vld [vmem:[%s8278_s1 + $0x7a0] sm:$0xff]  ;;  %v6584_v34 = vld [vmem:[%s8278_s1 + $0x748] sm:$0xff] }
  0xca   :  { %4140 = vmatpush.bf16.msra.mxu0 %v6548_v17  ;;  %v6603_v17 = vld [vmem:[%s8278_s1 + $0x7e0] sm:$0xff]  ;;  %v6592_v35 = vld [vmem:[%s8278_s1 + $0x788] sm:$0xff] }
  0xcb   :  { %4153 = vmatpush.bf16.msra.mxu1 %v6556_v18 }
  0xcc   :  { %4166 = vmatpush.bf16.msra.mxu2 %v6564_v19  ;;  %v6578_v19 = vld [vmem:[%s8278_s1 + $0x718] sm:$0xff] }
  0xcd   :  { %4179 = vmatpush.bf16.msra.mxu3 %v6572_v20  ;;  %v6586_v20 = vld [vmem:[%s8278_s1 + $0x758] sm:$0xff] }
  0xce   :  { %4141 = vmatpush.bf16.msra.mxu0 %v6547_v22  ;;  %v3915_v49 = vpop.f32.mrf.mxu2  ;;  %v6602_v22 = vld [vmem:[%s8278_s1 + $0x7d8] sm:$0xff] }
  0xcf   :  { %4154 = vmatpush.bf16.msra.mxu1 %v6555_v23  ;;  %v3928_v50 = vpop.f32.mrf.mxu3  ;;  %v6614_v49 = vld [vmem:[%s8278_s1 + $0x838] sm:$0xff] }
  0xd0   :  { %4167 = vmatpush.bf16.msra.mxu2 %v6563_v26  ;;  %v6622_v50 = vld [vmem:[%s8278_s1 + $0x878] sm:$0xff] }
  0xd1   :  { %4180 = vmatpush.bf16.msra.mxu3 %v6571_v27 }
  0xd2   :  { %4142 = vmatpush.bf16.msra.mxu0 %v6546_v29  ;;  %v6585_v29 = vld [vmem:[%s8278_s1 + $0x750] sm:$0xff] }
  0xd3   :  { %4155 = vmatpush.bf16.msra.mxu1 %v6554_v30 }
  0xd4   :  { %4168 = vmatpush.bf16.msra.mxu2 %v6562_v31  ;;  %v6593_v31 = vld [vmem:[%s8278_s1 + $0x790] sm:$0xff] }
  0xd5   :  { %4181 = vmatpush.bf16.msra.mxu3 %v6570_v32  ;;  %v6601_v32 = vld [vmem:[%s8278_s1 + $0x7d0] sm:$0xff] }
  0xd6   :  { %4143 = vmatpush.bf16.msra.mxu0 %v6545_v37  ;;  %v28_v37 = vld [vmem:[%s8279_s0 + $0x70] sm:$0xff] }
  0xd7   :  { %4156 = vmatpush.bf16.msra.mxu1 %v6553_v38  ;;  %v29_v38 = vld [vmem:[%s8279_s0 + $0x78] sm:$0xff]  ;;  %v999_v47 = vunpack.c.h.b16 %v28_v37 }
  0xd8   :  { %4169 = vmatpush.bf16.msra.mxu2 %v6561_v41  ;;  %v6575_v41 = vld [vmem:[%s8278_s1 + $0x700] sm:$0xff]  ;;  %v1001_v48 = vunpack.c.h.b16 %v29_v38 }
  0xd9   :  { %4182 = vmatpush.bf16.msra.mxu3 %v6569_v42  ;;  %v6583_v42 = vld [vmem:[%s8278_s1 + $0x740] sm:$0xff] }
  0xda   :  { %4144 = vmatpush.bf16.msra.mxu0 %v6544_v43  ;;  %v998_v43 = vunpack.c.l.b16 %v28_v37 }
  0xdb   :  { %4157 = vmatpush.bf16.msra.mxu1 %v6552_v44  ;;  %v1000_v44 = vunpack.c.l.b16 %v29_v38 }
  0xdc   :  { %4170 = vmatpush.bf16.msra.mxu2 %v6560_v45  ;;  %v6591_v45 = vld [vmem:[%s8278_s1 + $0x780] sm:$0xff]  ;;  %v1054_v53 = vpack.c.b16 %v998_v43, %v998_v43 }
  0xdd   :  { %4183 = vmatpush.bf16.msra.mxu3 %v6568_v46  ;;  %v6599_v46 = vld [vmem:[%s8278_s1 + $0x7c0] sm:$0xff]  ;;  %v1056_v54 = vpack.c.b16 %v1000_v44, %v1000_v44 }
  0xde   :  { %4145 = vmatpush.bf16.msra.mxu0 %v6543_v51  ;;  %v3939_v11 = vpop.f32.mrf.mxu0  ;;  %v6630_v51 = vld [vmem:[%s8278_s1 + $0x8b8] sm:$0xff] }
  0xdf   :  { %4158 = vmatpush.bf16.msra.mxu1 %v6551_v52  ;;  %v3940_v12 = vadd.f32 %v3939_v11, %v7504_v39  ;;  %v3952_v15 = vpop.f32.mrf.mxu1  ;;  %v6638_v52 = vld [vmem:[%s8278_s1 + $0x8f8] sm:$0xff] }
  0xe0   :  { %4171 = vmatpush.bf16.msra.mxu2 %v6559_v55  ;;  %v1055_v55 = vpack.c.b16 %v999_v47, %v999_v47  ;;  %v6626_v11 = vld [vmem:[%s8278_s1 + $0x898] sm:$0xff]  ;;  %v6645_v47 = vld [vmem:[%s8278_s1 + $0x930] sm:$0xff] }
  0xe1   :  { %4184 = vmatpush.bf16.msra.mxu3 %v6567_v56  ;;  %4146 = vmatmul.bf16.vlgmr.msra.gmra.mxu0 %v1050_v63  ;;  %v3953_v18 = vadd.f32 %v3952_v15, %v3940_v12  ;;  %v1057_v56 = vpack.c.b16 %v1001_v48, %v1001_v48  ;;  %v6628_v63 = vld [vmem:[%s8278_s1 + $0x8a8] sm:$0xff]  ;;  %v6634_v12 = vld [vmem:[%s8278_s1 + $0x8d8] sm:$0xff]  ;;  %v6653_v48 = vld [vmem:[%s8278_s1 + $0x970] sm:$0xff] }
  0xe2   :  { %4190 = vmatpush.bf16.msrb.mxu0 %v6582_v59  ;;  %4159 = vmatmul.bf16.vlgmr.msra.gmra.mxu1 %v1051_v1  ;;  %v6629_v59 = vld [vmem:[%s8278_s1 + $0x8b0] sm:$0xff] }
  0xe3   :  { %4203 = vmatpush.bf16.msrb.mxu1 %v6590_v60  ;;  %4172 = vmatmul.bf16.vlgmr.msra.gmra.mxu2 %v1052_v0  ;;  %v6637_v60 = vld [vmem:[%s8278_s1 + $0x8f0] sm:$0xff]  ;;  %v6636_v0 = vld [vmem:[%s8278_s1 + $0x8e8] sm:$0xff] }
  0xe4   :  { %4216 = vmatpush.bf16.msrb.mxu2 %v6598_v61  ;;  %4185 = vmatmul.bf16.vlgmr.msra.gmra.mxu3 %v1053_v2  ;;  %v6612_v61 = vld [vmem:[%s8278_s1 + $0x828] sm:$0xff] }
  0xe5   :  { %4229 = vmatpush.bf16.msrb.mxu3 %v6606_v62  ;;  %v6620_v62 = vld [vmem:[%s8278_s1 + $0x868] sm:$0xff] }
  0xe6   :  { %4191 = vmatpush.bf16.msrb.mxu0 %v6581_v3  ;;  %v3965_v23 = vpop.f32.mrf.mxu2  ;;  %v3941_v26 = vpop.f32.mrf.mxu0  ;;  %v6611_v3 = vld [vmem:[%s8278_s1 + $0x820] sm:$0xff] }
  0xe7   :  { %4204 = vmatpush.bf16.msrb.mxu1 %v6589_v4  ;;  %v3966_v24 = vadd.f32 %v3965_v23, %v3953_v18  ;;  %v3978_v25 = vpop.f32.mrf.mxu3  ;;  %v3954_v30 = vpop.f32.mrf.mxu1  ;;  %v6619_v4 = vld [vmem:[%s8278_s1 + $0x860] sm:$0xff]  ;;  %v6609_v18 = vld [vmem:[%s8278_s1 + $0x810] sm:$0xff]  ;;  %v6608_v23 = vld [vmem:[%s8278_s1 + $0x808] sm:$0xff] }
  0xe8   :  { %4217 = vmatpush.bf16.msrb.mxu2 %v6597_v5  ;;  %v6632_v26 = vld [vmem:[%s8278_s1 + $0x8c8] sm:$0xff] }
  0xe9   :  { %4230 = vmatpush.bf16.msrb.mxu3 %v6605_v6  ;;  %v7603_v27 = vadd.f32 %v3978_v25, %v3966_v24  ;;  %v6627_v6 = vld [vmem:[%s8278_s1 + $0x8a0] sm:$0xff]  ;;  %v6616_v24 = vld [vmem:[%s8278_s1 + $0x848] sm:$0xff] }
  0xea   :  { %4192 = vmatpush.bf16.msrb.mxu0 %v6580_v7  ;;  %v6635_v7 = vld [vmem:[%s8278_s1 + $0x8e0] sm:$0xff]  ;;  %v6624_v25 = vld [vmem:[%s8278_s1 + $0x888] sm:$0xff] }
  0xeb   :  { %4205 = vmatpush.bf16.msrb.mxu1 %v6588_v8 }
  0xec   :  { %4218 = vmatpush.bf16.msrb.mxu2 %v6596_v9  ;;  %v6610_v9 = vld [vmem:[%s8278_s1 + $0x818] sm:$0xff] }
  0xed   :  { %4231 = vmatpush.bf16.msrb.mxu3 %v6604_v10  ;;  %v6618_v10 = vld [vmem:[%s8278_s1 + $0x858] sm:$0xff] }
  0xee   :  { %4193 = vmatpush.bf16.msrb.mxu0 %v6579_v13  ;;  %v3967_v39 = vpop.f32.mrf.mxu2 }
  0xef   :  { %4206 = vmatpush.bf16.msrb.mxu1 %v6587_v14  ;;  %v3980_v40 = vpop.f32.mrf.mxu3  ;;  %v6646_v39 = vld [vmem:[%s8278_s1 + $0x938] sm:$0xff] }
  0xf0   :  { %4219 = vmatpush.bf16.msrb.mxu2 %v6595_v16  ;;  %v6654_v40 = vld [vmem:[%s8278_s1 + $0x978] sm:$0xff] }
  0xf1   :  { %4232 = vmatpush.bf16.msrb.mxu3 %v6603_v17 }
  0xf2   :  { %4194 = vmatpush.bf16.msrb.mxu0 %v6578_v19  ;;  %v6617_v19 = vld [vmem:[%s8278_s1 + $0x850] sm:$0xff] }
  0xf3   :  { %4207 = vmatpush.bf16.msrb.mxu1 %v6586_v20 }
  0xf4   :  { %4220 = vmatpush.bf16.msrb.mxu2 %v6594_v21  ;;  %v6625_v21 = vld [vmem:[%s8278_s1 + $0x890] sm:$0xff] }
  0xf5   :  { %4233 = vmatpush.bf16.msrb.mxu3 %v6602_v22  ;;  %v6633_v22 = vld [vmem:[%s8278_s1 + $0x8d0] sm:$0xff] }
  0xf6   :  { %4195 = vmatpush.bf16.msrb.mxu0 %v6577_v28  ;;  %v31_v28 = vld [vmem:[%s8279_s0 + $0x88] sm:$0xff] }
  0xf7   :  { %4208 = vmatpush.bf16.msrb.mxu1 %v6585_v29  ;;  %v1005_v38 = vunpack.c.h.b16 %v31_v28 }
  0xf8   :  { %4221 = vmatpush.bf16.msrb.mxu2 %v6593_v31  ;;  %v6607_v31 = vld [vmem:[%s8278_s1 + $0x800] sm:$0xff] }
  0xf9   :  { %4234 = vmatpush.bf16.msrb.mxu3 %v6601_v32  ;;  %v6615_v32 = vld [vmem:[%s8278_s1 + $0x840] sm:$0xff] }
  0xfa   :  { %4196 = vmatpush.bf16.msrb.mxu0 %v6576_v33 }
  0xfb   :  { %4209 = vmatpush.bf16.msrb.mxu1 %v6584_v34  ;;  %v1004_v34 = vunpack.c.l.b16 %v31_v28 }
  0xfc   :  { %4222 = vmatpush.bf16.msrb.mxu2 %v6592_v35  ;;  %v6623_v35 = vld [vmem:[%s8278_s1 + $0x880] sm:$0xff] }
  0xfd   :  { %4235 = vmatpush.bf16.msrb.mxu3 %v6600_v36  ;;  %v6631_v36 = vld [vmem:[%s8278_s1 + $0x8c0] sm:$0xff]  ;;  %v1060_v44 = vpack.c.b16 %v1004_v34, %v1004_v34 }
  0xfe   :  { %4197 = vmatpush.bf16.msrb.mxu0 %v6575_v41  ;;  %v3991_v1 = vpop.f32.mrf.mxu0  ;;  %v6662_v41 = vld [vmem:[%s8278_s1 + $0x9b8] sm:$0xff] }
  0xff   :  { %4210 = vmatpush.bf16.msrb.mxu1 %v6583_v42  ;;  %v3992_v2 = vadd.f32 %v3991_v1, %v7603_v27  ;;  %v4004_v5 = vpop.f32.mrf.mxu1  ;;  %v30_v27 = vld [vmem:[%s8279_s0 + $0x80] sm:$0xff]  ;;  %v6670_v42 = vld [vmem:[%s8278_s1 + $0x9f8] sm:$0xff] }
 0x100   :  { %4223 = vmatpush.bf16.msrb.mxu2 %v6591_v45  ;;  %v1002_v33 = vunpack.c.l.b16 %v30_v27  ;;  %v1003_v37 = vunpack.c.h.b16 %v30_v27  ;;  %v6658_v1 = vld [vmem:[%s8278_s1 + $0x998] sm:$0xff] }
 0x101   :  { %4236 = vmatpush.bf16.msrb.mxu3 %v6599_v46  ;;  %4198 = vmatmul.bf16.vlgmr.msrb.gmra.mxu0 %v1054_v53  ;;  %v4005_v8 = vadd.f32 %v4004_v5, %v3992_v2  ;;  %v1061_v46 = vpack.c.b16 %v1005_v38, %v1005_v38  ;;  %v6660_v53 = vld [vmem:[%s8278_s1 + $0x9a8] sm:$0xff]  ;;  %v6666_v2 = vld [vmem:[%s8278_s1 + $0x9d8] sm:$0xff]  ;;  %v6685_v38 = vld [vmem:[%s8278_s1 + $0xa70] sm:$0xff] }
 0x102   :  { %4242 = vmatpush.bf16.msra.mxu0 %v6614_v49  ;;  %4211 = vmatmul.bf16.vlgmr.msrb.gmra.mxu1 %v1055_v55  ;;  %v1058_v43 = vpack.c.b16 %v1002_v33, %v1002_v33  ;;  %v1059_v45 = vpack.c.b16 %v1003_v37, %v1003_v37  ;;  %v6661_v49 = vld [vmem:[%s8278_s1 + $0x9b0] sm:$0xff] }
 0x103   :  { %4255 = vmatpush.bf16.msra.mxu1 %v6622_v50  ;;  %4224 = vmatmul.bf16.vlgmr.msrb.gmra.mxu2 %v1056_v54  ;;  %v6669_v50 = vld [vmem:[%s8278_s1 + $0x9f0] sm:$0xff]  ;;  %v6668_v54 = vld [vmem:[%s8278_s1 + $0x9e8] sm:$0xff] }
 0x104   :  { %4268 = vmatpush.bf16.msra.mxu2 %v6630_v51  ;;  %4237 = vmatmul.bf16.vlgmr.msrb.gmra.mxu3 %v1057_v56  ;;  %v6644_v51 = vld [vmem:[%s8278_s1 + $0x928] sm:$0xff]  ;;  %v6677_v37 = vld [vmem:[%s8278_s1 + $0xa30] sm:$0xff] }
 0x105   :  { %4281 = vmatpush.bf16.msra.mxu3 %v6638_v52  ;;  %v6652_v52 = vld [vmem:[%s8278_s1 + $0x968] sm:$0xff] }
 0x106   :  { %4243 = vmatpush.bf16.msra.mxu0 %v6613_v57  ;;  %v4017_v13 = vpop.f32.mrf.mxu2  ;;  %v3993_v16 = vpop.f32.mrf.mxu0  ;;  %v6643_v57 = vld [vmem:[%s8278_s1 + $0x920] sm:$0xff] }
 0x107   :  { %4256 = vmatpush.bf16.msra.mxu1 %v6621_v58  ;;  %v4018_v14 = vadd.f32 %v4017_v13, %v4005_v8  ;;  %v4030_v15 = vpop.f32.mrf.mxu3  ;;  %v4006_v20 = vpop.f32.mrf.mxu1  ;;  %v6651_v58 = vld [vmem:[%s8278_s1 + $0x960] sm:$0xff]  ;;  %v6641_v8 = vld [vmem:[%s8278_s1 + $0x910] sm:$0xff]  ;;  %v6640_v13 = vld [vmem:[%s8278_s1 + $0x908] sm:$0xff] }
 0x108   :  { %4269 = vmatpush.bf16.msra.mxu2 %v6629_v59  ;;  %v6664_v16 = vld [vmem:[%s8278_s1 + $0x9c8] sm:$0xff] }
 0x109   :  { %4282 = vmatpush.bf16.msra.mxu3 %v6637_v60  ;;  %v7708_v17 = vadd.f32 %v4030_v15, %v4018_v14  ;;  %v6659_v60 = vld [vmem:[%s8278_s1 + $0x9a0] sm:$0xff]  ;;  %v6648_v14 = vld [vmem:[%s8278_s1 + $0x948] sm:$0xff] }
 0x10a   :  { %4244 = vmatpush.bf16.msra.mxu0 %v6612_v61  ;;  %v6667_v61 = vld [vmem:[%s8278_s1 + $0x9e0] sm:$0xff]  ;;  %v6656_v15 = vld [vmem:[%s8278_s1 + $0x988] sm:$0xff] }
 0x10b   :  { %4257 = vmatpush.bf16.msra.mxu1 %v6620_v62 }
 0x10c   :  { %4270 = vmatpush.bf16.msra.mxu2 %v6628_v63  ;;  %v6642_v63 = vld [vmem:[%s8278_s1 + $0x918] sm:$0xff] }
 0x10d   :  { %4283 = vmatpush.bf16.msra.mxu3 %v6636_v0  ;;  %v6650_v0 = vld [vmem:[%s8278_s1 + $0x958] sm:$0xff] }
 0x10e   :  { %4245 = vmatpush.bf16.msra.mxu0 %v6611_v3  ;;  %v4019_v29 = vpop.f32.mrf.mxu2 }
 0x10f   :  { %4258 = vmatpush.bf16.msra.mxu1 %v6619_v4  ;;  %v4032_v30 = vpop.f32.mrf.mxu3  ;;  %v6678_v29 = vld [vmem:[%s8278_s1 + $0xa38] sm:$0xff] }
 0x110   :  { %4271 = vmatpush.bf16.msra.mxu2 %v6627_v6  ;;  %v6686_v30 = vld [vmem:[%s8278_s1 + $0xa78] sm:$0xff] }
 0x111   :  { %4284 = vmatpush.bf16.msra.mxu3 %v6635_v7 }
 0x112   :  { %4246 = vmatpush.bf16.msra.mxu0 %v6610_v9  ;;  %v6649_v9 = vld [vmem:[%s8278_s1 + $0x950] sm:$0xff] }
 0x113   :  { %4259 = vmatpush.bf16.msra.mxu1 %v6618_v10 }
 0x114   :  { %4272 = vmatpush.bf16.msra.mxu2 %v6626_v11  ;;  %v6657_v11 = vld [vmem:[%s8278_s1 + $0x990] sm:$0xff] }
 0x115   :  { %4285 = vmatpush.bf16.msra.mxu3 %v6634_v12  ;;  %v6665_v12 = vld [vmem:[%s8278_s1 + $0x9d0] sm:$0xff] }
 0x116   :  { %4247 = vmatpush.bf16.msra.mxu0 %v6609_v18  ;;  %v33_v18 = vld [vmem:[%s8279_s0 + $0x98] sm:$0xff] }
 0x117   :  { %4260 = vmatpush.bf16.msra.mxu1 %v6617_v19  ;;  %v1009_v28 = vunpack.c.h.b16 %v33_v18 }
 0x118   :  { %4273 = vmatpush.bf16.msra.mxu2 %v6625_v21  ;;  %v6639_v21 = vld [vmem:[%s8278_s1 + $0x900] sm:$0xff] }
 0x119   :  { %4286 = vmatpush.bf16.msra.mxu3 %v6633_v22  ;;  %v6647_v22 = vld [vmem:[%s8278_s1 + $0x940] sm:$0xff] }
 0x11a   :  { %4248 = vmatpush.bf16.msra.mxu0 %v6608_v23 }
 0x11b   :  { %4261 = vmatpush.bf16.msra.mxu1 %v6616_v24  ;;  %v1008_v24 = vunpack.c.l.b16 %v33_v18 }
 0x11c   :  { %4274 = vmatpush.bf16.msra.mxu2 %v6624_v25  ;;  %v6655_v25 = vld [vmem:[%s8278_s1 + $0x980] sm:$0xff] }
 0x11d   :  { %4287 = vmatpush.bf16.msra.mxu3 %v6632_v26  ;;  %v6663_v26 = vld [vmem:[%s8278_s1 + $0x9c0] sm:$0xff]  ;;  %v1064_v34 = vpack.c.b16 %v1008_v24, %v1008_v24 }
 0x11e   :  { %4249 = vmatpush.bf16.msra.mxu0 %v6607_v31  ;;  %v4043_v55 = vpop.f32.mrf.mxu0  ;;  %v6694_v31 = vld [vmem:[%s8278_s1 + $0xab8] sm:$0xff] }
 0x11f   :  { %4262 = vmatpush.bf16.msra.mxu1 %v6615_v32  ;;  %v4044_v56 = vadd.f32 %v4043_v55, %v7708_v17  ;;  %v4056_v59 = vpop.f32.mrf.mxu1  ;;  %v32_v17 = vld [vmem:[%s8279_s0 + $0x90] sm:$0xff]  ;;  %v6702_v32 = vld [vmem:[%s8278_s1 + $0xaf8] sm:$0xff] }
 0x120   :  { %4275 = vmatpush.bf16.msra.mxu2 %v6623_v35  ;;  %v1006_v23 = vunpack.c.l.b16 %v32_v17  ;;  %v1007_v27 = vunpack.c.h.b16 %v32_v17  ;;  %v6690_v55 = vld [vmem:[%s8278_s1 + $0xa98] sm:$0xff] }
 0x121   :  { %4288 = vmatpush.bf16.msra.mxu3 %v6631_v36  ;;  %4250 = vmatmul.bf16.vlgmr.msra.gmra.mxu0 %v1058_v43  ;;  %v4057_v62 = vadd.f32 %v4056_v59, %v4044_v56  ;;  %v1065_v36 = vpack.c.b16 %v1009_v28, %v1009_v28  ;;  %v6692_v43 = vld [vmem:[%s8278_s1 + $0xaa8] sm:$0xff]  ;;  %v6698_v56 = vld [vmem:[%s8278_s1 + $0xad8] sm:$0xff]  ;;  %v6717_v28 = vld [vmem:[%s8278_s1 + $0xb70] sm:$0xff] }
 0x122   :  { %4294 = vmatpush.bf16.msrb.mxu0 %v6646_v39  ;;  %4263 = vmatmul.bf16.vlgmr.msra.gmra.mxu1 %v1059_v45  ;;  %v1062_v33 = vpack.c.b16 %v1006_v23, %v1006_v23  ;;  %v1063_v35 = vpack.c.b16 %v1007_v27, %v1007_v27  ;;  %v6693_v39 = vld [vmem:[%s8278_s1 + $0xab0] sm:$0xff] }
 0x123   :  { %4307 = vmatpush.bf16.msrb.mxu1 %v6654_v40  ;;  %4276 = vmatmul.bf16.vlgmr.msra.gmra.mxu2 %v1060_v44  ;;  %v6701_v40 = vld [vmem:[%s8278_s1 + $0xaf0] sm:$0xff]  ;;  %v6700_v44 = vld [vmem:[%s8278_s1 + $0xae8] sm:$0xff] }
 0x124   :  { %4320 = vmatpush.bf16.msrb.mxu2 %v6662_v41  ;;  %4289 = vmatmul.bf16.vlgmr.msra.gmra.mxu3 %v1061_v46  ;;  %v6676_v41 = vld [vmem:[%s8278_s1 + $0xa28] sm:$0xff]  ;;  %v6709_v27 = vld [vmem:[%s8278_s1 + $0xb30] sm:$0xff] }
 0x125   :  { %4333 = vmatpush.bf16.msrb.mxu3 %v6670_v42  ;;  %v6684_v42 = vld [vmem:[%s8278_s1 + $0xa68] sm:$0xff] }
 0x126   :  { %4295 = vmatpush.bf16.msrb.mxu0 %v6645_v47  ;;  %v4069_v3 = vpop.f32.mrf.mxu2  ;;  %v4045_v6 = vpop.f32.mrf.mxu0  ;;  %v6675_v47 = vld [vmem:[%s8278_s1 + $0xa20] sm:$0xff] }
 0x127   :  { %4308 = vmatpush.bf16.msrb.mxu1 %v6653_v48  ;;  %v4070_v4 = vadd.f32 %v4069_v3, %v4057_v62  ;;  %v4082_v5 = vpop.f32.mrf.mxu3  ;;  %v4058_v10 = vpop.f32.mrf.mxu1  ;;  %v6683_v48 = vld [vmem:[%s8278_s1 + $0xa60] sm:$0xff]  ;;  %v6673_v62 = vld [vmem:[%s8278_s1 + $0xa10] sm:$0xff]  ;;  %v6672_v3 = vld [vmem:[%s8278_s1 + $0xa08] sm:$0xff] }
 0x128   :  { %4321 = vmatpush.bf16.msrb.mxu2 %v6661_v49  ;;  %v6696_v6 = vld [vmem:[%s8278_s1 + $0xac8] sm:$0xff] }
 0x129   :  { %4334 = vmatpush.bf16.msrb.mxu3 %v6669_v50  ;;  %v7813_v7 = vadd.f32 %v4082_v5, %v4070_v4  ;;  %v6691_v50 = vld [vmem:[%s8278_s1 + $0xaa0] sm:$0xff]  ;;  %v6680_v4 = vld [vmem:[%s8278_s1 + $0xa48] sm:$0xff] }
 0x12a   :  { %4296 = vmatpush.bf16.msrb.mxu0 %v6644_v51  ;;  %v6699_v51 = vld [vmem:[%s8278_s1 + $0xae0] sm:$0xff]  ;;  %v6688_v5 = vld [vmem:[%s8278_s1 + $0xa88] sm:$0xff] }
 0x12b   :  { %4309 = vmatpush.bf16.msrb.mxu1 %v6652_v52 }
 0x12c   :  { %4322 = vmatpush.bf16.msrb.mxu2 %v6660_v53  ;;  %v6674_v53 = vld [vmem:[%s8278_s1 + $0xa18] sm:$0xff] }
 0x12d   :  { %4335 = vmatpush.bf16.msrb.mxu3 %v6668_v54  ;;  %v6682_v54 = vld [vmem:[%s8278_s1 + $0xa58] sm:$0xff] }
 0x12e   :  { %4297 = vmatpush.bf16.msrb.mxu0 %v6643_v57  ;;  %v4071_v19 = vpop.f32.mrf.mxu2 }
 0x12f   :  { %4310 = vmatpush.bf16.msrb.mxu1 %v6651_v58  ;;  %v4084_v20 = vpop.f32.mrf.mxu3  ;;  %v6710_v19 = vld [vmem:[%s8278_s1 + $0xb38] sm:$0xff] }
 0x130   :  { %4323 = vmatpush.bf16.msrb.mxu2 %v6659_v60  ;;  %v6718_v20 = vld [vmem:[%s8278_s1 + $0xb78] sm:$0xff] }
 0x131   :  { %4336 = vmatpush.bf16.msrb.mxu3 %v6667_v61 }
 0x132   :  { %4298 = vmatpush.bf16.msrb.mxu0 %v6642_v63  ;;  %v6681_v63 = vld [vmem:[%s8278_s1 + $0xa50] sm:$0xff] }
 0x133   :  { %4311 = vmatpush.bf16.msrb.mxu1 %v6650_v0 }
 0x134   :  { %4324 = vmatpush.bf16.msrb.mxu2 %v6658_v1  ;;  %v6689_v1 = vld [vmem:[%s8278_s1 + $0xa90] sm:$0xff] }
 0x135   :  { %4337 = vmatpush.bf16.msrb.mxu3 %v6666_v2  ;;  %v6697_v2 = vld [vmem:[%s8278_s1 + $0xad0] sm:$0xff] }
 0x136   :  { %4299 = vmatpush.bf16.msrb.mxu0 %v6641_v8  ;;  %v35_v8 = vld [vmem:[%s8279_s0 + $0xa8] sm:$0xff] }
 0x137   :  { %4312 = vmatpush.bf16.msrb.mxu1 %v6649_v9  ;;  %v1013_v18 = vunpack.c.h.b16 %v35_v8 }
 0x138   :  { %4325 = vmatpush.bf16.msrb.mxu2 %v6657_v11  ;;  %v6671_v11 = vld [vmem:[%s8278_s1 + $0xa00] sm:$0xff] }
 0x139   :  { %4338 = vmatpush.bf16.msrb.mxu3 %v6665_v12  ;;  %v6679_v12 = vld [vmem:[%s8278_s1 + $0xa40] sm:$0xff] }
 0x13a   :  { %4300 = vmatpush.bf16.msrb.mxu0 %v6640_v13 }
 0x13b   :  { %4313 = vmatpush.bf16.msrb.mxu1 %v6648_v14  ;;  %v1012_v14 = vunpack.c.l.b16 %v35_v8 }
 0x13c   :  { %4326 = vmatpush.bf16.msrb.mxu2 %v6656_v15  ;;  %v6687_v15 = vld [vmem:[%s8278_s1 + $0xa80] sm:$0xff] }
 0x13d   :  { %4339 = vmatpush.bf16.msrb.mxu3 %v6664_v16  ;;  %v6695_v16 = vld [vmem:[%s8278_s1 + $0xac0] sm:$0xff]  ;;  %v1068_v24 = vpack.c.b16 %v1012_v14, %v1012_v14 }
 0x13e   :  { %4301 = vmatpush.bf16.msrb.mxu0 %v6639_v21  ;;  %v4095_v45 = vpop.f32.mrf.mxu0  ;;  %v6726_v21 = vld [vmem:[%s8278_s1 + $0xbb8] sm:$0xff] }
 0x13f   :  { %4314 = vmatpush.bf16.msrb.mxu1 %v6647_v22  ;;  %v4096_v46 = vadd.f32 %v4095_v45, %v7813_v7  ;;  %v4108_v49 = vpop.f32.mrf.mxu1  ;;  %v34_v7 = vld [vmem:[%s8279_s0 + $0xa0] sm:$0xff]  ;;  %v6734_v22 = vld [vmem:[%s8278_s1 + $0xbf8] sm:$0xff] }
 0x140   :  { %4327 = vmatpush.bf16.msrb.mxu2 %v6655_v25  ;;  %v1010_v13 = vunpack.c.l.b16 %v34_v7  ;;  %v1011_v17 = vunpack.c.h.b16 %v34_v7  ;;  %v6722_v45 = vld [vmem:[%s8278_s1 + $0xb98] sm:$0xff] }
 0x141   :  { %4340 = vmatpush.bf16.msrb.mxu3 %v6663_v26  ;;  %4302 = vmatmul.bf16.vlgmr.msrb.gmra.mxu0 %v1062_v33  ;;  %v4109_v52 = vadd.f32 %v4108_v49, %v4096_v46  ;;  %v1069_v26 = vpack.c.b16 %v1013_v18, %v1013_v18  ;;  %v6724_v33 = vld [vmem:[%s8278_s1 + $0xba8] sm:$0xff]  ;;  %v6730_v46 = vld [vmem:[%s8278_s1 + $0xbd8] sm:$0xff]  ;;  %v6749_v18 = vld [vmem:[%s8278_s1 + $0xc70] sm:$0xff] }
 0x142   :  { %4346 = vmatpush.bf16.msra.mxu0 %v6678_v29  ;;  %4315 = vmatmul.bf16.vlgmr.msrb.gmra.mxu1 %v1063_v35  ;;  %v1066_v23 = vpack.c.b16 %v1010_v13, %v1010_v13  ;;  %v1067_v25 = vpack.c.b16 %v1011_v17, %v1011_v17  ;;  %v6725_v29 = vld [vmem:[%s8278_s1 + $0xbb0] sm:$0xff] }
 0x143   :  { %4359 = vmatpush.bf16.msra.mxu1 %v6686_v30  ;;  %4328 = vmatmul.bf16.vlgmr.msrb.gmra.mxu2 %v1064_v34  ;;  %v6733_v30 = vld [vmem:[%s8278_s1 + $0xbf0] sm:$0xff]  ;;  %v6732_v34 = vld [vmem:[%s8278_s1 + $0xbe8] sm:$0xff] }
 0x144   :  { %4372 = vmatpush.bf16.msra.mxu2 %v6694_v31  ;;  %4341 = vmatmul.bf16.vlgmr.msrb.gmra.mxu3 %v1065_v36  ;;  %v6708_v31 = vld [vmem:[%s8278_s1 + $0xb28] sm:$0xff]  ;;  %v6741_v17 = vld [vmem:[%s8278_s1 + $0xc30] sm:$0xff] }
 0x145   :  { %4385 = vmatpush.bf16.msra.mxu3 %v6702_v32  ;;  %v6716_v32 = vld [vmem:[%s8278_s1 + $0xb68] sm:$0xff] }
 0x146   :  { %4347 = vmatpush.bf16.msra.mxu0 %v6677_v37  ;;  %v4121_v57 = vpop.f32.mrf.mxu2  ;;  %v4097_v60 = vpop.f32.mrf.mxu0  ;;  %v6707_v37 = vld [vmem:[%s8278_s1 + $0xb20] sm:$0xff] }
 0x147   :  { %4360 = vmatpush.bf16.msra.mxu1 %v6685_v38  ;;  %v4122_v58 = vadd.f32 %v4121_v57, %v4109_v52  ;;  %v4134_v59 = vpop.f32.mrf.mxu3  ;;  %v4110_v0 = vpop.f32.mrf.mxu1  ;;  %v6715_v38 = vld [vmem:[%s8278_s1 + $0xb60] sm:$0xff]  ;;  %v6705_v52 = vld [vmem:[%s8278_s1 + $0xb10] sm:$0xff]  ;;  %v6704_v57 = vld [vmem:[%s8278_s1 + $0xb08] sm:$0xff] }
 0x148   :  { %4373 = vmatpush.bf16.msra.mxu2 %v6693_v39  ;;  %v6728_v60 = vld [vmem:[%s8278_s1 + $0xbc8] sm:$0xff] }
 0x149   :  { %4386 = vmatpush.bf16.msra.mxu3 %v6701_v40  ;;  %v7918_v61 = vadd.f32 %v4134_v59, %v4122_v58  ;;  %v6723_v40 = vld [vmem:[%s8278_s1 + $0xba0] sm:$0xff]  ;;  %v6712_v58 = vld [vmem:[%s8278_s1 + $0xb48] sm:$0xff] }
 0x14a   :  { %4348 = vmatpush.bf16.msra.mxu0 %v6676_v41  ;;  %v6731_v41 = vld [vmem:[%s8278_s1 + $0xbe0] sm:$0xff]  ;;  %v6720_v59 = vld [vmem:[%s8278_s1 + $0xb88] sm:$0xff] }
 0x14b   :  { %4361 = vmatpush.bf16.msra.mxu1 %v6684_v42 }
 0x14c   :  { %4374 = vmatpush.bf16.msra.mxu2 %v6692_v43  ;;  %v6706_v43 = vld [vmem:[%s8278_s1 + $0xb18] sm:$0xff] }
 0x14d   :  { %4387 = vmatpush.bf16.msra.mxu3 %v6700_v44  ;;  %v6714_v44 = vld [vmem:[%s8278_s1 + $0xb58] sm:$0xff] }
 0x14e   :  { %4349 = vmatpush.bf16.msra.mxu0 %v6675_v47  ;;  %v4123_v9 = vpop.f32.mrf.mxu2 }
 0x14f   :  { %4362 = vmatpush.bf16.msra.mxu1 %v6683_v48  ;;  %v4136_v10 = vpop.f32.mrf.mxu3  ;;  %v6742_v9 = vld [vmem:[%s8278_s1 + $0xc38] sm:$0xff] }
 0x150   :  { %4375 = vmatpush.bf16.msra.mxu2 %v6691_v50  ;;  %v6750_v10 = vld [vmem:[%s8278_s1 + $0xc78] sm:$0xff] }
 0x151   :  { %4388 = vmatpush.bf16.msra.mxu3 %v6699_v51 }
 0x152   :  { %4350 = vmatpush.bf16.msra.mxu0 %v6674_v53  ;;  %v6713_v53 = vld [vmem:[%s8278_s1 + $0xb50] sm:$0xff] }
 0x153   :  { %4363 = vmatpush.bf16.msra.mxu1 %v6682_v54 }
 0x154   :  { %4376 = vmatpush.bf16.msra.mxu2 %v6690_v55  ;;  %v6721_v55 = vld [vmem:[%s8278_s1 + $0xb90] sm:$0xff] }
 0x155   :  { %4389 = vmatpush.bf16.msra.mxu3 %v6698_v56  ;;  %v6729_v56 = vld [vmem:[%s8278_s1 + $0xbd0] sm:$0xff] }
 0x156   :  { %4351 = vmatpush.bf16.msra.mxu0 %v6673_v62  ;;  %v37_v62 = vld [vmem:[%s8279_s0 + $0xb8] sm:$0xff] }
 0x157   :  { %4364 = vmatpush.bf16.msra.mxu1 %v6681_v63  ;;  %v1017_v8 = vunpack.c.h.b16 %v37_v62 }
 0x158   :  { %4377 = vmatpush.bf16.msra.mxu2 %v6689_v1  ;;  %v6703_v1 = vld [vmem:[%s8278_s1 + $0xb00] sm:$0xff] }
 0x159   :  { %4390 = vmatpush.bf16.msra.mxu3 %v6697_v2  ;;  %v6711_v2 = vld [vmem:[%s8278_s1 + $0xb40] sm:$0xff] }
 0x15a   :  { %4352 = vmatpush.bf16.msra.mxu0 %v6672_v3 }
 0x15b   :  { %4365 = vmatpush.bf16.msra.mxu1 %v6680_v4  ;;  %v1016_v4 = vunpack.c.l.b16 %v37_v62 }
 0x15c   :  { %4378 = vmatpush.bf16.msra.mxu2 %v6688_v5  ;;  %v6719_v5 = vld [vmem:[%s8278_s1 + $0xb80] sm:$0xff] }
 0x15d   :  { %4391 = vmatpush.bf16.msra.mxu3 %v6696_v6  ;;  %v6727_v6 = vld [vmem:[%s8278_s1 + $0xbc0] sm:$0xff]  ;;  %v1072_v14 = vpack.c.b16 %v1016_v4, %v1016_v4 }
 0x15e   :  { %4353 = vmatpush.bf16.msra.mxu0 %v6671_v11  ;;  %v4147_v35 = vpop.f32.mrf.mxu0  ;;  %v6758_v11 = vld [vmem:[%s8278_s1 + $0xcb8] sm:$0xff] }
 0x15f   :  { %4366 = vmatpush.bf16.msra.mxu1 %v6679_v12  ;;  %v4148_v36 = vadd.f32 %v4147_v35, %v7918_v61  ;;  %v4160_v39 = vpop.f32.mrf.mxu1  ;;  %v36_v61 = vld [vmem:[%s8279_s0 + $0xb0] sm:$0xff]  ;;  %v6766_v12 = vld [vmem:[%s8278_s1 + $0xcf8] sm:$0xff] }
 0x160   :  { %4379 = vmatpush.bf16.msra.mxu2 %v6687_v15  ;;  %v1014_v3 = vunpack.c.l.b16 %v36_v61  ;;  %v1015_v7 = vunpack.c.h.b16 %v36_v61  ;;  %v6754_v35 = vld [vmem:[%s8278_s1 + $0xc98] sm:$0xff] }
 0x161   :  { %4392 = vmatpush.bf16.msra.mxu3 %v6695_v16  ;;  %4354 = vmatmul.bf16.vlgmr.msra.gmra.mxu0 %v1066_v23  ;;  %v4161_v42 = vadd.f32 %v4160_v39, %v4148_v36  ;;  %v1073_v16 = vpack.c.b16 %v1017_v8, %v1017_v8  ;;  %v6756_v23 = vld [vmem:[%s8278_s1 + $0xca8] sm:$0xff]  ;;  %v6762_v36 = vld [vmem:[%s8278_s1 + $0xcd8] sm:$0xff]  ;;  %v6781_v8 = vld [vmem:[%s8278_s1 + $0xd70] sm:$0xff] }
 0x162   :  { %4398 = vmatpush.bf16.msrb.mxu0 %v6710_v19  ;;  %4367 = vmatmul.bf16.vlgmr.msra.gmra.mxu1 %v1067_v25  ;;  %v1070_v13 = vpack.c.b16 %v1014_v3, %v1014_v3  ;;  %v1071_v15 = vpack.c.b16 %v1015_v7, %v1015_v7  ;;  %v6757_v19 = vld [vmem:[%s8278_s1 + $0xcb0] sm:$0xff] }
 0x163   :  { %4411 = vmatpush.bf16.msrb.mxu1 %v6718_v20  ;;  %4380 = vmatmul.bf16.vlgmr.msra.gmra.mxu2 %v1068_v24  ;;  %v6765_v20 = vld [vmem:[%s8278_s1 + $0xcf0] sm:$0xff]  ;;  %v6764_v24 = vld [vmem:[%s8278_s1 + $0xce8] sm:$0xff] }
 0x164   :  { %4424 = vmatpush.bf16.msrb.mxu2 %v6726_v21  ;;  %4393 = vmatmul.bf16.vlgmr.msra.gmra.mxu3 %v1069_v26  ;;  %v6740_v21 = vld [vmem:[%s8278_s1 + $0xc28] sm:$0xff]  ;;  %v6773_v7 = vld [vmem:[%s8278_s1 + $0xd30] sm:$0xff] }
 0x165   :  { %4437 = vmatpush.bf16.msrb.mxu3 %v6734_v22  ;;  %v6748_v22 = vld [vmem:[%s8278_s1 + $0xc68] sm:$0xff] }
 0x166   :  { %4399 = vmatpush.bf16.msrb.mxu0 %v6709_v27  ;;  %v4173_v47 = vpop.f32.mrf.mxu2  ;;  %v4149_v50 = vpop.f32.mrf.mxu0  ;;  %v6739_v27 = vld [vmem:[%s8278_s1 + $0xc20] sm:$0xff] }
 0x167   :  { %4412 = vmatpush.bf16.msrb.mxu1 %v6717_v28  ;;  %v4174_v48 = vadd.f32 %v4173_v47, %v4161_v42  ;;  %v4186_v49 = vpop.f32.mrf.mxu3  ;;  %v4162_v54 = vpop.f32.mrf.mxu1  ;;  %v6747_v28 = vld [vmem:[%s8278_s1 + $0xc60] sm:$0xff]  ;;  %v6737_v42 = vld [vmem:[%s8278_s1 + $0xc10] sm:$0xff]  ;;  %v6736_v47 = vld [vmem:[%s8278_s1 + $0xc08] sm:$0xff] }
 0x168   :  { %4425 = vmatpush.bf16.msrb.mxu2 %v6725_v29  ;;  %v6760_v50 = vld [vmem:[%s8278_s1 + $0xcc8] sm:$0xff] }
 0x169   :  { %4438 = vmatpush.bf16.msrb.mxu3 %v6733_v30  ;;  %v8023_v51 = vadd.f32 %v4186_v49, %v4174_v48  ;;  %v6755_v30 = vld [vmem:[%s8278_s1 + $0xca0] sm:$0xff]  ;;  %v6744_v48 = vld [vmem:[%s8278_s1 + $0xc48] sm:$0xff] }
 0x16a   :  { %4400 = vmatpush.bf16.msrb.mxu0 %v6708_v31  ;;  %v6763_v31 = vld [vmem:[%s8278_s1 + $0xce0] sm:$0xff]  ;;  %v6752_v49 = vld [vmem:[%s8278_s1 + $0xc88] sm:$0xff] }
 0x16b   :  { %4413 = vmatpush.bf16.msrb.mxu1 %v6716_v32 }
 0x16c   :  { %4426 = vmatpush.bf16.msrb.mxu2 %v6724_v33  ;;  %v6738_v33 = vld [vmem:[%s8278_s1 + $0xc18] sm:$0xff] }
 0x16d   :  { %4439 = vmatpush.bf16.msrb.mxu3 %v6732_v34  ;;  %v6746_v34 = vld [vmem:[%s8278_s1 + $0xc58] sm:$0xff] }
 0x16e   :  { %4401 = vmatpush.bf16.msrb.mxu0 %v6707_v37  ;;  %v4175_v63 = vpop.f32.mrf.mxu2 }
 0x16f   :  { %4414 = vmatpush.bf16.msrb.mxu1 %v6715_v38  ;;  %v4188_v0 = vpop.f32.mrf.mxu3  ;;  %v6774_v63 = vld [vmem:[%s8278_s1 + $0xd38] sm:$0xff] }
 0x170   :  { %4427 = vmatpush.bf16.msrb.mxu2 %v6723_v40  ;;  %v6782_v0 = vld [vmem:[%s8278_s1 + $0xd78] sm:$0xff] }
 0x171   :  { %4440 = vmatpush.bf16.msrb.mxu3 %v6731_v41 }
 0x172   :  { %4402 = vmatpush.bf16.msrb.mxu0 %v6706_v43  ;;  %v6745_v43 = vld [vmem:[%s8278_s1 + $0xc50] sm:$0xff] }
 0x173   :  { %4415 = vmatpush.bf16.msrb.mxu1 %v6714_v44 }
 0x174   :  { %4428 = vmatpush.bf16.msrb.mxu2 %v6722_v45  ;;  %v6753_v45 = vld [vmem:[%s8278_s1 + $0xc90] sm:$0xff] }
 0x175   :  { %4441 = vmatpush.bf16.msrb.mxu3 %v6730_v46  ;;  %v6761_v46 = vld [vmem:[%s8278_s1 + $0xcd0] sm:$0xff] }
 0x176   :  { %4403 = vmatpush.bf16.msrb.mxu0 %v6705_v52  ;;  %v39_v52 = vld [vmem:[%s8279_s0 + $0xc8] sm:$0xff] }
 0x177   :  { %4416 = vmatpush.bf16.msrb.mxu1 %v6713_v53  ;;  %v1021_v62 = vunpack.c.h.b16 %v39_v52 }
 0x178   :  { %4429 = vmatpush.bf16.msrb.mxu2 %v6721_v55  ;;  %v6735_v55 = vld [vmem:[%s8278_s1 + $0xc00] sm:$0xff] }
 0x179   :  { %4442 = vmatpush.bf16.msrb.mxu3 %v6729_v56  ;;  %v6743_v56 = vld [vmem:[%s8278_s1 + $0xc40] sm:$0xff] }
 0x17a   :  { %4404 = vmatpush.bf16.msrb.mxu0 %v6704_v57 }
 0x17b   :  { %4417 = vmatpush.bf16.msrb.mxu1 %v6712_v58  ;;  %v1020_v58 = vunpack.c.l.b16 %v39_v52  ;;  %v6791_v52 = vld [vmem:[%s8278_s1 + $0xdc0] sm:$0xff] }
 0x17c   :  { %4430 = vmatpush.bf16.msrb.mxu2 %v6720_v59  ;;  %v6751_v59 = vld [vmem:[%s8278_s1 + $0xc80] sm:$0xff] }
 0x17d   :  { %4443 = vmatpush.bf16.msrb.mxu3 %v6728_v60  ;;  %v6759_v60 = vld [vmem:[%s8278_s1 + $0xcc0] sm:$0xff]  ;;  %v1076_v4 = vpack.c.b16 %v1020_v58, %v1020_v58 }
 0x17e   :  { %4405 = vmatpush.bf16.msrb.mxu0 %v6703_v1  ;;  %v4199_v25 = vpop.f32.mrf.mxu0  ;;  %v6790_v1 = vld [vmem:[%s8278_s1 + $0xdb8] sm:$0xff] }
 0x17f   :  { %4418 = vmatpush.bf16.msrb.mxu1 %v6711_v2  ;;  %v4200_v26 = vadd.f32 %v4199_v25, %v8023_v51  ;;  %v4212_v29 = vpop.f32.mrf.mxu1  ;;  %v38_v51 = vld [vmem:[%s8279_s0 + $0xc0] sm:$0xff]  ;;  %v6798_v2 = vld [vmem:[%s8278_s1 + $0xdf8] sm:$0xff] }
 0x180   :  { %4431 = vmatpush.bf16.msrb.mxu2 %v6719_v5  ;;  %v1018_v57 = vunpack.c.l.b16 %v38_v51  ;;  %v1019_v61 = vunpack.c.h.b16 %v38_v51  ;;  %v6786_v25 = vld [vmem:[%s8278_s1 + $0xd98] sm:$0xff]  ;;  %v6783_v51 = vld [vmem:[%s8278_s1 + $0xd80] sm:$0xff] }
 0x181   :  { %4444 = vmatpush.bf16.msrb.mxu3 %v6727_v6  ;;  %4406 = vmatmul.bf16.vlgmr.msrb.gmra.mxu0 %v1070_v13  ;;  %v4213_v32 = vadd.f32 %v4212_v29, %v4200_v26  ;;  %v1077_v6 = vpack.c.b16 %v1021_v62, %v1021_v62  ;;  %v6788_v13 = vld [vmem:[%s8278_s1 + $0xda8] sm:$0xff]  ;;  %v6794_v26 = vld [vmem:[%s8278_s1 + $0xdd8] sm:$0xff] }
 0x182   :  { %4450 = vmatpush.bf16.msra.mxu0 %v6742_v9  ;;  %4419 = vmatmul.bf16.vlgmr.msrb.gmra.mxu1 %v1071_v15  ;;  %v1074_v3 = vpack.c.b16 %v1018_v57, %v1018_v57  ;;  %v1075_v5 = vpack.c.b16 %v1019_v61, %v1019_v61  ;;  %v6789_v9 = vld [vmem:[%s8278_s1 + $0xdb0] sm:$0xff] }
 0x183   :  { %4463 = vmatpush.bf16.msra.mxu1 %v6750_v10  ;;  %4432 = vmatmul.bf16.vlgmr.msrb.gmra.mxu2 %v1072_v14  ;;  %v6797_v10 = vld [vmem:[%s8278_s1 + $0xdf0] sm:$0xff]  ;;  %v6796_v14 = vld [vmem:[%s8278_s1 + $0xde8] sm:$0xff] }
 0x184   :  { %4476 = vmatpush.bf16.msra.mxu2 %v6758_v11  ;;  %4445 = vmatmul.bf16.vlgmr.msrb.gmra.mxu3 %v1073_v16  ;;  %v6772_v11 = vld [vmem:[%s8278_s1 + $0xd28] sm:$0xff] }
 0x185   :  { %4489 = vmatpush.bf16.msra.mxu3 %v6766_v12  ;;  %v6780_v12 = vld [vmem:[%s8278_s1 + $0xd68] sm:$0xff] }
 0x186   :  { %4451 = vmatpush.bf16.msra.mxu0 %v6741_v17  ;;  %v4225_v37 = vpop.f32.mrf.mxu2  ;;  %v4201_v40 = vpop.f32.mrf.mxu0  ;;  %v6771_v17 = vld [vmem:[%s8278_s1 + $0xd20] sm:$0xff] }
 0x187   :  { %4464 = vmatpush.bf16.msra.mxu1 %v6749_v18  ;;  %v4226_v38 = vadd.f32 %v4225_v37, %v4213_v32  ;;  %v4238_v39 = vpop.f32.mrf.mxu3  ;;  %v4214_v44 = vpop.f32.mrf.mxu1  ;;  %v6779_v18 = vld [vmem:[%s8278_s1 + $0xd60] sm:$0xff]  ;;  %v6769_v32 = vld [vmem:[%s8278_s1 + $0xd10] sm:$0xff]  ;;  %v6768_v37 = vld [vmem:[%s8278_s1 + $0xd08] sm:$0xff] }
 0x188   :  { %4477 = vmatpush.bf16.msra.mxu2 %v6757_v19  ;;  %v6784_v40 = vld [vmem:[%s8278_s1 + $0xd88] sm:$0xff] }
 0x189   :  { %4490 = vmatpush.bf16.msra.mxu3 %v6765_v20  ;;  %v8128_v41 = vadd.f32 %v4238_v39, %v4226_v38  ;;  %v6787_v20 = vld [vmem:[%s8278_s1 + $0xda0] sm:$0xff]  ;;  %v6776_v38 = vld [vmem:[%s8278_s1 + $0xd48] sm:$0xff]  ;;  %v40_v39 = vld [vmem:[%s8279_s0 + $0xd0] sm:$0xff] }
 0x18a   :  { %4452 = vmatpush.bf16.msra.mxu0 %v6740_v21  ;;  %v6795_v21 = vld [vmem:[%s8278_s1 + $0xde0] sm:$0xff] }
 0x18b   :  { %4465 = vmatpush.bf16.msra.mxu1 %v6748_v22 }
 0x18c   :  { %4478 = vmatpush.bf16.msra.mxu2 %v6756_v23  ;;  %v6770_v23 = vld [vmem:[%s8278_s1 + $0xd18] sm:$0xff] }
 0x18d   :  { %4491 = vmatpush.bf16.msra.mxu3 %v6764_v24  ;;  %v6778_v24 = vld [vmem:[%s8278_s1 + $0xd58] sm:$0xff] }
 0x18e   :  { %4453 = vmatpush.bf16.msra.mxu0 %v6739_v27  ;;  %v4227_v53 = vpop.f32.mrf.mxu2 }
 0x18f   :  { %4466 = vmatpush.bf16.msra.mxu1 %v6747_v28  ;;  %v4240_v54 = vpop.f32.mrf.mxu3 }
 0x190   :  { %4479 = vmatpush.bf16.msra.mxu2 %v6755_v30 }
 0x191   :  { %4492 = vmatpush.bf16.msra.mxu3 %v6763_v31 }
 0x192   :  { %4454 = vmatpush.bf16.msra.mxu0 %v6738_v33  ;;  %v6777_v33 = vld [vmem:[%s8278_s1 + $0xd50] sm:$0xff] }
 0x193   :  { %4467 = vmatpush.bf16.msra.mxu1 %v6746_v34 }
 0x194   :  { %4480 = vmatpush.bf16.msra.mxu2 %v6754_v35  ;;  %v6785_v35 = vld [vmem:[%s8278_s1 + $0xd90] sm:$0xff] }
 0x195   :  { %4493 = vmatpush.bf16.msra.mxu3 %v6762_v36  ;;  %v6793_v36 = vld [vmem:[%s8278_s1 + $0xdd0] sm:$0xff] }
 0x196   :  { %4455 = vmatpush.bf16.msra.mxu0 %v6737_v42  ;;  %v41_v42 = vld [vmem:[%s8279_s0 + $0xd8] sm:$0xff] }
 0x197   :  { %4468 = vmatpush.bf16.msra.mxu1 %v6745_v43 }
 0x198   :  { %4481 = vmatpush.bf16.msra.mxu2 %v6753_v45  ;;  %v1022_v45 = vunpack.c.l.b16 %v40_v39 }
 0x199   :  { %4494 = vmatpush.bf16.msra.mxu3 %v6761_v46  ;;  %v1023_v46 = vunpack.c.h.b16 %v40_v39 }
 0x19a   :  { %4456 = vmatpush.bf16.msra.mxu0 %v6736_v47  ;;  %v6767_v47 = vld [vmem:[%s8278_s1 + $0xd00] sm:$0xff]  ;;  %v1078_v53 = vpack.c.b16 %v1022_v45, %v1022_v45 }
 0x19b   :  { %4469 = vmatpush.bf16.msra.mxu1 %v6744_v48  ;;  %v6775_v48 = vld [vmem:[%s8278_s1 + $0xd40] sm:$0xff]  ;;  %v1079_v54 = vpack.c.b16 %v1023_v46, %v1023_v46 }
 0x19c   :  { %4482 = vmatpush.bf16.msra.mxu2 %v6752_v49  ;;  %v1024_v49 = vunpack.c.l.b16 %v41_v42 }
 0x19d   :  { %4495 = vmatpush.bf16.msra.mxu3 %v6760_v50  ;;  %v1025_v50 = vunpack.c.h.b16 %v41_v42 }
 0x19e   :  { %4457 = vmatpush.bf16.msra.mxu0 %v6735_v55  ;;  %v4251_v15 = vpop.f32.mrf.mxu0  ;;  %v1080_v55 = vpack.c.b16 %v1024_v49, %v1024_v49 }
 0x19f   :  { %4470 = vmatpush.bf16.msra.mxu1 %v6743_v56  ;;  %v4252_v16 = vadd.f32 %v4251_v15, %v8128_v41  ;;  %v4264_v19 = vpop.f32.mrf.mxu1  ;;  %v6792_v41 = vld [vmem:[%s8278_s1 + $0xdc8] sm:$0xff]  ;;  %v1081_v56 = vpack.c.b16 %v1025_v50, %v1025_v50 }
 0x1a0   :  { %4483 = vmatpush.bf16.msra.mxu2 %v6751_v59 }
 0x1a1   :  { %4496 = vmatpush.bf16.msra.mxu3 %v6759_v60  ;;  %4458 = vmatmul.bf16.vlgmr.msra.gmra.mxu0 %v1074_v3  ;;  %v4265_v22 = vadd.f32 %v4264_v19, %v4252_v16 }
 0x1a2   :  { %4502 = vmatpush.bf16.msrb.mxu0 %v6774_v63  ;;  %4471 = vmatmul.bf16.vlgmr.msra.gmra.mxu1 %v1075_v5 }
 0x1a3   :  { %4515 = vmatpush.bf16.msrb.mxu1 %v6782_v0  ;;  %4484 = vmatmul.bf16.vlgmr.msra.gmra.mxu2 %v1076_v4 }
 0x1a4   :  { %4528 = vmatpush.bf16.msrb.mxu2 %v6790_v1  ;;  %4497 = vmatmul.bf16.vlgmr.msra.gmra.mxu3 %v1077_v6 }
 0x1a5   :  { %4541 = vmatpush.bf16.msrb.mxu3 %v6798_v2 }
 0x1a6   :  { %4503 = vmatpush.bf16.msrb.mxu0 %v6773_v7  ;;  %v4277_v27 = vpop.f32.mrf.mxu2  ;;  %v4253_v30 = vpop.f32.mrf.mxu0 }
 0x1a7   :  { %4516 = vmatpush.bf16.msrb.mxu1 %v6781_v8  ;;  %v4278_v28 = vadd.f32 %v4277_v27, %v4265_v22  ;;  %v4290_v29 = vpop.f32.mrf.mxu3  ;;  %v4266_v34 = vpop.f32.mrf.mxu1 }
 0x1a8   :  { %4529 = vmatpush.bf16.msrb.mxu2 %v6789_v9 }
 0x1a9   :  { %4542 = vmatpush.bf16.msrb.mxu3 %v6797_v10  ;;  %v4291_v31 = vadd.f32 %v4290_v29, %v4278_v28 }
 0x1aa   :  { %4504 = vmatpush.bf16.msrb.mxu0 %v6772_v11 }
 0x1ab   :  { %4517 = vmatpush.bf16.msrb.mxu1 %v6780_v12 }
 0x1ac   :  { %4530 = vmatpush.bf16.msrb.mxu2 %v6788_v13 }
 0x1ad   :  { %4543 = vmatpush.bf16.msrb.mxu3 %v6796_v14 }
 0x1ae   :  { %4505 = vmatpush.bf16.msrb.mxu0 %v6771_v17  ;;  %v4279_v43 = vpop.f32.mrf.mxu2 }
 0x1af   :  { %4518 = vmatpush.bf16.msrb.mxu1 %v6779_v18  ;;  %v4292_v44 = vpop.f32.mrf.mxu3 }
 0x1b0   :  { %4531 = vmatpush.bf16.msrb.mxu2 %v6787_v20 }
 0x1b1   :  { %4544 = vmatpush.bf16.msrb.mxu3 %v6795_v21 }
 0x1b2   :  { %4506 = vmatpush.bf16.msrb.mxu0 %v6770_v23 }
 0x1b3   :  { %4519 = vmatpush.bf16.msrb.mxu1 %v6778_v24 }
 0x1b4   :  { %4532 = vmatpush.bf16.msrb.mxu2 %v6786_v25 }
 0x1b5   :  { %4545 = vmatpush.bf16.msrb.mxu3 %v6794_v26 }
 0x1b6   :  { %4507 = vmatpush.bf16.msrb.mxu0 %v6769_v32 }
 0x1b7   :  { %4520 = vmatpush.bf16.msrb.mxu1 %v6777_v33 }
 0x1b8   :  { %4533 = vmatpush.bf16.msrb.mxu2 %v6785_v35 }
 0x1b9   :  { %4546 = vmatpush.bf16.msrb.mxu3 %v6793_v36 }
 0x1ba   :  { %4508 = vmatpush.bf16.msrb.mxu0 %v6768_v37 }
 0x1bb   :  { %4521 = vmatpush.bf16.msrb.mxu1 %v6776_v38 }
 0x1bc   :  { %4534 = vmatpush.bf16.msrb.mxu2 %v6784_v40 }
 0x1bd   :  { %4547 = vmatpush.bf16.msrb.mxu3 %v6792_v41 }
 0x1be   :  { %4509 = vmatpush.bf16.msrb.mxu0 %v6767_v47  ;;  %v4303_v57 = vpop.f32.mrf.mxu0 }
 0x1bf   :  { %4522 = vmatpush.bf16.msrb.mxu1 %v6775_v48  ;;  %v4304_v58 = vadd.f32 %v4303_v57, %v4291_v31  ;;  %v4316_v59 = vpop.f32.mrf.mxu1 }
 0x1c0   :  { %4535 = vmatpush.bf16.msrb.mxu2 %v6783_v51 }
 0x1c1   :  { %4548 = vmatpush.bf16.msrb.mxu3 %v6791_v52  ;;  %4510 = vmatmul.bf16.vlgmr.msrb.gmra.mxu0 %v1078_v53  ;;  %v4317_v60 = vadd.f32 %v4316_v59, %v4304_v58 }
 0x1c2   :  { %4523 = vmatmul.bf16.vlgmr.msrb.gmra.mxu1 %v1079_v54 }
 0x1c3   :  { %4536 = vmatmul.bf16.vlgmr.msrb.gmra.mxu2 %v1080_v55 }
 0x1c4   :  { %4549 = vmatmul.bf16.vlgmr.msrb.gmra.mxu3 %v1081_v56 }
 0x1c6   :  { %v4329_v61 = vpop.f32.mrf.mxu2  ;;  %v4305_v0 = vpop.f32.mrf.mxu0 }
 0x1c7   :  { %v4330_v62 = vadd.f32 %v4329_v61, %v4317_v60  ;;  %v4342_v63 = vpop.f32.mrf.mxu3  ;;  %v4318_v2 = vpop.f32.mrf.mxu1 }
 0x1c9   :  { %v4343_v1 = vadd.f32 %v4342_v63, %v4330_v62 }
 0x1ce   :  { %v4331_v3 = vpop.f32.mrf.mxu2 }
 0x1cf   :  { %v4344_v4 = vpop.f32.mrf.mxu3 }
 0x1de   :  { %v4355_v5 = vpop.f32.mrf.mxu0 }
 0x1df   :  { %v4356_v6 = vadd.f32 %v4355_v5, %v4343_v1  ;;  %v4368_v7 = vpop.f32.mrf.mxu1 }
 0x1e1   :  { %v4369_v8 = vadd.f32 %v4368_v7, %v4356_v6 }
 0x1e6   :  { %v4381_v9 = vpop.f32.mrf.mxu2  ;;  %v4357_v12 = vpop.f32.mrf.mxu0 }
 0x1e7   :  { %v4382_v10 = vadd.f32 %v4381_v9, %v4369_v8  ;;  %v4394_v11 = vpop.f32.mrf.mxu3  ;;  %v4370_v14 = vpop.f32.mrf.mxu1 }
 0x1e9   :  { %v4395_v13 = vadd.f32 %v4394_v11, %v4382_v10 }
 0x1ee   :  { %v4383_v15 = vpop.f32.mrf.mxu2 }
 0x1ef   :  { %v4396_v16 = vpop.f32.mrf.mxu3 }
 0x1fe   :  { %v4407_v17 = vpop.f32.mrf.mxu0 }
 0x1ff   :  { %v4420_v18 = vpop.f32.mrf.mxu1  ;;  %v4408_v28 = vadd.f32 %v4407_v17, %v4395_v13 }
 0x201   :  { %v4421_v32 = vadd.f32 %v4420_v18, %v4408_v28 }
 0x206   :  { %v4433_v19 = vpop.f32.mrf.mxu2  ;;  %v4409_v21 = vpop.f32.mrf.mxu0 }
 0x207   :  { %v4446_v20 = vpop.f32.mrf.mxu3  ;;  %v4422_v22 = vpop.f32.mrf.mxu1  ;;  %v4434_v33 = vadd.f32 %v4433_v19, %v4421_v32 }
 0x209   :  { %v4447_v36 = vadd.f32 %v4446_v20, %v4434_v33 }
 0x20e   :  { %v4435_v23 = vpop.f32.mrf.mxu2 }
 0x20f   :  { %v4448_v24 = vpop.f32.mrf.mxu3 }
 0x21e   :  { %v4459_v25 = vpop.f32.mrf.mxu0 }
 0x21f   :  { %v4472_v26 = vpop.f32.mrf.mxu1  ;;  %v4460_v37 = vadd.f32 %v4459_v25, %v4447_v36 }
 0x221   :  { %v4473_v38 = vadd.f32 %v4472_v26, %v4460_v37 }
 0x226   :  { %v4485_v27 = vpop.f32.mrf.mxu2  ;;  %v4461_v30 = vpop.f32.mrf.mxu0 }
 0x227   :  { %v4498_v29 = vpop.f32.mrf.mxu3  ;;  %v4474_v31 = vpop.f32.mrf.mxu1  ;;  %v4486_v39 = vadd.f32 %v4485_v27, %v4473_v38 }
 0x229   :  { %v4499_v40 = vadd.f32 %v4498_v29, %v4486_v39 }
 0x22e   :  { %v4487_v34 = vpop.f32.mrf.mxu2 }
 0x22f   :  { %v4500_v35 = vpop.f32.mrf.mxu3 }
 0x23e   :  { %v4511_v41 = vpop.f32.mrf.mxu0 }
 0x23f   :  { %v4524_v42 = vpop.f32.mrf.mxu1  ;;  %v4512_v43 = vadd.f32 %v4511_v41, %v4499_v40 }
 0x241   :  { %v4525_v44 = vadd.f32 %v4524_v42, %v4512_v43 }
 0x246   :  { %v4537_v45 = vpop.f32.mrf.mxu2  ;;  %v4513_v48 = vpop.f32.mrf.mxu0 }
 0x247   :  { %v4550_v46 = vpop.f32.mrf.mxu3  ;;  %v4538_v47 = vadd.f32 %v4537_v45, %v4525_v44  ;;  %v4526_v49 = vpop.f32.mrf.mxu1 }
 0x249   :  { %v4551_v50 = vadd.f32 %v4550_v46, %v4538_v47 }
 0x24b   :  { %4554 = vst [vmem:[%s8281_s3] sm:$0xff] %v4551_v50 }
 0x24e   :  { %v4539_v51 = vpop.f32.mrf.mxu2 }
 0x24f   :  { %v4552_v52 = vpop.f32.mrf.mxu3 }

</bundles_post_ra>
